<compile_context>
chip_gen: v6e
topology: v6e:2x2x1
jax: 0.10.0
libtpu: 0.0.40
codegen_flags: <defaults>
</compile_context>

<pallas_src>
import math

import jax
import jax.numpy as jnp
import numpy as np
from jax.experimental import pallas as pl
from jax.experimental.pallas import tpu as pltpu

# ------------------------------- model config ------------------------------- #
D = 32           # num_hiddens == key/query/value size == ffn_num_input (norm_shape=[32])
H = 4            # num_heads
HD = D // H      # per-head dim
FFN_H = 64       # ffn_num_hiddens
L = 2            # num_layers (encoder and decoder stacks)
V_SRC = 128      # src vocab
V_TGT = 128      # tgt vocab (lane-dense logits output)
EPS = 1e-5       # nn.LayerNorm default eps
NEG = -1.0e6     # masked_softmax fill value

# packed-slab row strides
ENC32 = D + FFN_H + 8          # 104 rows per encoder layer in the 32-lane slab
DEC32 = 3 * D + FFN_H + 8      # 168 rows per decoder layer in the 32-lane slab
W64_STRIDE = D + 8             # 40 rows per layer in the 64-lane slab


# ------------------------------ kernel helpers ------------------------------ #
def _addnorm(x, y, gamma, beta):
    """LayerNorm(dropout(y) + x); dropout is identity (p = 0)."""
    z = x + y
    mu = jnp.mean(z, axis=-1, keepdims=True)
    var = jnp.mean((z - mu) ** 2, axis=-1, keepdims=True)
    return (z - mu) * jax.lax.rsqrt(var + EPS) * gamma + beta


def _mha_heads(q, k, v, bias, head_masks):
    """Multi-head attention core on batch-flattened operands.

    q:(Nq,D) (scale already folded into Wq), k/v:(Nk,D), bias:(Nq,Nk) additive 0/-1e6
    (encodes same-batch + causal / valid-len restrictions).  Per head: mask K and V
    with a (1, D) lane mask (whole-vreg multiply) and accumulate the head output into
    the (Nq, D) result -- the sum over heads equals the reference concat, with no lane
    slicing / concatenate / relayouts.  Masked scores exp() to exactly 0.
    """
    o = jnp.zeros((q.shape[0], D), jnp.float32)
    for mh in head_masks:                                   # static unroll over H heads
        s = jax.lax.dot_general(q, k * mh, (((1,), (1,)), ((), ())),
                                preferred_element_type=jnp.float32) + bias
        m = jnp.max(s, axis=-1, keepdims=True)
        e = jnp.exp(s - m)
        p = e / jnp.sum(e, axis=-1, keepdims=True)          # exact (review concern #1)
        o = o + jnp.dot(p, v * mh, preferred_element_type=jnp.float32)
    return o


def _self_attn(x, wqkv, wo, bias, head_masks):
    qkv = jnp.dot(x, wqkv, preferred_element_type=jnp.float32)   # fused Q|K|V matmul
    q, k, v = qkv[:, 0:D], qkv[:, D:2 * D], qkv[:, 2 * D:3 * D]
    return jnp.dot(_mha_heads(q, k, v, bias, head_masks), wo,
                   preferred_element_type=jnp.float32)


def _ffn(x, w1, bf1, w2, bf2):
    h = jnp.maximum(jnp.dot(x, w1, preferred_element_type=jnp.float32) + bf1, 0.0)
    return jnp.dot(h, w2, preferred_element_type=jnp.float32) + bf2


# ---------------------------------- kernel ---------------------------------- #
def encdec_kernel(elen_ref,                          # (B,) int32, SMEM scalar prefetch
                  encx_ref, decx_ref,                # (Ne, D), (N, D) embedded+pos-enc
                  wqkv_ref, wkv2_ref,                # fused attention projections
                  w32_ref, w64_ref, wvoc_ref,        # packed 32/64/vocab-lane slabs
                  enc_out_ref, dec_kv_ref, logits_ref):
    B = elen_ref.shape[0]
    N = decx_ref.shape[0]
    Ne = encx_ref.shape[0]
    T, Te = N // B, Ne // B
    n_layers = dec_kv_ref.shape[0]

    # ---- per-head lane masks, built once and shared by every attention ----
    lane = jax.lax.broadcasted_iota(jnp.int32, (1, D), 1)
    head_masks = [((lane >= h * HD) & (lane < (h + 1) * HD)).astype(jnp.float32)
                  for h in range(H)]

    # ---- additive attention biases, built once (no integer div/mod) ----
    neg = jnp.float32(NEG)
    # query-side batch / time ids: free leading-dim reshapes of 3-D iotas
    dq_b = jax.lax.broadcasted_iota(jnp.int32, (B, T, N), 0).reshape(N, N)
    dq_t = jax.lax.broadcasted_iota(jnp.int32, (B, T, N), 1).reshape(N, N)
    # key-side ids as (1, Nk) rows; batch id via B-1 row-sized selects
    dcol = jax.lax.broadcasted_iota(jnp.int32, (1, N), 1)
    dcol_b = jnp.zeros((1, N), jnp.int32)
    for b in range(1, B):
        dcol_b = jnp.where(dcol >= b * T, b, dcol_b)
    dcol_t = dcol - dcol_b * T
    self_bias = jnp.where((dq_b == dcol_b) & (dcol_t <= dq_t), 0.0, neg)       # (N, N)

    ecol = jax.lax.broadcasted_iota(jnp.int32, (1, Ne), 1)
    ecol_b = jnp.zeros((1, Ne), jnp.int32)
    for b in range(1, B):
        ecol_b = jnp.where(ecol >= b * Te, b, ecol_b)
    ecol_t = ecol - ecol_b * Te
    ecol_valid = jnp.zeros((1, Ne), jnp.int32)
    for b in range(B):                              # scalar SMEM reads, row-sized selects
        ecol_valid = jnp.where(ecol_b == b, elen_ref[b], ecol_valid)
    key_ok = ecol_t < ecol_valid                    # (1, Ne) encoder-key validity row
    # NOTE: enc_valid_lens[b] == 0 would diverge from the reference (which softmaxes
    # uniformly over the masked keys); valid lens >= 1 here, as in typical usage.

    eq_b = jax.lax.broadcasted_iota(jnp.int32, (B, Te, Ne), 0).reshape(Ne, Ne)
    enc_bias = jnp.where((eq_b == ecol_b) & key_ok, 0.0, neg)                  # (Ne, Ne)
    cq_b = jax.lax.broadcasted_iota(jnp.int32, (B, T, Ne), 0).reshape(N, Ne)
    cross_bias = jnp.where((cq_b == ecol_b) & key_ok, 0.0, neg)                # (N, Ne)

    # ------------------------------ encoder stack ------------------------------ #
    e = encx_ref[...]
    for i in range(n_layers):
        wqkv = wqkv_ref[i * D:(i + 1) * D, :]
        o32 = i * ENC32
        wo = w32_ref[o32:o32 + D, :]
        w2 = w32_ref[o32 + D:o32 + D + FFN_H, :]
        vec = w32_ref[o32 + D + FFN_H:o32 + D + FFN_H + 8, :]   # aligned 8-row block
        g1, b1 = vec[0:1, :], vec[1:2, :]
        g2, b2 = vec[2:3, :], vec[3:4, :]
        bf2 = vec[4:5, :]
        o64 = i * W64_STRIDE
        w1 = w64_ref[o64:o64 + D, :]
        bf1 = w64_ref[o64 + D:o64 + D + 1, :]

        y = _addnorm(e, _self_attn(e, wqkv, wo, enc_bias, head_masks), g1, b1)
        e = _addnorm(y, _ffn(y, w1, bf1, w2, bf2), g2, b2)
    enc_out_ref[...] = e

    # ------------------------------ decoder stack ------------------------------ #
    x = decx_ref[...]
    for i in range(n_layers):
        dec_kv_ref[i] = x                     # state[2][i] = key_values (first call)
        wqkv1 = wqkv_ref[(n_layers + i) * D:(n_layers + i + 1) * D, :]
        wkv2 = wkv2_ref[i * D:(i + 1) * D, :]
        o32 = n_layers * ENC32 + i * DEC32
        wo1 = w32_ref[o32:o32 + D, :]
        wq2 = w32_ref[o32 + D:o32 + 2 * D, :]
        wo2 = w32_ref[o32 + 2 * D:o32 + 3 * D, :]
        w2 = w32_ref[o32 + 3 * D:o32 + 3 * D + FFN_H, :]
        vec = w32_ref[o32 + 3 * D + FFN_H:o32 + 3 * D + FFN_H + 8, :]
        g1, b1 = vec[0:1, :], vec[1:2, :]
        g2, b2 = vec[2:3, :], vec[3:4, :]
        g3, b3 = vec[4:5, :], vec[5:6, :]
        bf2 = vec[6:7, :]
        o64 = (n_layers + i) * W64_STRIDE
        w1 = w64_ref[o64:o64 + D, :]
        bf1 = w64_ref[o64 + D:o64 + D + 1, :]

        # masked self-attention (causal + same-batch), fused QKV
        y = _addnorm(x, _self_attn(x, wqkv1, wo1, self_bias, head_masks), g1, b1)
        # cross attention on the encoder memory: fused K|V projection, scaled Q
        kv = jnp.dot(e, wkv2, preferred_element_type=jnp.float32)
        q2 = jnp.dot(y, wq2, preferred_element_type=jnp.float32)
        att = _mha_heads(q2, kv[:, 0:D], kv[:, D:2 * D], cross_bias, head_masks)
        z = _addnorm(y, jnp.dot(att, wo2, preferred_element_type=jnp.float32), g2, b2)
        # position-wise FFN
        x = _addnorm(z, _ffn(z, w1, bf1, w2, bf2), g3, b3)

    # ------------- final dense to vocab (lane-dense output, V = 128) ------------- #
    wv = wvoc_ref[0:D, :]
    bv = wvoc_ref[D:D + 1, :]
    logits_ref[...] = jnp.dot(x, wv, preferred_element_type=jnp.float32) + bv


# --------------------------------- packing ---------------------------------- #
def pack_params(params):
    """One-time packing of all model weights into 5 kernel slabs."""
    scale = 1.0 / math.sqrt(HD)                       # folded into Wq at pack time
    z32_1 = jnp.zeros((1, D), jnp.float32)
    z32_3 = jnp.zeros((3, D), jnp.float32)
    z64_7 = jnp.zeros((7, FFN_H), jnp.float32)

    qkv, kv2, r32, r64 = [], [], [], []
    for lp in params["enc"]:
        qkv.append(jnp.concatenate([lp["wq"] * scale, lp["wk"], lp["wv"]], axis=1))
        r32 += [lp["wo"], lp["w2"], lp["g1"], lp["b1"], lp["g2"], lp["b2"], lp["bf2"], z32_3]
        r64 += [lp["w1"], lp["bf1"], z64_7]
    for lp in params["dec"]:
        qkv.append(jnp.concatenate([lp["wq1"] * scale, lp["wk1"], lp["wv1"]], axis=1))
        kv2.append(jnp.concatenate([lp["wk2"], lp["wv2"]], axis=1))
        r32 += [lp["wo1"], lp["wq2"] * scale, lp["wo2"], lp["w2"],
                lp["g1"], lp["b1"], lp["g2"], lp["b2"], lp["g3"], lp["b3"], lp["bf2"], z32_1]
        r64 += [lp["w1"], lp["bf1"], z64_7]

    wqkv = jnp.concatenate(qkv, axis=0)               # (2L*D, 3D)
    wkv2 = jnp.concatenate(kv2, axis=0)               # (L*D, 2D)
    w32 = jnp.concatenate(r32, axis=0)                # (L*(ENC32+DEC32), D)
    w64 = jnp.concatenate(r64, axis=0)                # (2L*W64_STRIDE, FFN_H)
    wvoc = jnp.concatenate(
        [params["dense_w"], params["dense_b"],
         jnp.zeros((7, params["dense_w"].shape[1]), jnp.float32)], axis=0)      # (40, V)
    return wqkv, wkv2, w32, w64, wvoc


def positional_encoding(max_len, d):
    pos = jnp.arange(max_len, dtype=jnp.float32)[:, None]
    div = jnp.power(10000.0, jnp.arange(0, d, 2, dtype=jnp.float32) / d)
    ang = pos / div
    P = jnp.zeros((max_len, d), jnp.float32)
    P = P.at[:, 0::2].set(jnp.sin(ang))
    P = P.at[:, 1::2].set(jnp.cos(ang))
    return P


# --------------------------------- wrapper ----------------------------------- #
def encoder_decoder_forward(enc_tokens, dec_tokens, enc_valid_lens, params, slabs):
    """Mirrors EncoderDecoder.forward for a single (first) decoder call."""
    B, Te = enc_tokens.shape
    _, T = dec_tokens.shape
    N, Ne = B * T, B * Te
    V = params["dense_w"].shape[1]
    wqkv, wkv2, w32, w64, wvoc = slabs

    # TODO(synk): embedding gather + sinusoidal table and the incremental-decode
    # cached-KV concat path stay in plain JAX glue outside the kernel.
    P = positional_encoding(max(T, Te), D)
    encx = (params["src_emb"][enc_tokens] * math.sqrt(D) + P[None, :Te, :]).reshape(Ne, D)
    decx = (params["tgt_emb"][dec_tokens] * math.sqrt(D) + P[None, :T, :]).reshape(N, D)

    def full2(shape):
        return pl.BlockSpec(shape, lambda i, vl: (0, 0))

    grid_spec = pltpu.PrefetchScalarGridSpec(
        num_scalar_prefetch=1,
        grid=(1,),                                   # whole model in one fused step
        in_specs=[full2((Ne, D)), full2((N, D)),
                  full2(wqkv.shape), full2(wkv2.shape),
                  full2(w32.shape), full2(w64.shape), full2(wvoc.shape)],
        out_specs=[full2((Ne, D)),
                   pl.BlockSpec((L, N, D), lambda i, vl: (0, 0, 0)),
                   full2((N, V))],
    )

    enc_out, dec_kv, logits = pl.pallas_call(
        encdec_kernel,
        out_shape=(jax.ShapeDtypeStruct((Ne, D), jnp.float32),
                   jax.ShapeDtypeStruct((L, N, D), jnp.float32),
                   jax.ShapeDtypeStruct((N, V), jnp.float32)),
        grid_spec=grid_spec,
        compiler_params=pltpu.CompilerParams(dimension_semantics=("arbitrary",)),
    )(enc_valid_lens.astype(jnp.int32), encx, decx, wqkv, wkv2, w32, w64, wvoc)

    enc_outputs = enc_out.reshape(B, Te, D)
    state = [enc_outputs, enc_valid_lens,
             [dec_kv[i].reshape(B, T, D) for i in range(L)]]
    return logits.reshape(B, T, V), state


# ----------------------------- pure-JAX reference ---------------------------- #
def ref_encoder_decoder(enc_tokens, dec_tokens, enc_valid_lens, params):
    B, Te = enc_tokens.shape
    _, T = dec_tokens.shape
    P = positional_encoding(max(T, Te), D)
    enc_x = params["src_emb"][enc_tokens] * math.sqrt(D) + P[None, :Te, :]
    dec_x = params["tgt_emb"][dec_tokens] * math.sqrt(D) + P[None, :T, :]

    def addnorm(x, y, g, b):
        z = x + y
        mu = z.mean(-1, keepdims=True)
        var = ((z - mu) ** 2).mean(-1, keepdims=True)
        return (z - mu) / jnp.sqrt(var + EPS) * g + b

    def mha(xq, xkv, wq, wk, wv, wo, mask):
        q, k, v = xq @ wq, xkv @ wk, xkv @ wv

        def split(a):
            return a.reshape(a.shape[0], a.shape[1], H, HD).transpose(0, 2, 1, 3)

        q, k, v = split(q), split(k), split(v)
        s = jnp.einsum('bhqd,bhkd->bhqk', q, k) / math.sqrt(HD)
        s = jnp.where(mask[:, None, :, :], s, NEG)
        p = jax.nn.softmax(s, axis=-1)
        o = jnp.einsum('bhqk,bhkd->bhqd', p, v)
        o = o.transpose(0, 2, 1, 3).reshape(xq.shape[0], -1, D)
        return o @ wo

    def ffn(x, w1, bf1, w2, bf2):
        return jnp.maximum(x @ w1 + bf1, 0.0) @ w2 + bf2

    enc_mask = jnp.broadcast_to(
        jnp.arange(Te)[None, None, :] < enc_valid_lens[:, None, None], (B, Te, Te))
    e = enc_x
    for lp in params["enc"]:
        y = addnorm(e, mha(e, e, lp["wq"], lp["wk"], lp["wv"], lp["wo"], enc_mask),
                    lp["g1"], lp["b1"])
        e = addnorm(y, ffn(y, lp["w1"], lp["bf1"], lp["w2"], lp["bf2"]),
                    lp["g2"], lp["b2"])

    causal = jnp.broadcast_to(
        jnp.arange(T)[None, :] <= jnp.arange(T)[:, None], (B, T, T))
    cross = jnp.broadcast_to(
        jnp.arange(Te)[None, None, :] < enc_valid_lens[:, None, None], (B, T, Te))
    x = dec_x
    for lp in params["dec"]:
        y = addnorm(x, mha(x, x, lp["wq1"], lp["wk1"], lp["wv1"], lp["wo1"], causal),
                    lp["g1"], lp["b1"])
        z = addnorm(y, mha(y, e, lp["wq2"], lp["wk2"], lp["wv2"], lp["wo2"], cross),
                    lp["g2"], lp["b2"])
        x = addnorm(z, ffn(z, lp["w1"], lp["bf1"], lp["w2"], lp["bf2"]),
                    lp["g3"], lp["b3"])

    return x @ params["dense_w"] + params["dense_b"], e


# ----------------------------------- main ------------------------------------ #
def init_params(key):
    keys = iter(jax.random.split(key, 128))

    def w(shape, s=0.1):
        return (s * jax.random.normal(next(keys), shape)).astype(jnp.float32)

    def gm():
        return (1.0 + w((1, D), 0.05)).astype(jnp.float32)

    def bt():
        return w((1, D), 0.05)

    enc = [dict(wq=w((D, D)), wk=w((D, D)), wv=w((D, D)), wo=w((D, D)),
                g1=gm(), b1=bt(),
                w1=w((D, FFN_H)), bf1=w((1, FFN_H), 0.05),
                w2=w((FFN_H, D)), bf2=w((1, D), 0.05),
                g2=gm(), b2=bt()) for _ in range(L)]
    dec = [dict(wq1=w((D, D)), wk1=w((D, D)), wv1=w((D, D)), wo1=w((D, D)),
                g1=gm(), b1=bt(),
                wq2=w((D, D)), wk2=w((D, D)), wv2=w((D, D)), wo2=w((D, D)),
                g2=gm(), b2=bt(),
                w1=w((D, FFN_H)), bf1=w((1, FFN_H), 0.05),
                w2=w((FFN_H, D)), bf2=w((1, D), 0.05),
                g3=gm(), b3=bt()) for _ in range(L)]
    return dict(enc=enc, dec=dec,
                dense_w=w((D, V_TGT)), dense_b=w((1, V_TGT), 0.05),
                src_emb=w((V_SRC, D), 0.3), tgt_emb=w((V_TGT, D), 0.3))


if __name__ == "__main__":
    key = jax.random.PRNGKey(0)
    kp, kt1, kt2 = jax.random.split(key, 3)

    params = init_params(kp)
    slabs = pack_params(params)                       # one-time parameter packing

    B, T, Te = 2, 8, 8
    enc_tokens = jax.random.randint(kt1, (B, Te), 0, V_SRC)
    dec_tokens = jax.random.randint(kt2, (B, T), 0, V_TGT)
    enc_valid_lens = jnp.array([5, 8], dtype=jnp.int32)

    logits, state = encoder_decoder_forward(enc_tokens, dec_tokens, enc_valid_lens,
                                            params, slabs)
    logits = jax.block_until_ready(logits)

    ref_logits, ref_enc = ref_encoder_decoder(enc_tokens, dec_tokens, enc_valid_lens,
                                              params)
    np.testing.assert_allclose(np.asarray(state[0]), np.asarray(ref_enc),
                               atol=1e-3, rtol=1e-3)
    np.testing.assert_allclose(np.asarray(logits), np.asarray(ref_logits),
                               atol=1e-3, rtol=1e-3)

    print("KERNEL_OK")
</pallas_src>

<mosaic_0001>
module attributes {stable_mosaic.version = 11 : i64} {
  func.func @encdec_kernel(%arg0: i32, %arg1: memref<2xi32, #tpu.memory_space<smem>>, %arg2: memref<16x32xf32, #tpu.memory_space<vmem>>, %arg3: memref<16x32xf32, #tpu.memory_space<vmem>>, %arg4: memref<128x96xf32, #tpu.memory_space<vmem>>, %arg5: memref<64x64xf32, #tpu.memory_space<vmem>>, %arg6: memref<544x32xf32, #tpu.memory_space<vmem>>, %arg7: memref<160x64xf32, #tpu.memory_space<vmem>>, %arg8: memref<40x128xf32, #tpu.memory_space<vmem>>, %arg9: memref<16x32xf32, #tpu.memory_space<vmem>>, %arg10: memref<2x16x32xf32, #tpu.memory_space<vmem>>, %arg11: memref<16x128xf32, #tpu.memory_space<vmem>>) attributes {dimension_semantics = [#tpu.dimension_semantics<arbitrary>], iteration_bounds = array<i64: 1>, scalar_prefetch = 1 : i64, scratch_operands = 0 : i64, tpu.core_type = #tpu.core_type<tc>, window_params = [{pipeline_mode = #tpu.pipeline_mode<synchronous>, transform_indices = @transform_0, window_bounds = array<i64: 16, 32>}, {pipeline_mode = #tpu.pipeline_mode<synchronous>, transform_indices = @transform_1, window_bounds = array<i64: 16, 32>}, {pipeline_mode = #tpu.pipeline_mode<synchronous>, transform_indices = @transform_2, window_bounds = array<i64: 128, 96>}, {pipeline_mode = #tpu.pipeline_mode<synchronous>, transform_indices = @transform_3, window_bounds = array<i64: 64, 64>}, {pipeline_mode = #tpu.pipeline_mode<synchronous>, transform_indices = @transform_4, window_bounds = array<i64: 544, 32>}, {pipeline_mode = #tpu.pipeline_mode<synchronous>, transform_indices = @transform_5, window_bounds = array<i64: 160, 64>}, {pipeline_mode = #tpu.pipeline_mode<synchronous>, transform_indices = @transform_6, window_bounds = array<i64: 40, 128>}, {pipeline_mode = #tpu.pipeline_mode<synchronous>, transform_indices = @transform_7, window_bounds = array<i64: 16, 32>}, {pipeline_mode = #tpu.pipeline_mode<synchronous>, transform_indices = @transform_8, window_bounds = array<i64: 2, 16, 32>}, {pipeline_mode = #tpu.pipeline_mode<synchronous>, transform_indices = @transform_9, window_bounds = array<i64: 16, 128>}]} {
    %0 = tpu.iota {dimensions = array<i32: 1>} : vector<1x32xi32>
    %c0_i32 = arith.constant 0 : i32
    %1 = vector.broadcast %c0_i32 : i32 to vector<1x32xi32>
    %2 = arith.cmpi sge, %0, %1 : vector<1x32xi32>
    %c8_i32 = arith.constant 8 : i32
    %3 = vector.broadcast %c8_i32 : i32 to vector<1x32xi32>
    %4 = arith.cmpi slt, %0, %3 : vector<1x32xi32>
    %5 = arith.andi %2, %4 : vector<1x32xi1>
    %6 = arith.extui %5 : vector<1x32xi1> to vector<1x32xi32>
    %7 = arith.sitofp %6 : vector<1x32xi32> to vector<1x32xf32>
    %c8_i32_0 = arith.constant 8 : i32
    %8 = vector.broadcast %c8_i32_0 : i32 to vector<1x32xi32>
    %9 = arith.cmpi sge, %0, %8 : vector<1x32xi32>
    %c16_i32 = arith.constant 16 : i32
    %10 = vector.broadcast %c16_i32 : i32 to vector<1x32xi32>
    %11 = arith.cmpi slt, %0, %10 : vector<1x32xi32>
    %12 = arith.andi %9, %11 : vector<1x32xi1>
    %13 = arith.extui %12 : vector<1x32xi1> to vector<1x32xi32>
    %14 = arith.sitofp %13 : vector<1x32xi32> to vector<1x32xf32>
    %c16_i32_1 = arith.constant 16 : i32
    %15 = vector.broadcast %c16_i32_1 : i32 to vector<1x32xi32>
    %16 = arith.cmpi sge, %0, %15 : vector<1x32xi32>
    %c24_i32 = arith.constant 24 : i32
    %17 = vector.broadcast %c24_i32 : i32 to vector<1x32xi32>
    %18 = arith.cmpi slt, %0, %17 : vector<1x32xi32>
    %19 = arith.andi %16, %18 : vector<1x32xi1>
    %20 = arith.extui %19 : vector<1x32xi1> to vector<1x32xi32>
    %21 = arith.sitofp %20 : vector<1x32xi32> to vector<1x32xf32>
    %c24_i32_2 = arith.constant 24 : i32
    %22 = vector.broadcast %c24_i32_2 : i32 to vector<1x32xi32>
    %23 = arith.cmpi sge, %0, %22 : vector<1x32xi32>
    %c32_i32 = arith.constant 32 : i32
    %24 = vector.broadcast %c32_i32 : i32 to vector<1x32xi32>
    %25 = arith.cmpi slt, %0, %24 : vector<1x32xi32>
    %26 = arith.andi %23, %25 : vector<1x32xi1>
    %27 = arith.extui %26 : vector<1x32xi1> to vector<1x32xi32>
    %28 = arith.sitofp %27 : vector<1x32xi32> to vector<1x32xf32>
    %29 = tpu.iota {dimensions = array<i32: 0>} : vector<2x8x16xi32>
    %30 = vector.shape_cast %29 : vector<2x8x16xi32> to vector<16x16xi32>
    %31 = tpu.iota {dimensions = array<i32: 1>} : vector<2x8x16xi32>
    %32 = vector.shape_cast %31 : vector<2x8x16xi32> to vector<16x16xi32>
    %33 = tpu.iota {dimensions = array<i32: 1>} : vector<1x16xi32>
    %c0_i32_3 = arith.constant 0 : i32
    %34 = vector.broadcast %c0_i32_3 : i32 to vector<1x16xi32>
    %c8_i32_4 = arith.constant 8 : i32
    %35 = vector.broadcast %c8_i32_4 : i32 to vector<1x16xi32>
    %36 = arith.cmpi sge, %33, %35 : vector<1x16xi32>
    %c1_i32 = arith.constant 1 : i32
    %37 = vector.broadcast %c1_i32 : i32 to vector<1x16xi32>
    %38 = arith.select %36, %37, %34 : vector<1x16xi1>, vector<1x16xi32>
    %c8_i32_5 = arith.constant 8 : i32
    %39 = vector.broadcast %c8_i32_5 : i32 to vector<1x16xi32>
    %40 = arith.muli %38, %39 : vector<1x16xi32>
    %41 = arith.subi %33, %40 : vector<1x16xi32>
    %42 = vector.broadcast %38 : vector<1x16xi32> to vector<16x16xi32>
    %43 = arith.cmpi eq, %30, %42 : vector<16x16xi32>
    %44 = vector.broadcast %41 : vector<1x16xi32> to vector<16x16xi32>
    %45 = arith.cmpi sle, %44, %32 : vector<16x16xi32>
    %46 = arith.andi %43, %45 : vector<16x16xi1>
    %cst = arith.constant 0.000000e+00 : f32
    %cst_6 = arith.constant -1.000000e+06 : f32
    %47 = vector.broadcast %cst : f32 to vector<16x16xf32>
    %48 = vector.broadcast %cst_6 : f32 to vector<16x16xf32>
    %49 = arith.select %46, %47, %48 : vector<16x16xi1>, vector<16x16xf32>
    %50 = tpu.iota {dimensions = array<i32: 1>} : vector<1x16xi32>
    %c0_i32_7 = arith.constant 0 : i32
    %51 = vector.broadcast %c0_i32_7 : i32 to vector<1x16xi32>
    %c8_i32_8 = arith.constant 8 : i32
    %52 = vector.broadcast %c8_i32_8 : i32 to vector<1x16xi32>
    %53 = arith.cmpi sge, %50, %52 : vector<1x16xi32>
    %c1_i32_9 = arith.constant 1 : i32
    %54 = vector.broadcast %c1_i32_9 : i32 to vector<1x16xi32>
    %55 = arith.select %53, %54, %51 : vector<1x16xi1>, vector<1x16xi32>
    %c8_i32_10 = arith.constant 8 : i32
    %56 = vector.broadcast %c8_i32_10 : i32 to vector<1x16xi32>
    %57 = arith.muli %55, %56 : vector<1x16xi32>
    %58 = arith.subi %50, %57 : vector<1x16xi32>
    %c0_i32_11 = arith.constant 0 : i32
    %59 = vector.broadcast %c0_i32_11 : i32 to vector<1x16xi32>
    %c0_i32_12 = arith.constant 0 : i32
    %60 = vector.broadcast %c0_i32_12 : i32 to vector<1x16xi32>
    %61 = arith.cmpi eq, %55, %60 : vector<1x16xi32>
    %c0 = arith.constant 0 : index
    %62 = memref.load %arg1[%c0] : memref<2xi32, #tpu.memory_space<smem>>
    %63 = vector.broadcast %62 : i32 to vector<1x16xi32>
    %64 = arith.select %61, %63, %59 : vector<1x16xi1>, vector<1x16xi32>
    %c1_i32_13 = arith.constant 1 : i32
    %65 = vector.broadcast %c1_i32_13 : i32 to vector<1x16xi32>
    %66 = arith.cmpi eq, %55, %65 : vector<1x16xi32>
    %c1 = arith.constant 1 : index
    %67 = memref.load %arg1[%c1] : memref<2xi32, #tpu.memory_space<smem>>
    %68 = vector.broadcast %67 : i32 to vector<1x16xi32>
    %69 = arith.select %66, %68, %64 : vector<1x16xi1>, vector<1x16xi32>
    %70 = arith.cmpi slt, %58, %69 : vector<1x16xi32>
    %71 = tpu.iota {dimensions = array<i32: 0>} : vector<2x8x16xi32>
    %72 = vector.shape_cast %71 : vector<2x8x16xi32> to vector<16x16xi32>
    %73 = vector.broadcast %55 : vector<1x16xi32> to vector<16x16xi32>
    %74 = arith.cmpi eq, %72, %73 : vector<16x16xi32>
    %75 = vector.broadcast %70 : vector<1x16xi1> to vector<16x16xi1>
    %76 = arith.andi %74, %75 : vector<16x16xi1>
    %cst_14 = arith.constant 0.000000e+00 : f32
    %cst_15 = arith.constant -1.000000e+06 : f32
    %77 = vector.broadcast %cst_14 : f32 to vector<16x16xf32>
    %78 = vector.broadcast %cst_15 : f32 to vector<16x16xf32>
    %79 = arith.select %76, %77, %78 : vector<16x16xi1>, vector<16x16xf32>
    %80 = tpu.iota {dimensions = array<i32: 0>} : vector<2x8x16xi32>
    %81 = vector.shape_cast %80 : vector<2x8x16xi32> to vector<16x16xi32>
    %82 = vector.broadcast %55 : vector<1x16xi32> to vector<16x16xi32>
    %83 = arith.cmpi eq, %81, %82 : vector<16x16xi32>
    %84 = vector.broadcast %70 : vector<1x16xi1> to vector<16x16xi1>
    %85 = arith.andi %83, %84 : vector<16x16xi1>
    %cst_16 = arith.constant 0.000000e+00 : f32
    %cst_17 = arith.constant -1.000000e+06 : f32
    %86 = vector.broadcast %cst_16 : f32 to vector<16x16xf32>
    %87 = vector.broadcast %cst_17 : f32 to vector<16x16xf32>
    %88 = arith.select %85, %86, %87 : vector<16x16xi1>, vector<16x16xf32>
    %c0_18 = arith.constant 0 : index
    %c0_19 = arith.constant 0 : index
    %89 = vector.load %arg2[%c0_18, %c0_19] : memref<16x32xf32, #tpu.memory_space<vmem>>, vector<16x32xf32>
    %c0_20 = arith.constant 0 : index
    %c0_21 = arith.constant 0 : index
    %90 = vector.load %arg4[%c0_20, %c0_21] : memref<128x96xf32, #tpu.memory_space<vmem>>, vector<32x96xf32>
    %c0_22 = arith.constant 0 : index
    %c0_23 = arith.constant 0 : index
    %91 = vector.load %arg6[%c0_22, %c0_23] : memref<544x32xf32, #tpu.memory_space<vmem>>, vector<32x32xf32>
    %c32 = arith.constant 32 : index
    %c0_24 = arith.constant 0 : index
    %92 = vector.load %arg6[%c32, %c0_24] : memref<544x32xf32, #tpu.memory_space<vmem>>, vector<64x32xf32>
    %c96 = arith.constant 96 : index
    %c0_25 = arith.constant 0 : index
    %93 = vector.load %arg6[%c96, %c0_25] : memref<544x32xf32, #tpu.memory_space<vmem>>, vector<8x32xf32>
    %94 = vector.extract_strided_slice %93 {offsets = [0, 0], sizes = [1, 32], strides = [1, 1]} : vector<8x32xf32> to vector<1x32xf32>
    %95 = vector.extract_strided_slice %93 {offsets = [1, 0], sizes = [1, 32], strides = [1, 1]} : vector<8x32xf32> to vector<1x32xf32>
    %96 = vector.extract_strided_slice %93 {offsets = [2, 0], sizes = [1, 32], strides = [1, 1]} : vector<8x32xf32> to vector<1x32xf32>
    %97 = vector.extract_strided_slice %93 {offsets = [3, 0], sizes = [1, 32], strides = [1, 1]} : vector<8x32xf32> to vector<1x32xf32>
    %98 = vector.extract_strided_slice %93 {offsets = [4, 0], sizes = [1, 32], strides = [1, 1]} : vector<8x32xf32> to vector<1x32xf32>
    %c0_26 = arith.constant 0 : index
    %c0_27 = arith.constant 0 : index
    %99 = vector.load %arg7[%c0_26, %c0_27] : memref<160x64xf32, #tpu.memory_space<vmem>>, vector<32x64xf32>
    %c32_28 = arith.constant 32 : index
    %c0_29 = arith.constant 0 : index
    %100 = vector.load %arg7[%c32_28, %c0_29] : memref<160x64xf32, #tpu.memory_space<vmem>>, vector<1x64xf32>
    %cst_30 = arith.constant dense<0.000000e+00> : vector<16x96xf32>
    %101 = tpu.matmul %89, %90, %cst_30 {dimension_numbers = #tpu.dot_dimension_numbers<[1], [0], [0], [1], [0, 0, 1, 1], [], []>} : vector<16x32xf32>, vector<32x96xf32>, vector<16x96xf32> -> vector<16x96xf32>
    %102 = vector.extract_strided_slice %101 {offsets = [0, 0], sizes = [16, 32], strides = [1, 1]} : vector<16x96xf32> to vector<16x32xf32>
    %103 = vector.extract_strided_slice %101 {offsets = [0, 32], sizes = [16, 32], strides = [1, 1]} : vector<16x96xf32> to vector<16x32xf32>
    %104 = vector.extract_strided_slice %101 {offsets = [0, 64], sizes = [16, 32], strides = [1, 1]} : vector<16x96xf32> to vector<16x32xf32>
    %cst_31 = arith.constant 0.000000e+00 : f32
    %105 = vector.broadcast %cst_31 : f32 to vector<16x32xf32>
    %106 = vector.broadcast %7 : vector<1x32xf32> to vector<16x32xf32>
    %107 = arith.mulf %103, %106 : vector<16x32xf32>
    %cst_32 = arith.constant dense<0.000000e+00> : vector<16x16xf32>
    %108 = tpu.matmul %102, %107, %cst_32 {dimension_numbers = #tpu.dot_dimension_numbers<[1], [1], [0], [0], [0, 0, 1, 0], [], []>} : vector<16x32xf32>, vector<16x32xf32>, vector<16x16xf32> -> vector<16x16xf32>
    %109 = arith.addf %108, %79 : vector<16x16xf32>
    %cst_33 = arith.constant dense<0xFF800000> : vector<16xf32>
    %110 = vector.multi_reduction <maximumf>, %109, %cst_33 [1] : vector<16x16xf32> to vector<16xf32>
    %111 = vector.shape_cast %110 : vector<16xf32> to vector<16x1xf32>
    %112 = vector.broadcast %111 : vector<16x1xf32> to vector<16x16xf32>
    %113 = arith.subf %109, %112 : vector<16x16xf32>
    %114 = math.exp %113 : vector<16x16xf32>
    %cst_34 = arith.constant dense<0.000000e+00> : vector<16xf32>
    %115 = vector.multi_reduction <add>, %114, %cst_34 [1] : vector<16x16xf32> to vector<16xf32>
    %116 = vector.shape_cast %115 : vector<16xf32> to vector<16x1xf32>
    %117 = vector.broadcast %116 : vector<16x1xf32> to vector<16x16xf32>
    %118 = arith.divf %114, %117 : vector<16x16xf32>
    %119 = vector.broadcast %7 : vector<1x32xf32> to vector<16x32xf32>
    %120 = arith.mulf %104, %119 : vector<16x32xf32>
    %cst_35 = arith.constant dense<0.000000e+00> : vector<16x32xf32>
    %121 = tpu.matmul %118, %120, %cst_35 {dimension_numbers = #tpu.dot_dimension_numbers<[1], [0], [0], [1], [0, 0, 1, 1], [], []>} : vector<16x16xf32>, vector<16x32xf32>, vector<16x32xf32> -> vector<16x32xf32>
    %122 = arith.addf %105, %121 : vector<16x32xf32>
    %123 = vector.broadcast %14 : vector<1x32xf32> to vector<16x32xf32>
    %124 = arith.mulf %103, %123 : vector<16x32xf32>
    %cst_36 = arith.constant dense<0.000000e+00> : vector<16x16xf32>
    %125 = tpu.matmul %102, %124, %cst_36 {dimension_numbers = #tpu.dot_dimension_numbers<[1], [1], [0], [0], [0, 0, 1, 0], [], []>} : vector<16x32xf32>, vector<16x32xf32>, vector<16x16xf32> -> vector<16x16xf32>
    %126 = arith.addf %125, %79 : vector<16x16xf32>
    %cst_37 = arith.constant dense<0xFF800000> : vector<16xf32>
    %127 = vector.multi_reduction <maximumf>, %126, %cst_37 [1] : vector<16x16xf32> to vector<16xf32>
    %128 = vector.shape_cast %127 : vector<16xf32> to vector<16x1xf32>
    %129 = vector.broadcast %128 : vector<16x1xf32> to vector<16x16xf32>
    %130 = arith.subf %126, %129 : vector<16x16xf32>
    %131 = math.exp %130 : vector<16x16xf32>
    %cst_38 = arith.constant dense<0.000000e+00> : vector<16xf32>
    %132 = vector.multi_reduction <add>, %131, %cst_38 [1] : vector<16x16xf32> to vector<16xf32>
    %133 = vector.shape_cast %132 : vector<16xf32> to vector<16x1xf32>
    %134 = vector.broadcast %133 : vector<16x1xf32> to vector<16x16xf32>
    %135 = arith.divf %131, %134 : vector<16x16xf32>
    %136 = vector.broadcast %14 : vector<1x32xf32> to vector<16x32xf32>
    %137 = arith.mulf %104, %136 : vector<16x32xf32>
    %cst_39 = arith.constant dense<0.000000e+00> : vector<16x32xf32>
    %138 = tpu.matmul %135, %137, %cst_39 {dimension_numbers = #tpu.dot_dimension_numbers<[1], [0], [0], [1], [0, 0, 1, 1], [], []>} : vector<16x16xf32>, vector<16x32xf32>, vector<16x32xf32> -> vector<16x32xf32>
    %139 = arith.addf %122, %138 : vector<16x32xf32>
    %140 = vector.broadcast %21 : vector<1x32xf32> to vector<16x32xf32>
    %141 = arith.mulf %103, %140 : vector<16x32xf32>
    %cst_40 = arith.constant dense<0.000000e+00> : vector<16x16xf32>
    %142 = tpu.matmul %102, %141, %cst_40 {dimension_numbers = #tpu.dot_dimension_numbers<[1], [1], [0], [0], [0, 0, 1, 0], [], []>} : vector<16x32xf32>, vector<16x32xf32>, vector<16x16xf32> -> vector<16x16xf32>
    %143 = arith.addf %142, %79 : vector<16x16xf32>
    %cst_41 = arith.constant dense<0xFF800000> : vector<16xf32>
    %144 = vector.multi_reduction <maximumf>, %143, %cst_41 [1] : vector<16x16xf32> to vector<16xf32>
    %145 = vector.shape_cast %144 : vector<16xf32> to vector<16x1xf32>
    %146 = vector.broadcast %145 : vector<16x1xf32> to vector<16x16xf32>
    %147 = arith.subf %143, %146 : vector<16x16xf32>
    %148 = math.exp %147 : vector<16x16xf32>
    %cst_42 = arith.constant dense<0.000000e+00> : vector<16xf32>
    %149 = vector.multi_reduction <add>, %148, %cst_42 [1] : vector<16x16xf32> to vector<16xf32>
    %150 = vector.shape_cast %149 : vector<16xf32> to vector<16x1xf32>
    %151 = vector.broadcast %150 : vector<16x1xf32> to vector<16x16xf32>
    %152 = arith.divf %148, %151 : vector<16x16xf32>
    %153 = vector.broadcast %21 : vector<1x32xf32> to vector<16x32xf32>
    %154 = arith.mulf %104, %153 : vector<16x32xf32>
    %cst_43 = arith.constant dense<0.000000e+00> : vector<16x32xf32>
    %155 = tpu.matmul %152, %154, %cst_43 {dimension_numbers = #tpu.dot_dimension_numbers<[1], [0], [0], [1], [0, 0, 1, 1], [], []>} : vector<16x16xf32>, vector<16x32xf32>, vector<16x32xf32> -> vector<16x32xf32>
    %156 = arith.addf %139, %155 : vector<16x32xf32>
    %157 = vector.broadcast %28 : vector<1x32xf32> to vector<16x32xf32>
    %158 = arith.mulf %103, %157 : vector<16x32xf32>
    %cst_44 = arith.constant dense<0.000000e+00> : vector<16x16xf32>
    %159 = tpu.matmul %102, %158, %cst_44 {dimension_numbers = #tpu.dot_dimension_numbers<[1], [1], [0], [0], [0, 0, 1, 0], [], []>} : vector<16x32xf32>, vector<16x32xf32>, vector<16x16xf32> -> vector<16x16xf32>
    %160 = arith.addf %159, %79 : vector<16x16xf32>
    %cst_45 = arith.constant dense<0xFF800000> : vector<16xf32>
    %161 = vector.multi_reduction <maximumf>, %160, %cst_45 [1] : vector<16x16xf32> to vector<16xf32>
    %162 = vector.shape_cast %161 : vector<16xf32> to vector<16x1xf32>
    %163 = vector.broadcast %162 : vector<16x1xf32> to vector<16x16xf32>
    %164 = arith.subf %160, %163 : vector<16x16xf32>
    %165 = math.exp %164 : vector<16x16xf32>
    %cst_46 = arith.constant dense<0.000000e+00> : vector<16xf32>
    %166 = vector.multi_reduction <add>, %165, %cst_46 [1] : vector<16x16xf32> to vector<16xf32>
    %167 = vector.shape_cast %166 : vector<16xf32> to vector<16x1xf32>
    %168 = vector.broadcast %167 : vector<16x1xf32> to vector<16x16xf32>
    %169 = arith.divf %165, %168 : vector<16x16xf32>
    %170 = vector.broadcast %28 : vector<1x32xf32> to vector<16x32xf32>
    %171 = arith.mulf %104, %170 : vector<16x32xf32>
    %cst_47 = arith.constant dense<0.000000e+00> : vector<16x32xf32>
    %172 = tpu.matmul %169, %171, %cst_47 {dimension_numbers = #tpu.dot_dimension_numbers<[1], [0], [0], [1], [0, 0, 1, 1], [], []>} : vector<16x16xf32>, vector<16x32xf32>, vector<16x32xf32> -> vector<16x32xf32>
    %173 = arith.addf %156, %172 : vector<16x32xf32>
    %cst_48 = arith.constant dense<0.000000e+00> : vector<16x32xf32>
    %174 = tpu.matmul %173, %91, %cst_48 {dimension_numbers = #tpu.dot_dimension_numbers<[1], [0], [0], [1], [0, 0, 1, 1], [], []>} : vector<16x32xf32>, vector<32x32xf32>, vector<16x32xf32> -> vector<16x32xf32>
    %175 = arith.addf %89, %174 : vector<16x32xf32>
    %cst_49 = arith.constant dense<0.000000e+00> : vector<16xf32>
    %176 = vector.multi_reduction <add>, %175, %cst_49 [1] : vector<16x32xf32> to vector<16xf32>
    %177 = vector.shape_cast %176 : vector<16xf32> to vector<16x1xf32>
    %cst_50 = arith.constant 3.200000e+01 : f32
    %178 = vector.broadcast %cst_50 : f32 to vector<16x1xf32>
    %179 = arith.divf %177, %178 : vector<16x1xf32>
    %180 = vector.broadcast %179 : vector<16x1xf32> to vector<16x32xf32>
    %181 = arith.subf %175, %180 : vector<16x32xf32>
    %182 = arith.mulf %181, %181 : vector<16x32xf32>
    %cst_51 = arith.constant dense<0.000000e+00> : vector<16xf32>
    %183 = vector.multi_reduction <add>, %182, %cst_51 [1] : vector<16x32xf32> to vector<16xf32>
    %184 = vector.shape_cast %183 : vector<16xf32> to vector<16x1xf32>
    %cst_52 = arith.constant 3.200000e+01 : f32
    %185 = vector.broadcast %cst_52 : f32 to vector<16x1xf32>
    %186 = arith.divf %184, %185 : vector<16x1xf32>
    %187 = vector.broadcast %179 : vector<16x1xf32> to vector<16x32xf32>
    %188 = arith.subf %175, %187 : vector<16x32xf32>
    %cst_53 = arith.constant 9.99999974E-6 : f32
    %189 = vector.broadcast %cst_53 : f32 to vector<16x1xf32>
    %190 = arith.addf %186, %189 : vector<16x1xf32>
    %191 = math.rsqrt %190 : vector<16x1xf32>
    %192 = vector.broadcast %191 : vector<16x1xf32> to vector<16x32xf32>
    %193 = arith.mulf %188, %192 : vector<16x32xf32>
    %194 = vector.broadcast %94 : vector<1x32xf32> to vector<16x32xf32>
    %195 = arith.mulf %193, %194 : vector<16x32xf32>
    %196 = vector.broadcast %95 : vector<1x32xf32> to vector<16x32xf32>
    %197 = arith.addf %195, %196 : vector<16x32xf32>
    %cst_54 = arith.constant dense<0.000000e+00> : vector<16x64xf32>
    %198 = tpu.matmul %197, %99, %cst_54 {dimension_numbers = #tpu.dot_dimension_numbers<[1], [0], [0], [1], [0, 0, 1, 1], [], []>} : vector<16x32xf32>, vector<32x64xf32>, vector<16x64xf32> -> vector<16x64xf32>
    %199 = vector.broadcast %100 : vector<1x64xf32> to vector<16x64xf32>
    %200 = arith.addf %198, %199 : vector<16x64xf32>
    %cst_55 = arith.constant 0.000000e+00 : f32
    %201 = vector.broadcast %cst_55 : f32 to vector<16x64xf32>
    %202 = arith.maximumf %200, %201 : vector<16x64xf32>
    %cst_56 = arith.constant dense<0.000000e+00> : vector<16x32xf32>
    %203 = tpu.matmul %202, %92, %cst_56 {dimension_numbers = #tpu.dot_dimension_numbers<[1], [0], [0], [1], [0, 0, 1, 1], [], []>} : vector<16x64xf32>, vector<64x32xf32>, vector<16x32xf32> -> vector<16x32xf32>
    %204 = vector.broadcast %98 : vector<1x32xf32> to vector<16x32xf32>
    %205 = arith.addf %203, %204 : vector<16x32xf32>
    %206 = arith.addf %197, %205 : vector<16x32xf32>
    %cst_57 = arith.constant dense<0.000000e+00> : vector<16xf32>
    %207 = vector.multi_reduction <add>, %206, %cst_57 [1] : vector<16x32xf32> to vector<16xf32>
    %208 = vector.shape_cast %207 : vector<16xf32> to vector<16x1xf32>
    %cst_58 = arith.constant 3.200000e+01 : f32
    %209 = vector.broadcast %cst_58 : f32 to vector<16x1xf32>
    %210 = arith.divf %208, %209 : vector<16x1xf32>
    %211 = vector.broadcast %210 : vector<16x1xf32> to vector<16x32xf32>
    %212 = arith.subf %206, %211 : vector<16x32xf32>
    %213 = arith.mulf %212, %212 : vector<16x32xf32>
    %cst_59 = arith.constant dense<0.000000e+00> : vector<16xf32>
    %214 = vector.multi_reduction <add>, %213, %cst_59 [1] : vector<16x32xf32> to vector<16xf32>
    %215 = vector.shape_cast %214 : vector<16xf32> to vector<16x1xf32>
    %cst_60 = arith.constant 3.200000e+01 : f32
    %216 = vector.broadcast %cst_60 : f32 to vector<16x1xf32>
    %217 = arith.divf %215, %216 : vector<16x1xf32>
    %218 = vector.broadcast %210 : vector<16x1xf32> to vector<16x32xf32>
    %219 = arith.subf %206, %218 : vector<16x32xf32>
    %cst_61 = arith.constant 9.99999974E-6 : f32
    %220 = vector.broadcast %cst_61 : f32 to vector<16x1xf32>
    %221 = arith.addf %217, %220 : vector<16x1xf32>
    %222 = math.rsqrt %221 : vector<16x1xf32>
    %223 = vector.broadcast %222 : vector<16x1xf32> to vector<16x32xf32>
    %224 = arith.mulf %219, %223 : vector<16x32xf32>
    %225 = vector.broadcast %96 : vector<1x32xf32> to vector<16x32xf32>
    %226 = arith.mulf %224, %225 : vector<16x32xf32>
    %227 = vector.broadcast %97 : vector<1x32xf32> to vector<16x32xf32>
    %228 = arith.addf %226, %227 : vector<16x32xf32>
    %c32_62 = arith.constant 32 : index
    %c0_63 = arith.constant 0 : index
    %229 = vector.load %arg4[%c32_62, %c0_63] : memref<128x96xf32, #tpu.memory_space<vmem>>, vector<32x96xf32>
    %c104 = arith.constant 104 : index
    %c0_64 = arith.constant 0 : index
    %230 = vector.load %arg6[%c104, %c0_64] : memref<544x32xf32, #tpu.memory_space<vmem>>, vector<32x32xf32>
    %c136 = arith.constant 136 : index
    %c0_65 = arith.constant 0 : index
    %231 = vector.load %arg6[%c136, %c0_65] : memref<544x32xf32, #tpu.memory_space<vmem>>, vector<64x32xf32>
    %c200 = arith.constant 200 : index
    %c0_66 = arith.constant 0 : index
    %232 = vector.load %arg6[%c200, %c0_66] : memref<544x32xf32, #tpu.memory_space<vmem>>, vector<8x32xf32>
    %233 = vector.extract_strided_slice %232 {offsets = [0, 0], sizes = [1, 32], strides = [1, 1]} : vector<8x32xf32> to vector<1x32xf32>
    %234 = vector.extract_strided_slice %232 {offsets = [1, 0], sizes = [1, 32], strides = [1, 1]} : vector<8x32xf32> to vector<1x32xf32>
    %235 = vector.extract_strided_slice %232 {offsets = [2, 0], sizes = [1, 32], strides = [1, 1]} : vector<8x32xf32> to vector<1x32xf32>
    %236 = vector.extract_strided_slice %232 {offsets = [3, 0], sizes = [1, 32], strides = [1, 1]} : vector<8x32xf32> to vector<1x32xf32>
    %237 = vector.extract_strided_slice %232 {offsets = [4, 0], sizes = [1, 32], strides = [1, 1]} : vector<8x32xf32> to vector<1x32xf32>
    %c40 = arith.constant 40 : index
    %c0_67 = arith.constant 0 : index
    %238 = vector.load %arg7[%c40, %c0_67] : memref<160x64xf32, #tpu.memory_space<vmem>>, vector<32x64xf32>
    %c72 = arith.constant 72 : index
    %c0_68 = arith.constant 0 : index
    %239 = vector.load %arg7[%c72, %c0_68] : memref<160x64xf32, #tpu.memory_space<vmem>>, vector<1x64xf32>
    %cst_69 = arith.constant dense<0.000000e+00> : vector<16x96xf32>
    %240 = tpu.matmul %228, %229, %cst_69 {dimension_numbers = #tpu.dot_dimension_numbers<[1], [0], [0], [1], [0, 0, 1, 1], [], []>} : vector<16x32xf32>, vector<32x96xf32>, vector<16x96xf32> -> vector<16x96xf32>
    %241 = vector.extract_strided_slice %240 {offsets = [0, 0], sizes = [16, 32], strides = [1, 1]} : vector<16x96xf32> to vector<16x32xf32>
    %242 = vector.extract_strided_slice %240 {offsets = [0, 32], sizes = [16, 32], strides = [1, 1]} : vector<16x96xf32> to vector<16x32xf32>
    %243 = vector.extract_strided_slice %240 {offsets = [0, 64], sizes = [16, 32], strides = [1, 1]} : vector<16x96xf32> to vector<16x32xf32>
    %cst_70 = arith.constant 0.000000e+00 : f32
    %244 = vector.broadcast %cst_70 : f32 to vector<16x32xf32>
    %245 = vector.broadcast %7 : vector<1x32xf32> to vector<16x32xf32>
    %246 = arith.mulf %242, %245 : vector<16x32xf32>
    %cst_71 = arith.constant dense<0.000000e+00> : vector<16x16xf32>
    %247 = tpu.matmul %241, %246, %cst_71 {dimension_numbers = #tpu.dot_dimension_numbers<[1], [1], [0], [0], [0, 0, 1, 0], [], []>} : vector<16x32xf32>, vector<16x32xf32>, vector<16x16xf32> -> vector<16x16xf32>
    %248 = arith.addf %247, %79 : vector<16x16xf32>
    %cst_72 = arith.constant dense<0xFF800000> : vector<16xf32>
    %249 = vector.multi_reduction <maximumf>, %248, %cst_72 [1] : vector<16x16xf32> to vector<16xf32>
    %250 = vector.shape_cast %249 : vector<16xf32> to vector<16x1xf32>
    %251 = vector.broadcast %250 : vector<16x1xf32> to vector<16x16xf32>
    %252 = arith.subf %248, %251 : vector<16x16xf32>
    %253 = math.exp %252 : vector<16x16xf32>
    %cst_73 = arith.constant dense<0.000000e+00> : vector<16xf32>
    %254 = vector.multi_reduction <add>, %253, %cst_73 [1] : vector<16x16xf32> to vector<16xf32>
    %255 = vector.shape_cast %254 : vector<16xf32> to vector<16x1xf32>
    %256 = vector.broadcast %255 : vector<16x1xf32> to vector<16x16xf32>
    %257 = arith.divf %253, %256 : vector<16x16xf32>
    %258 = vector.broadcast %7 : vector<1x32xf32> to vector<16x32xf32>
    %259 = arith.mulf %243, %258 : vector<16x32xf32>
    %cst_74 = arith.constant dense<0.000000e+00> : vector<16x32xf32>
    %260 = tpu.matmul %257, %259, %cst_74 {dimension_numbers = #tpu.dot_dimension_numbers<[1], [0], [0], [1], [0, 0, 1, 1], [], []>} : vector<16x16xf32>, vector<16x32xf32>, vector<16x32xf32> -> vector<16x32xf32>
    %261 = arith.addf %244, %260 : vector<16x32xf32>
    %262 = vector.broadcast %14 : vector<1x32xf32> to vector<16x32xf32>
    %263 = arith.mulf %242, %262 : vector<16x32xf32>
    %cst_75 = arith.constant dense<0.000000e+00> : vector<16x16xf32>
    %264 = tpu.matmul %241, %263, %cst_75 {dimension_numbers = #tpu.dot_dimension_numbers<[1], [1], [0], [0], [0, 0, 1, 0], [], []>} : vector<16x32xf32>, vector<16x32xf32>, vector<16x16xf32> -> vector<16x16xf32>
    %265 = arith.addf %264, %79 : vector<16x16xf32>
    %cst_76 = arith.constant dense<0xFF800000> : vector<16xf32>
    %266 = vector.multi_reduction <maximumf>, %265, %cst_76 [1] : vector<16x16xf32> to vector<16xf32>
    %267 = vector.shape_cast %266 : vector<16xf32> to vector<16x1xf32>
    %268 = vector.broadcast %267 : vector<16x1xf32> to vector<16x16xf32>
    %269 = arith.subf %265, %268 : vector<16x16xf32>
    %270 = math.exp %269 : vector<16x16xf32>
    %cst_77 = arith.constant dense<0.000000e+00> : vector<16xf32>
    %271 = vector.multi_reduction <add>, %270, %cst_77 [1] : vector<16x16xf32> to vector<16xf32>
    %272 = vector.shape_cast %271 : vector<16xf32> to vector<16x1xf32>
    %273 = vector.broadcast %272 : vector<16x1xf32> to vector<16x16xf32>
    %274 = arith.divf %270, %273 : vector<16x16xf32>
    %275 = vector.broadcast %14 : vector<1x32xf32> to vector<16x32xf32>
    %276 = arith.mulf %243, %275 : vector<16x32xf32>
    %cst_78 = arith.constant dense<0.000000e+00> : vector<16x32xf32>
    %277 = tpu.matmul %274, %276, %cst_78 {dimension_numbers = #tpu.dot_dimension_numbers<[1], [0], [0], [1], [0, 0, 1, 1], [], []>} : vector<16x16xf32>, vector<16x32xf32>, vector<16x32xf32> -> vector<16x32xf32>
    %278 = arith.addf %261, %277 : vector<16x32xf32>
    %279 = vector.broadcast %21 : vector<1x32xf32> to vector<16x32xf32>
    %280 = arith.mulf %242, %279 : vector<16x32xf32>
    %cst_79 = arith.constant dense<0.000000e+00> : vector<16x16xf32>
    %281 = tpu.matmul %241, %280, %cst_79 {dimension_numbers = #tpu.dot_dimension_numbers<[1], [1], [0], [0], [0, 0, 1, 0], [], []>} : vector<16x32xf32>, vector<16x32xf32>, vector<16x16xf32> -> vector<16x16xf32>
    %282 = arith.addf %281, %79 : vector<16x16xf32>
    %cst_80 = arith.constant dense<0xFF800000> : vector<16xf32>
    %283 = vector.multi_reduction <maximumf>, %282, %cst_80 [1] : vector<16x16xf32> to vector<16xf32>
    %284 = vector.shape_cast %283 : vector<16xf32> to vector<16x1xf32>
    %285 = vector.broadcast %284 : vector<16x1xf32> to vector<16x16xf32>
    %286 = arith.subf %282, %285 : vector<16x16xf32>
    %287 = math.exp %286 : vector<16x16xf32>
    %cst_81 = arith.constant dense<0.000000e+00> : vector<16xf32>
    %288 = vector.multi_reduction <add>, %287, %cst_81 [1] : vector<16x16xf32> to vector<16xf32>
    %289 = vector.shape_cast %288 : vector<16xf32> to vector<16x1xf32>
    %290 = vector.broadcast %289 : vector<16x1xf32> to vector<16x16xf32>
    %291 = arith.divf %287, %290 : vector<16x16xf32>
    %292 = vector.broadcast %21 : vector<1x32xf32> to vector<16x32xf32>
    %293 = arith.mulf %243, %292 : vector<16x32xf32>
    %cst_82 = arith.constant dense<0.000000e+00> : vector<16x32xf32>
    %294 = tpu.matmul %291, %293, %cst_82 {dimension_numbers = #tpu.dot_dimension_numbers<[1], [0], [0], [1], [0, 0, 1, 1], [], []>} : vector<16x16xf32>, vector<16x32xf32>, vector<16x32xf32> -> vector<16x32xf32>
    %295 = arith.addf %278, %294 : vector<16x32xf32>
    %296 = vector.broadcast %28 : vector<1x32xf32> to vector<16x32xf32>
    %297 = arith.mulf %242, %296 : vector<16x32xf32>
    %cst_83 = arith.constant dense<0.000000e+00> : vector<16x16xf32>
    %298 = tpu.matmul %241, %297, %cst_83 {dimension_numbers = #tpu.dot_dimension_numbers<[1], [1], [0], [0], [0, 0, 1, 0], [], []>} : vector<16x32xf32>, vector<16x32xf32>, vector<16x16xf32> -> vector<16x16xf32>
    %299 = arith.addf %298, %79 : vector<16x16xf32>
    %cst_84 = arith.constant dense<0xFF800000> : vector<16xf32>
    %300 = vector.multi_reduction <maximumf>, %299, %cst_84 [1] : vector<16x16xf32> to vector<16xf32>
    %301 = vector.shape_cast %300 : vector<16xf32> to vector<16x1xf32>
    %302 = vector.broadcast %301 : vector<16x1xf32> to vector<16x16xf32>
    %303 = arith.subf %299, %302 : vector<16x16xf32>
    %304 = math.exp %303 : vector<16x16xf32>
    %cst_85 = arith.constant dense<0.000000e+00> : vector<16xf32>
    %305 = vector.multi_reduction <add>, %304, %cst_85 [1] : vector<16x16xf32> to vector<16xf32>
    %306 = vector.shape_cast %305 : vector<16xf32> to vector<16x1xf32>
    %307 = vector.broadcast %306 : vector<16x1xf32> to vector<16x16xf32>
    %308 = arith.divf %304, %307 : vector<16x16xf32>
    %309 = vector.broadcast %28 : vector<1x32xf32> to vector<16x32xf32>
    %310 = arith.mulf %243, %309 : vector<16x32xf32>
    %cst_86 = arith.constant dense<0.000000e+00> : vector<16x32xf32>
    %311 = tpu.matmul %308, %310, %cst_86 {dimension_numbers = #tpu.dot_dimension_numbers<[1], [0], [0], [1], [0, 0, 1, 1], [], []>} : vector<16x16xf32>, vector<16x32xf32>, vector<16x32xf32> -> vector<16x32xf32>
    %312 = arith.addf %295, %311 : vector<16x32xf32>
    %cst_87 = arith.constant dense<0.000000e+00> : vector<16x32xf32>
    %313 = tpu.matmul %312, %230, %cst_87 {dimension_numbers = #tpu.dot_dimension_numbers<[1], [0], [0], [1], [0, 0, 1, 1], [], []>} : vector<16x32xf32>, vector<32x32xf32>, vector<16x32xf32> -> vector<16x32xf32>
    %314 = arith.addf %228, %313 : vector<16x32xf32>
    %cst_88 = arith.constant dense<0.000000e+00> : vector<16xf32>
    %315 = vector.multi_reduction <add>, %314, %cst_88 [1] : vector<16x32xf32> to vector<16xf32>
    %316 = vector.shape_cast %315 : vector<16xf32> to vector<16x1xf32>
    %cst_89 = arith.constant 3.200000e+01 : f32
    %317 = vector.broadcast %cst_89 : f32 to vector<16x1xf32>
    %318 = arith.divf %316, %317 : vector<16x1xf32>
    %319 = vector.broadcast %318 : vector<16x1xf32> to vector<16x32xf32>
    %320 = arith.subf %314, %319 : vector<16x32xf32>
    %321 = arith.mulf %320, %320 : vector<16x32xf32>
    %cst_90 = arith.constant dense<0.000000e+00> : vector<16xf32>
    %322 = vector.multi_reduction <add>, %321, %cst_90 [1] : vector<16x32xf32> to vector<16xf32>
    %323 = vector.shape_cast %322 : vector<16xf32> to vector<16x1xf32>
    %cst_91 = arith.constant 3.200000e+01 : f32
    %324 = vector.broadcast %cst_91 : f32 to vector<16x1xf32>
    %325 = arith.divf %323, %324 : vector<16x1xf32>
    %326 = vector.broadcast %318 : vector<16x1xf32> to vector<16x32xf32>
    %327 = arith.subf %314, %326 : vector<16x32xf32>
    %cst_92 = arith.constant 9.99999974E-6 : f32
    %328 = vector.broadcast %cst_92 : f32 to vector<16x1xf32>
    %329 = arith.addf %325, %328 : vector<16x1xf32>
    %330 = math.rsqrt %329 : vector<16x1xf32>
    %331 = vector.broadcast %330 : vector<16x1xf32> to vector<16x32xf32>
    %332 = arith.mulf %327, %331 : vector<16x32xf32>
    %333 = vector.broadcast %233 : vector<1x32xf32> to vector<16x32xf32>
    %334 = arith.mulf %332, %333 : vector<16x32xf32>
    %335 = vector.broadcast %234 : vector<1x32xf32> to vector<16x32xf32>
    %336 = arith.addf %334, %335 : vector<16x32xf32>
    %cst_93 = arith.constant dense<0.000000e+00> : vector<16x64xf32>
    %337 = tpu.matmul %336, %238, %cst_93 {dimension_numbers = #tpu.dot_dimension_numbers<[1], [0], [0], [1], [0, 0, 1, 1], [], []>} : vector<16x32xf32>, vector<32x64xf32>, vector<16x64xf32> -> vector<16x64xf32>
    %338 = vector.broadcast %239 : vector<1x64xf32> to vector<16x64xf32>
    %339 = arith.addf %337, %338 : vector<16x64xf32>
    %cst_94 = arith.constant 0.000000e+00 : f32
    %340 = vector.broadcast %cst_94 : f32 to vector<16x64xf32>
    %341 = arith.maximumf %339, %340 : vector<16x64xf32>
    %cst_95 = arith.constant dense<0.000000e+00> : vector<16x32xf32>
    %342 = tpu.matmul %341, %231, %cst_95 {dimension_numbers = #tpu.dot_dimension_numbers<[1], [0], [0], [1], [0, 0, 1, 1], [], []>} : vector<16x64xf32>, vector<64x32xf32>, vector<16x32xf32> -> vector<16x32xf32>
    %343 = vector.broadcast %237 : vector<1x32xf32> to vector<16x32xf32>
    %344 = arith.addf %342, %343 : vector<16x32xf32>
    %345 = arith.addf %336, %344 : vector<16x32xf32>
    %cst_96 = arith.constant dense<0.000000e+00> : vector<16xf32>
    %346 = vector.multi_reduction <add>, %345, %cst_96 [1] : vector<16x32xf32> to vector<16xf32>
    %347 = vector.shape_cast %346 : vector<16xf32> to vector<16x1xf32>
    %cst_97 = arith.constant 3.200000e+01 : f32
    %348 = vector.broadcast %cst_97 : f32 to vector<16x1xf32>
    %349 = arith.divf %347, %348 : vector<16x1xf32>
    %350 = vector.broadcast %349 : vector<16x1xf32> to vector<16x32xf32>
    %351 = arith.subf %345, %350 : vector<16x32xf32>
    %352 = arith.mulf %351, %351 : vector<16x32xf32>
    %cst_98 = arith.constant dense<0.000000e+00> : vector<16xf32>
    %353 = vector.multi_reduction <add>, %352, %cst_98 [1] : vector<16x32xf32> to vector<16xf32>
    %354 = vector.shape_cast %353 : vector<16xf32> to vector<16x1xf32>
    %cst_99 = arith.constant 3.200000e+01 : f32
    %355 = vector.broadcast %cst_99 : f32 to vector<16x1xf32>
    %356 = arith.divf %354, %355 : vector<16x1xf32>
    %357 = vector.broadcast %349 : vector<16x1xf32> to vector<16x32xf32>
    %358 = arith.subf %345, %357 : vector<16x32xf32>
    %cst_100 = arith.constant 9.99999974E-6 : f32
    %359 = vector.broadcast %cst_100 : f32 to vector<16x1xf32>
    %360 = arith.addf %356, %359 : vector<16x1xf32>
    %361 = math.rsqrt %360 : vector<16x1xf32>
    %362 = vector.broadcast %361 : vector<16x1xf32> to vector<16x32xf32>
    %363 = arith.mulf %358, %362 : vector<16x32xf32>
    %364 = vector.broadcast %235 : vector<1x32xf32> to vector<16x32xf32>
    %365 = arith.mulf %363, %364 : vector<16x32xf32>
    %366 = vector.broadcast %236 : vector<1x32xf32> to vector<16x32xf32>
    %367 = arith.addf %365, %366 : vector<16x32xf32>
    %c0_101 = arith.constant 0 : index
    %c0_102 = arith.constant 0 : index
    %368 = vector.load %arg9[%c0_101, %c0_102] : memref<16x32xf32, #tpu.memory_space<vmem>>, vector<16x32xf32>
    tpu.vector_store %arg9[%c0_101, %c0_102], %367 {strides = array<i32>} : memref<16x32xf32, #tpu.memory_space<vmem>>, vector<16x32xf32>,
    %c0_103 = arith.constant 0 : index
    %c0_104 = arith.constant 0 : index
    %369 = vector.load %arg3[%c0_103, %c0_104] : memref<16x32xf32, #tpu.memory_space<vmem>>, vector<16x32xf32>
    %c0_105 = arith.constant 0 : index
    %c0_106 = arith.constant 0 : index
    %c0_107 = arith.constant 0 : index
    %370 = vector.load %arg10[%c0_105, %c0_106, %c0_107] : memref<2x16x32xf32, #tpu.memory_space<vmem>>, vector<1x16x32xf32>
    %371 = vector.shape_cast %370 : vector<1x16x32xf32> to vector<16x32xf32>
    %372 = vector.shape_cast %369 : vector<16x32xf32> to vector<1x16x32xf32>
    tpu.vector_store %arg10[%c0_105, %c0_106, %c0_107], %372 {strides = array<i32>} : memref<2x16x32xf32, #tpu.memory_space<vmem>>, vector<1x16x32xf32>,
    %c64 = arith.constant 64 : index
    %c0_108 = arith.constant 0 : index
    %373 = vector.load %arg4[%c64, %c0_108] : memref<128x96xf32, #tpu.memory_space<vmem>>, vector<32x96xf32>
    %c0_109 = arith.constant 0 : index
    %c0_110 = arith.constant 0 : index
    %374 = vector.load %arg5[%c0_109, %c0_110] : memref<64x64xf32, #tpu.memory_space<vmem>>, vector<32x64xf32>
    %c208 = arith.constant 208 : index
    %c0_111 = arith.constant 0 : index
    %375 = vector.load %arg6[%c208, %c0_111] : memref<544x32xf32, #tpu.memory_space<vmem>>, vector<32x32xf32>
    %c240 = arith.constant 240 : index
    %c0_112 = arith.constant 0 : index
    %376 = vector.load %arg6[%c240, %c0_112] : memref<544x32xf32, #tpu.memory_space<vmem>>, vector<32x32xf32>
    %c272 = arith.constant 272 : index
    %c0_113 = arith.constant 0 : index
    %377 = vector.load %arg6[%c272, %c0_113] : memref<544x32xf32, #tpu.memory_space<vmem>>, vector<32x32xf32>
    %c304 = arith.constant 304 : index
    %c0_114 = arith.constant 0 : index
    %378 = vector.load %arg6[%c304, %c0_114] : memref<544x32xf32, #tpu.memory_space<vmem>>, vector<64x32xf32>
    %c368 = arith.constant 368 : index
    %c0_115 = arith.constant 0 : index
    %379 = vector.load %arg6[%c368, %c0_115] : memref<544x32xf32, #tpu.memory_space<vmem>>, vector<8x32xf32>
    %380 = vector.extract_strided_slice %379 {offsets = [0, 0], sizes = [1, 32], strides = [1, 1]} : vector<8x32xf32> to vector<1x32xf32>
    %381 = vector.extract_strided_slice %379 {offsets = [1, 0], sizes = [1, 32], strides = [1, 1]} : vector<8x32xf32> to vector<1x32xf32>
    %382 = vector.extract_strided_slice %379 {offsets = [2, 0], sizes = [1, 32], strides = [1, 1]} : vector<8x32xf32> to vector<1x32xf32>
    %383 = vector.extract_strided_slice %379 {offsets = [3, 0], sizes = [1, 32], strides = [1, 1]} : vector<8x32xf32> to vector<1x32xf32>
    %384 = vector.extract_strided_slice %379 {offsets = [4, 0], sizes = [1, 32], strides = [1, 1]} : vector<8x32xf32> to vector<1x32xf32>
    %385 = vector.extract_strided_slice %379 {offsets = [5, 0], sizes = [1, 32], strides = [1, 1]} : vector<8x32xf32> to vector<1x32xf32>
    %386 = vector.extract_strided_slice %379 {offsets = [6, 0], sizes = [1, 32], strides = [1, 1]} : vector<8x32xf32> to vector<1x32xf32>
    %c80 = arith.constant 80 : index
    %c0_116 = arith.constant 0 : index
    %387 = vector.load %arg7[%c80, %c0_116] : memref<160x64xf32, #tpu.memory_space<vmem>>, vector<32x64xf32>
    %c112 = arith.constant 112 : index
    %c0_117 = arith.constant 0 : index
    %388 = vector.load %arg7[%c112, %c0_117] : memref<160x64xf32, #tpu.memory_space<vmem>>, vector<1x64xf32>
    %cst_118 = arith.constant dense<0.000000e+00> : vector<16x96xf32>
    %389 = tpu.matmul %369, %373, %cst_118 {dimension_numbers = #tpu.dot_dimension_numbers<[1], [0], [0], [1], [0, 0, 1, 1], [], []>} : vector<16x32xf32>, vector<32x96xf32>, vector<16x96xf32> -> vector<16x96xf32>
    %390 = vector.extract_strided_slice %389 {offsets = [0, 0], sizes = [16, 32], strides = [1, 1]} : vector<16x96xf32> to vector<16x32xf32>
    %391 = vector.extract_strided_slice %389 {offsets = [0, 32], sizes = [16, 32], strides = [1, 1]} : vector<16x96xf32> to vector<16x32xf32>
    %392 = vector.extract_strided_slice %389 {offsets = [0, 64], sizes = [16, 32], strides = [1, 1]} : vector<16x96xf32> to vector<16x32xf32>
    %cst_119 = arith.constant 0.000000e+00 : f32
    %393 = vector.broadcast %cst_119 : f32 to vector<16x32xf32>
    %394 = vector.broadcast %7 : vector<1x32xf32> to vector<16x32xf32>
    %395 = arith.mulf %391, %394 : vector<16x32xf32>
    %cst_120 = arith.constant dense<0.000000e+00> : vector<16x16xf32>
    %396 = tpu.matmul %390, %395, %cst_120 {dimension_numbers = #tpu.dot_dimension_numbers<[1], [1], [0], [0], [0, 0, 1, 0], [], []>} : vector<16x32xf32>, vector<16x32xf32>, vector<16x16xf32> -> vector<16x16xf32>
    %397 = arith.addf %396, %49 : vector<16x16xf32>
    %cst_121 = arith.constant dense<0xFF800000> : vector<16xf32>
    %398 = vector.multi_reduction <maximumf>, %397, %cst_121 [1] : vector<16x16xf32> to vector<16xf32>
    %399 = vector.shape_cast %398 : vector<16xf32> to vector<16x1xf32>
    %400 = vector.broadcast %399 : vector<16x1xf32> to vector<16x16xf32>
    %401 = arith.subf %397, %400 : vector<16x16xf32>
    %402 = math.exp %401 : vector<16x16xf32>
    %cst_122 = arith.constant dense<0.000000e+00> : vector<16xf32>
    %403 = vector.multi_reduction <add>, %402, %cst_122 [1] : vector<16x16xf32> to vector<16xf32>
    %404 = vector.shape_cast %403 : vector<16xf32> to vector<16x1xf32>
    %405 = vector.broadcast %404 : vector<16x1xf32> to vector<16x16xf32>
    %406 = arith.divf %402, %405 : vector<16x16xf32>
    %407 = vector.broadcast %7 : vector<1x32xf32> to vector<16x32xf32>
    %408 = arith.mulf %392, %407 : vector<16x32xf32>
    %cst_123 = arith.constant dense<0.000000e+00> : vector<16x32xf32>
    %409 = tpu.matmul %406, %408, %cst_123 {dimension_numbers = #tpu.dot_dimension_numbers<[1], [0], [0], [1], [0, 0, 1, 1], [], []>} : vector<16x16xf32>, vector<16x32xf32>, vector<16x32xf32> -> vector<16x32xf32>
    %410 = arith.addf %393, %409 : vector<16x32xf32>
    %411 = vector.broadcast %14 : vector<1x32xf32> to vector<16x32xf32>
    %412 = arith.mulf %391, %411 : vector<16x32xf32>
    %cst_124 = arith.constant dense<0.000000e+00> : vector<16x16xf32>
    %413 = tpu.matmul %390, %412, %cst_124 {dimension_numbers = #tpu.dot_dimension_numbers<[1], [1], [0], [0], [0, 0, 1, 0], [], []>} : vector<16x32xf32>, vector<16x32xf32>, vector<16x16xf32> -> vector<16x16xf32>
    %414 = arith.addf %413, %49 : vector<16x16xf32>
    %cst_125 = arith.constant dense<0xFF800000> : vector<16xf32>
    %415 = vector.multi_reduction <maximumf>, %414, %cst_125 [1] : vector<16x16xf32> to vector<16xf32>
    %416 = vector.shape_cast %415 : vector<16xf32> to vector<16x1xf32>
    %417 = vector.broadcast %416 : vector<16x1xf32> to vector<16x16xf32>
    %418 = arith.subf %414, %417 : vector<16x16xf32>
    %419 = math.exp %418 : vector<16x16xf32>
    %cst_126 = arith.constant dense<0.000000e+00> : vector<16xf32>
    %420 = vector.multi_reduction <add>, %419, %cst_126 [1] : vector<16x16xf32> to vector<16xf32>
    %421 = vector.shape_cast %420 : vector<16xf32> to vector<16x1xf32>
    %422 = vector.broadcast %421 : vector<16x1xf32> to vector<16x16xf32>
    %423 = arith.divf %419, %422 : vector<16x16xf32>
    %424 = vector.broadcast %14 : vector<1x32xf32> to vector<16x32xf32>
    %425 = arith.mulf %392, %424 : vector<16x32xf32>
    %cst_127 = arith.constant dense<0.000000e+00> : vector<16x32xf32>
    %426 = tpu.matmul %423, %425, %cst_127 {dimension_numbers = #tpu.dot_dimension_numbers<[1], [0], [0], [1], [0, 0, 1, 1], [], []>} : vector<16x16xf32>, vector<16x32xf32>, vector<16x32xf32> -> vector<16x32xf32>
    %427 = arith.addf %410, %426 : vector<16x32xf32>
    %428 = vector.broadcast %21 : vector<1x32xf32> to vector<16x32xf32>
    %429 = arith.mulf %391, %428 : vector<16x32xf32>
    %cst_128 = arith.constant dense<0.000000e+00> : vector<16x16xf32>
    %430 = tpu.matmul %390, %429, %cst_128 {dimension_numbers = #tpu.dot_dimension_numbers<[1], [1], [0], [0], [0, 0, 1, 0], [], []>} : vector<16x32xf32>, vector<16x32xf32>, vector<16x16xf32> -> vector<16x16xf32>
    %431 = arith.addf %430, %49 : vector<16x16xf32>
    %cst_129 = arith.constant dense<0xFF800000> : vector<16xf32>
    %432 = vector.multi_reduction <maximumf>, %431, %cst_129 [1] : vector<16x16xf32> to vector<16xf32>
    %433 = vector.shape_cast %432 : vector<16xf32> to vector<16x1xf32>
    %434 = vector.broadcast %433 : vector<16x1xf32> to vector<16x16xf32>
    %435 = arith.subf %431, %434 : vector<16x16xf32>
    %436 = math.exp %435 : vector<16x16xf32>
    %cst_130 = arith.constant dense<0.000000e+00> : vector<16xf32>
    %437 = vector.multi_reduction <add>, %436, %cst_130 [1] : vector<16x16xf32> to vector<16xf32>
    %438 = vector.shape_cast %437 : vector<16xf32> to vector<16x1xf32>
    %439 = vector.broadcast %438 : vector<16x1xf32> to vector<16x16xf32>
    %440 = arith.divf %436, %439 : vector<16x16xf32>
    %441 = vector.broadcast %21 : vector<1x32xf32> to vector<16x32xf32>
    %442 = arith.mulf %392, %441 : vector<16x32xf32>
    %cst_131 = arith.constant dense<0.000000e+00> : vector<16x32xf32>
    %443 = tpu.matmul %440, %442, %cst_131 {dimension_numbers = #tpu.dot_dimension_numbers<[1], [0], [0], [1], [0, 0, 1, 1], [], []>} : vector<16x16xf32>, vector<16x32xf32>, vector<16x32xf32> -> vector<16x32xf32>
    %444 = arith.addf %427, %443 : vector<16x32xf32>
    %445 = vector.broadcast %28 : vector<1x32xf32> to vector<16x32xf32>
    %446 = arith.mulf %391, %445 : vector<16x32xf32>
    %cst_132 = arith.constant dense<0.000000e+00> : vector<16x16xf32>
    %447 = tpu.matmul %390, %446, %cst_132 {dimension_numbers = #tpu.dot_dimension_numbers<[1], [1], [0], [0], [0, 0, 1, 0], [], []>} : vector<16x32xf32>, vector<16x32xf32>, vector<16x16xf32> -> vector<16x16xf32>
    %448 = arith.addf %447, %49 : vector<16x16xf32>
    %cst_133 = arith.constant dense<0xFF800000> : vector<16xf32>
    %449 = vector.multi_reduction <maximumf>, %448, %cst_133 [1] : vector<16x16xf32> to vector<16xf32>
    %450 = vector.shape_cast %449 : vector<16xf32> to vector<16x1xf32>
    %451 = vector.broadcast %450 : vector<16x1xf32> to vector<16x16xf32>
    %452 = arith.subf %448, %451 : vector<16x16xf32>
    %453 = math.exp %452 : vector<16x16xf32>
    %cst_134 = arith.constant dense<0.000000e+00> : vector<16xf32>
    %454 = vector.multi_reduction <add>, %453, %cst_134 [1] : vector<16x16xf32> to vector<16xf32>
    %455 = vector.shape_cast %454 : vector<16xf32> to vector<16x1xf32>
    %456 = vector.broadcast %455 : vector<16x1xf32> to vector<16x16xf32>
    %457 = arith.divf %453, %456 : vector<16x16xf32>
    %458 = vector.broadcast %28 : vector<1x32xf32> to vector<16x32xf32>
    %459 = arith.mulf %392, %458 : vector<16x32xf32>
    %cst_135 = arith.constant dense<0.000000e+00> : vector<16x32xf32>
    %460 = tpu.matmul %457, %459, %cst_135 {dimension_numbers = #tpu.dot_dimension_numbers<[1], [0], [0], [1], [0, 0, 1, 1], [], []>} : vector<16x16xf32>, vector<16x32xf32>, vector<16x32xf32> -> vector<16x32xf32>
    %461 = arith.addf %444, %460 : vector<16x32xf32>
    %cst_136 = arith.constant dense<0.000000e+00> : vector<16x32xf32>
    %462 = tpu.matmul %461, %375, %cst_136 {dimension_numbers = #tpu.dot_dimension_numbers<[1], [0], [0], [1], [0, 0, 1, 1], [], []>} : vector<16x32xf32>, vector<32x32xf32>, vector<16x32xf32> -> vector<16x32xf32>
    %463 = arith.addf %369, %462 : vector<16x32xf32>
    %cst_137 = arith.constant dense<0.000000e+00> : vector<16xf32>
    %464 = vector.multi_reduction <add>, %463, %cst_137 [1] : vector<16x32xf32> to vector<16xf32>
    %465 = vector.shape_cast %464 : vector<16xf32> to vector<16x1xf32>
    %cst_138 = arith.constant 3.200000e+01 : f32
    %466 = vector.broadcast %cst_138 : f32 to vector<16x1xf32>
    %467 = arith.divf %465, %466 : vector<16x1xf32>
    %468 = vector.broadcast %467 : vector<16x1xf32> to vector<16x32xf32>
    %469 = arith.subf %463, %468 : vector<16x32xf32>
    %470 = arith.mulf %469, %469 : vector<16x32xf32>
    %cst_139 = arith.constant dense<0.000000e+00> : vector<16xf32>
    %471 = vector.multi_reduction <add>, %470, %cst_139 [1] : vector<16x32xf32> to vector<16xf32>
    %472 = vector.shape_cast %471 : vector<16xf32> to vector<16x1xf32>
    %cst_140 = arith.constant 3.200000e+01 : f32
    %473 = vector.broadcast %cst_140 : f32 to vector<16x1xf32>
    %474 = arith.divf %472, %473 : vector<16x1xf32>
    %475 = vector.broadcast %467 : vector<16x1xf32> to vector<16x32xf32>
    %476 = arith.subf %463, %475 : vector<16x32xf32>
    %cst_141 = arith.constant 9.99999974E-6 : f32
    %477 = vector.broadcast %cst_141 : f32 to vector<16x1xf32>
    %478 = arith.addf %474, %477 : vector<16x1xf32>
    %479 = math.rsqrt %478 : vector<16x1xf32>
    %480 = vector.broadcast %479 : vector<16x1xf32> to vector<16x32xf32>
    %481 = arith.mulf %476, %480 : vector<16x32xf32>
    %482 = vector.broadcast %380 : vector<1x32xf32> to vector<16x32xf32>
    %483 = arith.mulf %481, %482 : vector<16x32xf32>
    %484 = vector.broadcast %381 : vector<1x32xf32> to vector<16x32xf32>
    %485 = arith.addf %483, %484 : vector<16x32xf32>
    %cst_142 = arith.constant dense<0.000000e+00> : vector<16x64xf32>
    %486 = tpu.matmul %367, %374, %cst_142 {dimension_numbers = #tpu.dot_dimension_numbers<[1], [0], [0], [1], [0, 0, 1, 1], [], []>} : vector<16x32xf32>, vector<32x64xf32>, vector<16x64xf32> -> vector<16x64xf32>
    %cst_143 = arith.constant dense<0.000000e+00> : vector<16x32xf32>
    %487 = tpu.matmul %485, %376, %cst_143 {dimension_numbers = #tpu.dot_dimension_numbers<[1], [0], [0], [1], [0, 0, 1, 1], [], []>} : vector<16x32xf32>, vector<32x32xf32>, vector<16x32xf32> -> vector<16x32xf32>
    %488 = vector.extract_strided_slice %486 {offsets = [0, 0], sizes = [16, 32], strides = [1, 1]} : vector<16x64xf32> to vector<16x32xf32>
    %489 = vector.extract_strided_slice %486 {offsets = [0, 32], sizes = [16, 32], strides = [1, 1]} : vector<16x64xf32> to vector<16x32xf32>
    %cst_144 = arith.constant 0.000000e+00 : f32
    %490 = vector.broadcast %cst_144 : f32 to vector<16x32xf32>
    %491 = vector.broadcast %7 : vector<1x32xf32> to vector<16x32xf32>
    %492 = arith.mulf %488, %491 : vector<16x32xf32>
    %cst_145 = arith.constant dense<0.000000e+00> : vector<16x16xf32>
    %493 = tpu.matmul %487, %492, %cst_145 {dimension_numbers = #tpu.dot_dimension_numbers<[1], [1], [0], [0], [0, 0, 1, 0], [], []>} : vector<16x32xf32>, vector<16x32xf32>, vector<16x16xf32> -> vector<16x16xf32>
    %494 = arith.addf %493, %88 : vector<16x16xf32>
    %cst_146 = arith.constant dense<0xFF800000> : vector<16xf32>
    %495 = vector.multi_reduction <maximumf>, %494, %cst_146 [1] : vector<16x16xf32> to vector<16xf32>
    %496 = vector.shape_cast %495 : vector<16xf32> to vector<16x1xf32>
    %497 = vector.broadcast %496 : vector<16x1xf32> to vector<16x16xf32>
    %498 = arith.subf %494, %497 : vector<16x16xf32>
    %499 = math.exp %498 : vector<16x16xf32>
    %cst_147 = arith.constant dense<0.000000e+00> : vector<16xf32>
    %500 = vector.multi_reduction <add>, %499, %cst_147 [1] : vector<16x16xf32> to vector<16xf32>
    %501 = vector.shape_cast %500 : vector<16xf32> to vector<16x1xf32>
    %502 = vector.broadcast %501 : vector<16x1xf32> to vector<16x16xf32>
    %503 = arith.divf %499, %502 : vector<16x16xf32>
    %504 = vector.broadcast %7 : vector<1x32xf32> to vector<16x32xf32>
    %505 = arith.mulf %489, %504 : vector<16x32xf32>
    %cst_148 = arith.constant dense<0.000000e+00> : vector<16x32xf32>
    %506 = tpu.matmul %503, %505, %cst_148 {dimension_numbers = #tpu.dot_dimension_numbers<[1], [0], [0], [1], [0, 0, 1, 1], [], []>} : vector<16x16xf32>, vector<16x32xf32>, vector<16x32xf32> -> vector<16x32xf32>
    %507 = arith.addf %490, %506 : vector<16x32xf32>
    %508 = vector.broadcast %14 : vector<1x32xf32> to vector<16x32xf32>
    %509 = arith.mulf %488, %508 : vector<16x32xf32>
    %cst_149 = arith.constant dense<0.000000e+00> : vector<16x16xf32>
    %510 = tpu.matmul %487, %509, %cst_149 {dimension_numbers = #tpu.dot_dimension_numbers<[1], [1], [0], [0], [0, 0, 1, 0], [], []>} : vector<16x32xf32>, vector<16x32xf32>, vector<16x16xf32> -> vector<16x16xf32>
    %511 = arith.addf %510, %88 : vector<16x16xf32>
    %cst_150 = arith.constant dense<0xFF800000> : vector<16xf32>
    %512 = vector.multi_reduction <maximumf>, %511, %cst_150 [1] : vector<16x16xf32> to vector<16xf32>
    %513 = vector.shape_cast %512 : vector<16xf32> to vector<16x1xf32>
    %514 = vector.broadcast %513 : vector<16x1xf32> to vector<16x16xf32>
    %515 = arith.subf %511, %514 : vector<16x16xf32>
    %516 = math.exp %515 : vector<16x16xf32>
    %cst_151 = arith.constant dense<0.000000e+00> : vector<16xf32>
    %517 = vector.multi_reduction <add>, %516, %cst_151 [1] : vector<16x16xf32> to vector<16xf32>
    %518 = vector.shape_cast %517 : vector<16xf32> to vector<16x1xf32>
    %519 = vector.broadcast %518 : vector<16x1xf32> to vector<16x16xf32>
    %520 = arith.divf %516, %519 : vector<16x16xf32>
    %521 = vector.broadcast %14 : vector<1x32xf32> to vector<16x32xf32>
    %522 = arith.mulf %489, %521 : vector<16x32xf32>
    %cst_152 = arith.constant dense<0.000000e+00> : vector<16x32xf32>
    %523 = tpu.matmul %520, %522, %cst_152 {dimension_numbers = #tpu.dot_dimension_numbers<[1], [0], [0], [1], [0, 0, 1, 1], [], []>} : vector<16x16xf32>, vector<16x32xf32>, vector<16x32xf32> -> vector<16x32xf32>
    %524 = arith.addf %507, %523 : vector<16x32xf32>
    %525 = vector.broadcast %21 : vector<1x32xf32> to vector<16x32xf32>
    %526 = arith.mulf %488, %525 : vector<16x32xf32>
    %cst_153 = arith.constant dense<0.000000e+00> : vector<16x16xf32>
    %527 = tpu.matmul %487, %526, %cst_153 {dimension_numbers = #tpu.dot_dimension_numbers<[1], [1], [0], [0], [0, 0, 1, 0], [], []>} : vector<16x32xf32>, vector<16x32xf32>, vector<16x16xf32> -> vector<16x16xf32>
    %528 = arith.addf %527, %88 : vector<16x16xf32>
    %cst_154 = arith.constant dense<0xFF800000> : vector<16xf32>
    %529 = vector.multi_reduction <maximumf>, %528, %cst_154 [1] : vector<16x16xf32> to vector<16xf32>
    %530 = vector.shape_cast %529 : vector<16xf32> to vector<16x1xf32>
    %531 = vector.broadcast %530 : vector<16x1xf32> to vector<16x16xf32>
    %532 = arith.subf %528, %531 : vector<16x16xf32>
    %533 = math.exp %532 : vector<16x16xf32>
    %cst_155 = arith.constant dense<0.000000e+00> : vector<16xf32>
    %534 = vector.multi_reduction <add>, %533, %cst_155 [1] : vector<16x16xf32> to vector<16xf32>
    %535 = vector.shape_cast %534 : vector<16xf32> to vector<16x1xf32>
    %536 = vector.broadcast %535 : vector<16x1xf32> to vector<16x16xf32>
    %537 = arith.divf %533, %536 : vector<16x16xf32>
    %538 = vector.broadcast %21 : vector<1x32xf32> to vector<16x32xf32>
    %539 = arith.mulf %489, %538 : vector<16x32xf32>
    %cst_156 = arith.constant dense<0.000000e+00> : vector<16x32xf32>
    %540 = tpu.matmul %537, %539, %cst_156 {dimension_numbers = #tpu.dot_dimension_numbers<[1], [0], [0], [1], [0, 0, 1, 1], [], []>} : vector<16x16xf32>, vector<16x32xf32>, vector<16x32xf32> -> vector<16x32xf32>
    %541 = arith.addf %524, %540 : vector<16x32xf32>
    %542 = vector.broadcast %28 : vector<1x32xf32> to vector<16x32xf32>
    %543 = arith.mulf %488, %542 : vector<16x32xf32>
    %cst_157 = arith.constant dense<0.000000e+00> : vector<16x16xf32>
    %544 = tpu.matmul %487, %543, %cst_157 {dimension_numbers = #tpu.dot_dimension_numbers<[1], [1], [0], [0], [0, 0, 1, 0], [], []>} : vector<16x32xf32>, vector<16x32xf32>, vector<16x16xf32> -> vector<16x16xf32>
    %545 = arith.addf %544, %88 : vector<16x16xf32>
    %cst_158 = arith.constant dense<0xFF800000> : vector<16xf32>
    %546 = vector.multi_reduction <maximumf>, %545, %cst_158 [1] : vector<16x16xf32> to vector<16xf32>
    %547 = vector.shape_cast %546 : vector<16xf32> to vector<16x1xf32>
    %548 = vector.broadcast %547 : vector<16x1xf32> to vector<16x16xf32>
    %549 = arith.subf %545, %548 : vector<16x16xf32>
    %550 = math.exp %549 : vector<16x16xf32>
    %cst_159 = arith.constant dense<0.000000e+00> : vector<16xf32>
    %551 = vector.multi_reduction <add>, %550, %cst_159 [1] : vector<16x16xf32> to vector<16xf32>
    %552 = vector.shape_cast %551 : vector<16xf32> to vector<16x1xf32>
    %553 = vector.broadcast %552 : vector<16x1xf32> to vector<16x16xf32>
    %554 = arith.divf %550, %553 : vector<16x16xf32>
    %555 = vector.broadcast %28 : vector<1x32xf32> to vector<16x32xf32>
    %556 = arith.mulf %489, %555 : vector<16x32xf32>
    %cst_160 = arith.constant dense<0.000000e+00> : vector<16x32xf32>
    %557 = tpu.matmul %554, %556, %cst_160 {dimension_numbers = #tpu.dot_dimension_numbers<[1], [0], [0], [1], [0, 0, 1, 1], [], []>} : vector<16x16xf32>, vector<16x32xf32>, vector<16x32xf32> -> vector<16x32xf32>
    %558 = arith.addf %541, %557 : vector<16x32xf32>
    %cst_161 = arith.constant dense<0.000000e+00> : vector<16x32xf32>
    %559 = tpu.matmul %558, %377, %cst_161 {dimension_numbers = #tpu.dot_dimension_numbers<[1], [0], [0], [1], [0, 0, 1, 1], [], []>} : vector<16x32xf32>, vector<32x32xf32>, vector<16x32xf32> -> vector<16x32xf32>
    %560 = arith.addf %485, %559 : vector<16x32xf32>
    %cst_162 = arith.constant dense<0.000000e+00> : vector<16xf32>
    %561 = vector.multi_reduction <add>, %560, %cst_162 [1] : vector<16x32xf32> to vector<16xf32>
    %562 = vector.shape_cast %561 : vector<16xf32> to vector<16x1xf32>
    %cst_163 = arith.constant 3.200000e+01 : f32
    %563 = vector.broadcast %cst_163 : f32 to vector<16x1xf32>
    %564 = arith.divf %562, %563 : vector<16x1xf32>
    %565 = vector.broadcast %564 : vector<16x1xf32> to vector<16x32xf32>
    %566 = arith.subf %560, %565 : vector<16x32xf32>
    %567 = arith.mulf %566, %566 : vector<16x32xf32>
    %cst_164 = arith.constant dense<0.000000e+00> : vector<16xf32>
    %568 = vector.multi_reduction <add>, %567, %cst_164 [1] : vector<16x32xf32> to vector<16xf32>
    %569 = vector.shape_cast %568 : vector<16xf32> to vector<16x1xf32>
    %cst_165 = arith.constant 3.200000e+01 : f32
    %570 = vector.broadcast %cst_165 : f32 to vector<16x1xf32>
    %571 = arith.divf %569, %570 : vector<16x1xf32>
    %572 = vector.broadcast %564 : vector<16x1xf32> to vector<16x32xf32>
    %573 = arith.subf %560, %572 : vector<16x32xf32>
    %cst_166 = arith.constant 9.99999974E-6 : f32
    %574 = vector.broadcast %cst_166 : f32 to vector<16x1xf32>
    %575 = arith.addf %571, %574 : vector<16x1xf32>
    %576 = math.rsqrt %575 : vector<16x1xf32>
    %577 = vector.broadcast %576 : vector<16x1xf32> to vector<16x32xf32>
    %578 = arith.mulf %573, %577 : vector<16x32xf32>
    %579 = vector.broadcast %382 : vector<1x32xf32> to vector<16x32xf32>
    %580 = arith.mulf %578, %579 : vector<16x32xf32>
    %581 = vector.broadcast %383 : vector<1x32xf32> to vector<16x32xf32>
    %582 = arith.addf %580, %581 : vector<16x32xf32>
    %cst_167 = arith.constant dense<0.000000e+00> : vector<16x64xf32>
    %583 = tpu.matmul %582, %387, %cst_167 {dimension_numbers = #tpu.dot_dimension_numbers<[1], [0], [0], [1], [0, 0, 1, 1], [], []>} : vector<16x32xf32>, vector<32x64xf32>, vector<16x64xf32> -> vector<16x64xf32>
    %584 = vector.broadcast %388 : vector<1x64xf32> to vector<16x64xf32>
    %585 = arith.addf %583, %584 : vector<16x64xf32>
    %cst_168 = arith.constant 0.000000e+00 : f32
    %586 = vector.broadcast %cst_168 : f32 to vector<16x64xf32>
    %587 = arith.maximumf %585, %586 : vector<16x64xf32>
    %cst_169 = arith.constant dense<0.000000e+00> : vector<16x32xf32>
    %588 = tpu.matmul %587, %378, %cst_169 {dimension_numbers = #tpu.dot_dimension_numbers<[1], [0], [0], [1], [0, 0, 1, 1], [], []>} : vector<16x64xf32>, vector<64x32xf32>, vector<16x32xf32> -> vector<16x32xf32>
    %589 = vector.broadcast %386 : vector<1x32xf32> to vector<16x32xf32>
    %590 = arith.addf %588, %589 : vector<16x32xf32>
    %591 = arith.addf %582, %590 : vector<16x32xf32>
    %cst_170 = arith.constant dense<0.000000e+00> : vector<16xf32>
    %592 = vector.multi_reduction <add>, %591, %cst_170 [1] : vector<16x32xf32> to vector<16xf32>
    %593 = vector.shape_cast %592 : vector<16xf32> to vector<16x1xf32>
    %cst_171 = arith.constant 3.200000e+01 : f32
    %594 = vector.broadcast %cst_171 : f32 to vector<16x1xf32>
    %595 = arith.divf %593, %594 : vector<16x1xf32>
    %596 = vector.broadcast %595 : vector<16x1xf32> to vector<16x32xf32>
    %597 = arith.subf %591, %596 : vector<16x32xf32>
    %598 = arith.mulf %597, %597 : vector<16x32xf32>
    %cst_172 = arith.constant dense<0.000000e+00> : vector<16xf32>
    %599 = vector.multi_reduction <add>, %598, %cst_172 [1] : vector<16x32xf32> to vector<16xf32>
    %600 = vector.shape_cast %599 : vector<16xf32> to vector<16x1xf32>
    %cst_173 = arith.constant 3.200000e+01 : f32
    %601 = vector.broadcast %cst_173 : f32 to vector<16x1xf32>
    %602 = arith.divf %600, %601 : vector<16x1xf32>
    %603 = vector.broadcast %595 : vector<16x1xf32> to vector<16x32xf32>
    %604 = arith.subf %591, %603 : vector<16x32xf32>
    %cst_174 = arith.constant 9.99999974E-6 : f32
    %605 = vector.broadcast %cst_174 : f32 to vector<16x1xf32>
    %606 = arith.addf %602, %605 : vector<16x1xf32>
    %607 = math.rsqrt %606 : vector<16x1xf32>
    %608 = vector.broadcast %607 : vector<16x1xf32> to vector<16x32xf32>
    %609 = arith.mulf %604, %608 : vector<16x32xf32>
    %610 = vector.broadcast %384 : vector<1x32xf32> to vector<16x32xf32>
    %611 = arith.mulf %609, %610 : vector<16x32xf32>
    %612 = vector.broadcast %385 : vector<1x32xf32> to vector<16x32xf32>
    %613 = arith.addf %611, %612 : vector<16x32xf32>
    %c1_175 = arith.constant 1 : index
    %c0_176 = arith.constant 0 : index
    %c0_177 = arith.constant 0 : index
    %614 = vector.load %arg10[%c1_175, %c0_176, %c0_177] : memref<2x16x32xf32, #tpu.memory_space<vmem>>, vector<1x16x32xf32>
    %615 = vector.shape_cast %614 : vector<1x16x32xf32> to vector<16x32xf32>
    %616 = vector.shape_cast %613 : vector<16x32xf32> to vector<1x16x32xf32>
    tpu.vector_store %arg10[%c1_175, %c0_176, %c0_177], %616 {strides = array<i32>} : memref<2x16x32xf32, #tpu.memory_space<vmem>>, vector<1x16x32xf32>,
    %c96_178 = arith.constant 96 : index
    %c0_179 = arith.constant 0 : index
    %617 = vector.load %arg4[%c96_178, %c0_179] : memref<128x96xf32, #tpu.memory_space<vmem>>, vector<32x96xf32>
    %c32_180 = arith.constant 32 : index
    %c0_181 = arith.constant 0 : index
    %618 = vector.load %arg5[%c32_180, %c0_181] : memref<64x64xf32, #tpu.memory_space<vmem>>, vector<32x64xf32>
    %c376 = arith.constant 376 : index
    %c0_182 = arith.constant 0 : index
    %619 = vector.load %arg6[%c376, %c0_182] : memref<544x32xf32, #tpu.memory_space<vmem>>, vector<32x32xf32>
    %c408 = arith.constant 408 : index
    %c0_183 = arith.constant 0 : index
    %620 = vector.load %arg6[%c408, %c0_183] : memref<544x32xf32, #tpu.memory_space<vmem>>, vector<32x32xf32>
    %c440 = arith.constant 440 : index
    %c0_184 = arith.constant 0 : index
    %621 = vector.load %arg6[%c440, %c0_184] : memref<544x32xf32, #tpu.memory_space<vmem>>, vector<32x32xf32>
    %c472 = arith.constant 472 : index
    %c0_185 = arith.constant 0 : index
    %622 = vector.load %arg6[%c472, %c0_185] : memref<544x32xf32, #tpu.memory_space<vmem>>, vector<64x32xf32>
    %c536 = arith.constant 536 : index
    %c0_186 = arith.constant 0 : index
    %623 = vector.load %arg6[%c536, %c0_186] : memref<544x32xf32, #tpu.memory_space<vmem>>, vector<8x32xf32>
    %624 = vector.extract_strided_slice %623 {offsets = [0, 0], sizes = [1, 32], strides = [1, 1]} : vector<8x32xf32> to vector<1x32xf32>
    %625 = vector.extract_strided_slice %623 {offsets = [1, 0], sizes = [1, 32], strides = [1, 1]} : vector<8x32xf32> to vector<1x32xf32>
    %626 = vector.extract_strided_slice %623 {offsets = [2, 0], sizes = [1, 32], strides = [1, 1]} : vector<8x32xf32> to vector<1x32xf32>
    %627 = vector.extract_strided_slice %623 {offsets = [3, 0], sizes = [1, 32], strides = [1, 1]} : vector<8x32xf32> to vector<1x32xf32>
    %628 = vector.extract_strided_slice %623 {offsets = [4, 0], sizes = [1, 32], strides = [1, 1]} : vector<8x32xf32> to vector<1x32xf32>
    %629 = vector.extract_strided_slice %623 {offsets = [5, 0], sizes = [1, 32], strides = [1, 1]} : vector<8x32xf32> to vector<1x32xf32>
    %630 = vector.extract_strided_slice %623 {offsets = [6, 0], sizes = [1, 32], strides = [1, 1]} : vector<8x32xf32> to vector<1x32xf32>
    %c120 = arith.constant 120 : index
    %c0_187 = arith.constant 0 : index
    %631 = vector.load %arg7[%c120, %c0_187] : memref<160x64xf32, #tpu.memory_space<vmem>>, vector<32x64xf32>
    %c152 = arith.constant 152 : index
    %c0_188 = arith.constant 0 : index
    %632 = vector.load %arg7[%c152, %c0_188] : memref<160x64xf32, #tpu.memory_space<vmem>>, vector<1x64xf32>
    %cst_189 = arith.constant dense<0.000000e+00> : vector<16x96xf32>
    %633 = tpu.matmul %613, %617, %cst_189 {dimension_numbers = #tpu.dot_dimension_numbers<[1], [0], [0], [1], [0, 0, 1, 1], [], []>} : vector<16x32xf32>, vector<32x96xf32>, vector<16x96xf32> -> vector<16x96xf32>
    %634 = vector.extract_strided_slice %633 {offsets = [0, 0], sizes = [16, 32], strides = [1, 1]} : vector<16x96xf32> to vector<16x32xf32>
    %635 = vector.extract_strided_slice %633 {offsets = [0, 32], sizes = [16, 32], strides = [1, 1]} : vector<16x96xf32> to vector<16x32xf32>
    %636 = vector.extract_strided_slice %633 {offsets = [0, 64], sizes = [16, 32], strides = [1, 1]} : vector<16x96xf32> to vector<16x32xf32>
    %cst_190 = arith.constant 0.000000e+00 : f32
    %637 = vector.broadcast %cst_190 : f32 to vector<16x32xf32>
    %638 = vector.broadcast %7 : vector<1x32xf32> to vector<16x32xf32>
    %639 = arith.mulf %635, %638 : vector<16x32xf32>
    %cst_191 = arith.constant dense<0.000000e+00> : vector<16x16xf32>
    %640 = tpu.matmul %634, %639, %cst_191 {dimension_numbers = #tpu.dot_dimension_numbers<[1], [1], [0], [0], [0, 0, 1, 0], [], []>} : vector<16x32xf32>, vector<16x32xf32>, vector<16x16xf32> -> vector<16x16xf32>
    %641 = arith.addf %640, %49 : vector<16x16xf32>
    %cst_192 = arith.constant dense<0xFF800000> : vector<16xf32>
    %642 = vector.multi_reduction <maximumf>, %641, %cst_192 [1] : vector<16x16xf32> to vector<16xf32>
    %643 = vector.shape_cast %642 : vector<16xf32> to vector<16x1xf32>
    %644 = vector.broadcast %643 : vector<16x1xf32> to vector<16x16xf32>
    %645 = arith.subf %641, %644 : vector<16x16xf32>
    %646 = math.exp %645 : vector<16x16xf32>
    %cst_193 = arith.constant dense<0.000000e+00> : vector<16xf32>
    %647 = vector.multi_reduction <add>, %646, %cst_193 [1] : vector<16x16xf32> to vector<16xf32>
    %648 = vector.shape_cast %647 : vector<16xf32> to vector<16x1xf32>
    %649 = vector.broadcast %648 : vector<16x1xf32> to vector<16x16xf32>
    %650 = arith.divf %646, %649 : vector<16x16xf32>
    %651 = vector.broadcast %7 : vector<1x32xf32> to vector<16x32xf32>
    %652 = arith.mulf %636, %651 : vector<16x32xf32>
    %cst_194 = arith.constant dense<0.000000e+00> : vector<16x32xf32>
    %653 = tpu.matmul %650, %652, %cst_194 {dimension_numbers = #tpu.dot_dimension_numbers<[1], [0], [0], [1], [0, 0, 1, 1], [], []>} : vector<16x16xf32>, vector<16x32xf32>, vector<16x32xf32> -> vector<16x32xf32>
    %654 = arith.addf %637, %653 : vector<16x32xf32>
    %655 = vector.broadcast %14 : vector<1x32xf32> to vector<16x32xf32>
    %656 = arith.mulf %635, %655 : vector<16x32xf32>
    %cst_195 = arith.constant dense<0.000000e+00> : vector<16x16xf32>
    %657 = tpu.matmul %634, %656, %cst_195 {dimension_numbers = #tpu.dot_dimension_numbers<[1], [1], [0], [0], [0, 0, 1, 0], [], []>} : vector<16x32xf32>, vector<16x32xf32>, vector<16x16xf32> -> vector<16x16xf32>
    %658 = arith.addf %657, %49 : vector<16x16xf32>
    %cst_196 = arith.constant dense<0xFF800000> : vector<16xf32>
    %659 = vector.multi_reduction <maximumf>, %658, %cst_196 [1] : vector<16x16xf32> to vector<16xf32>
    %660 = vector.shape_cast %659 : vector<16xf32> to vector<16x1xf32>
    %661 = vector.broadcast %660 : vector<16x1xf32> to vector<16x16xf32>
    %662 = arith.subf %658, %661 : vector<16x16xf32>
    %663 = math.exp %662 : vector<16x16xf32>
    %cst_197 = arith.constant dense<0.000000e+00> : vector<16xf32>
    %664 = vector.multi_reduction <add>, %663, %cst_197 [1] : vector<16x16xf32> to vector<16xf32>
    %665 = vector.shape_cast %664 : vector<16xf32> to vector<16x1xf32>
    %666 = vector.broadcast %665 : vector<16x1xf32> to vector<16x16xf32>
    %667 = arith.divf %663, %666 : vector<16x16xf32>
    %668 = vector.broadcast %14 : vector<1x32xf32> to vector<16x32xf32>
    %669 = arith.mulf %636, %668 : vector<16x32xf32>
    %cst_198 = arith.constant dense<0.000000e+00> : vector<16x32xf32>
    %670 = tpu.matmul %667, %669, %cst_198 {dimension_numbers = #tpu.dot_dimension_numbers<[1], [0], [0], [1], [0, 0, 1, 1], [], []>} : vector<16x16xf32>, vector<16x32xf32>, vector<16x32xf32> -> vector<16x32xf32>
    %671 = arith.addf %654, %670 : vector<16x32xf32>
    %672 = vector.broadcast %21 : vector<1x32xf32> to vector<16x32xf32>
    %673 = arith.mulf %635, %672 : vector<16x32xf32>
    %cst_199 = arith.constant dense<0.000000e+00> : vector<16x16xf32>
    %674 = tpu.matmul %634, %673, %cst_199 {dimension_numbers = #tpu.dot_dimension_numbers<[1], [1], [0], [0], [0, 0, 1, 0], [], []>} : vector<16x32xf32>, vector<16x32xf32>, vector<16x16xf32> -> vector<16x16xf32>
    %675 = arith.addf %674, %49 : vector<16x16xf32>
    %cst_200 = arith.constant dense<0xFF800000> : vector<16xf32>
    %676 = vector.multi_reduction <maximumf>, %675, %cst_200 [1] : vector<16x16xf32> to vector<16xf32>
    %677 = vector.shape_cast %676 : vector<16xf32> to vector<16x1xf32>
    %678 = vector.broadcast %677 : vector<16x1xf32> to vector<16x16xf32>
    %679 = arith.subf %675, %678 : vector<16x16xf32>
    %680 = math.exp %679 : vector<16x16xf32>
    %cst_201 = arith.constant dense<0.000000e+00> : vector<16xf32>
    %681 = vector.multi_reduction <add>, %680, %cst_201 [1] : vector<16x16xf32> to vector<16xf32>
    %682 = vector.shape_cast %681 : vector<16xf32> to vector<16x1xf32>
    %683 = vector.broadcast %682 : vector<16x1xf32> to vector<16x16xf32>
    %684 = arith.divf %680, %683 : vector<16x16xf32>
    %685 = vector.broadcast %21 : vector<1x32xf32> to vector<16x32xf32>
    %686 = arith.mulf %636, %685 : vector<16x32xf32>
    %cst_202 = arith.constant dense<0.000000e+00> : vector<16x32xf32>
    %687 = tpu.matmul %684, %686, %cst_202 {dimension_numbers = #tpu.dot_dimension_numbers<[1], [0], [0], [1], [0, 0, 1, 1], [], []>} : vector<16x16xf32>, vector<16x32xf32>, vector<16x32xf32> -> vector<16x32xf32>
    %688 = arith.addf %671, %687 : vector<16x32xf32>
    %689 = vector.broadcast %28 : vector<1x32xf32> to vector<16x32xf32>
    %690 = arith.mulf %635, %689 : vector<16x32xf32>
    %cst_203 = arith.constant dense<0.000000e+00> : vector<16x16xf32>
    %691 = tpu.matmul %634, %690, %cst_203 {dimension_numbers = #tpu.dot_dimension_numbers<[1], [1], [0], [0], [0, 0, 1, 0], [], []>} : vector<16x32xf32>, vector<16x32xf32>, vector<16x16xf32> -> vector<16x16xf32>
    %692 = arith.addf %691, %49 : vector<16x16xf32>
    %cst_204 = arith.constant dense<0xFF800000> : vector<16xf32>
    %693 = vector.multi_reduction <maximumf>, %692, %cst_204 [1] : vector<16x16xf32> to vector<16xf32>
    %694 = vector.shape_cast %693 : vector<16xf32> to vector<16x1xf32>
    %695 = vector.broadcast %694 : vector<16x1xf32> to vector<16x16xf32>
    %696 = arith.subf %692, %695 : vector<16x16xf32>
    %697 = math.exp %696 : vector<16x16xf32>
    %cst_205 = arith.constant dense<0.000000e+00> : vector<16xf32>
    %698 = vector.multi_reduction <add>, %697, %cst_205 [1] : vector<16x16xf32> to vector<16xf32>
    %699 = vector.shape_cast %698 : vector<16xf32> to vector<16x1xf32>
    %700 = vector.broadcast %699 : vector<16x1xf32> to vector<16x16xf32>
    %701 = arith.divf %697, %700 : vector<16x16xf32>
    %702 = vector.broadcast %28 : vector<1x32xf32> to vector<16x32xf32>
    %703 = arith.mulf %636, %702 : vector<16x32xf32>
    %cst_206 = arith.constant dense<0.000000e+00> : vector<16x32xf32>
    %704 = tpu.matmul %701, %703, %cst_206 {dimension_numbers = #tpu.dot_dimension_numbers<[1], [0], [0], [1], [0, 0, 1, 1], [], []>} : vector<16x16xf32>, vector<16x32xf32>, vector<16x32xf32> -> vector<16x32xf32>
    %705 = arith.addf %688, %704 : vector<16x32xf32>
    %cst_207 = arith.constant dense<0.000000e+00> : vector<16x32xf32>
    %706 = tpu.matmul %705, %619, %cst_207 {dimension_numbers = #tpu.dot_dimension_numbers<[1], [0], [0], [1], [0, 0, 1, 1], [], []>} : vector<16x32xf32>, vector<32x32xf32>, vector<16x32xf32> -> vector<16x32xf32>
    %707 = arith.addf %613, %706 : vector<16x32xf32>
    %cst_208 = arith.constant dense<0.000000e+00> : vector<16xf32>
    %708 = vector.multi_reduction <add>, %707, %cst_208 [1] : vector<16x32xf32> to vector<16xf32>
    %709 = vector.shape_cast %708 : vector<16xf32> to vector<16x1xf32>
    %cst_209 = arith.constant 3.200000e+01 : f32
    %710 = vector.broadcast %cst_209 : f32 to vector<16x1xf32>
    %711 = arith.divf %709, %710 : vector<16x1xf32>
    %712 = vector.broadcast %711 : vector<16x1xf32> to vector<16x32xf32>
    %713 = arith.subf %707, %712 : vector<16x32xf32>
    %714 = arith.mulf %713, %713 : vector<16x32xf32>
    %cst_210 = arith.constant dense<0.000000e+00> : vector<16xf32>
    %715 = vector.multi_reduction <add>, %714, %cst_210 [1] : vector<16x32xf32> to vector<16xf32>
    %716 = vector.shape_cast %715 : vector<16xf32> to vector<16x1xf32>
    %cst_211 = arith.constant 3.200000e+01 : f32
    %717 = vector.broadcast %cst_211 : f32 to vector<16x1xf32>
    %718 = arith.divf %716, %717 : vector<16x1xf32>
    %719 = vector.broadcast %711 : vector<16x1xf32> to vector<16x32xf32>
    %720 = arith.subf %707, %719 : vector<16x32xf32>
    %cst_212 = arith.constant 9.99999974E-6 : f32
    %721 = vector.broadcast %cst_212 : f32 to vector<16x1xf32>
    %722 = arith.addf %718, %721 : vector<16x1xf32>
    %723 = math.rsqrt %722 : vector<16x1xf32>
    %724 = vector.broadcast %723 : vector<16x1xf32> to vector<16x32xf32>
    %725 = arith.mulf %720, %724 : vector<16x32xf32>
    %726 = vector.broadcast %624 : vector<1x32xf32> to vector<16x32xf32>
    %727 = arith.mulf %725, %726 : vector<16x32xf32>
    %728 = vector.broadcast %625 : vector<1x32xf32> to vector<16x32xf32>
    %729 = arith.addf %727, %728 : vector<16x32xf32>
    %cst_213 = arith.constant dense<0.000000e+00> : vector<16x64xf32>
    %730 = tpu.matmul %367, %618, %cst_213 {dimension_numbers = #tpu.dot_dimension_numbers<[1], [0], [0], [1], [0, 0, 1, 1], [], []>} : vector<16x32xf32>, vector<32x64xf32>, vector<16x64xf32> -> vector<16x64xf32>
    %cst_214 = arith.constant dense<0.000000e+00> : vector<16x32xf32>
    %731 = tpu.matmul %729, %620, %cst_214 {dimension_numbers = #tpu.dot_dimension_numbers<[1], [0], [0], [1], [0, 0, 1, 1], [], []>} : vector<16x32xf32>, vector<32x32xf32>, vector<16x32xf32> -> vector<16x32xf32>
    %732 = vector.extract_strided_slice %730 {offsets = [0, 0], sizes = [16, 32], strides = [1, 1]} : vector<16x64xf32> to vector<16x32xf32>
    %733 = vector.extract_strided_slice %730 {offsets = [0, 32], sizes = [16, 32], strides = [1, 1]} : vector<16x64xf32> to vector<16x32xf32>
    %cst_215 = arith.constant 0.000000e+00 : f32
    %734 = vector.broadcast %cst_215 : f32 to vector<16x32xf32>
    %735 = vector.broadcast %7 : vector<1x32xf32> to vector<16x32xf32>
    %736 = arith.mulf %732, %735 : vector<16x32xf32>
    %cst_216 = arith.constant dense<0.000000e+00> : vector<16x16xf32>
    %737 = tpu.matmul %731, %736, %cst_216 {dimension_numbers = #tpu.dot_dimension_numbers<[1], [1], [0], [0], [0, 0, 1, 0], [], []>} : vector<16x32xf32>, vector<16x32xf32>, vector<16x16xf32> -> vector<16x16xf32>
    %738 = arith.addf %737, %88 : vector<16x16xf32>
    %cst_217 = arith.constant dense<0xFF800000> : vector<16xf32>
    %739 = vector.multi_reduction <maximumf>, %738, %cst_217 [1] : vector<16x16xf32> to vector<16xf32>
    %740 = vector.shape_cast %739 : vector<16xf32> to vector<16x1xf32>
    %741 = vector.broadcast %740 : vector<16x1xf32> to vector<16x16xf32>
    %742 = arith.subf %738, %741 : vector<16x16xf32>
    %743 = math.exp %742 : vector<16x16xf32>
    %cst_218 = arith.constant dense<0.000000e+00> : vector<16xf32>
    %744 = vector.multi_reduction <add>, %743, %cst_218 [1] : vector<16x16xf32> to vector<16xf32>
    %745 = vector.shape_cast %744 : vector<16xf32> to vector<16x1xf32>
    %746 = vector.broadcast %745 : vector<16x1xf32> to vector<16x16xf32>
    %747 = arith.divf %743, %746 : vector<16x16xf32>
    %748 = vector.broadcast %7 : vector<1x32xf32> to vector<16x32xf32>
    %749 = arith.mulf %733, %748 : vector<16x32xf32>
    %cst_219 = arith.constant dense<0.000000e+00> : vector<16x32xf32>
    %750 = tpu.matmul %747, %749, %cst_219 {dimension_numbers = #tpu.dot_dimension_numbers<[1], [0], [0], [1], [0, 0, 1, 1], [], []>} : vector<16x16xf32>, vector<16x32xf32>, vector<16x32xf32> -> vector<16x32xf32>
    %751 = arith.addf %734, %750 : vector<16x32xf32>
    %752 = vector.broadcast %14 : vector<1x32xf32> to vector<16x32xf32>
    %753 = arith.mulf %732, %752 : vector<16x32xf32>
    %cst_220 = arith.constant dense<0.000000e+00> : vector<16x16xf32>
    %754 = tpu.matmul %731, %753, %cst_220 {dimension_numbers = #tpu.dot_dimension_numbers<[1], [1], [0], [0], [0, 0, 1, 0], [], []>} : vector<16x32xf32>, vector<16x32xf32>, vector<16x16xf32> -> vector<16x16xf32>
    %755 = arith.addf %754, %88 : vector<16x16xf32>
    %cst_221 = arith.constant dense<0xFF800000> : vector<16xf32>
    %756 = vector.multi_reduction <maximumf>, %755, %cst_221 [1] : vector<16x16xf32> to vector<16xf32>
    %757 = vector.shape_cast %756 : vector<16xf32> to vector<16x1xf32>
    %758 = vector.broadcast %757 : vector<16x1xf32> to vector<16x16xf32>
    %759 = arith.subf %755, %758 : vector<16x16xf32>
    %760 = math.exp %759 : vector<16x16xf32>
    %cst_222 = arith.constant dense<0.000000e+00> : vector<16xf32>
    %761 = vector.multi_reduction <add>, %760, %cst_222 [1] : vector<16x16xf32> to vector<16xf32>
    %762 = vector.shape_cast %761 : vector<16xf32> to vector<16x1xf32>
    %763 = vector.broadcast %762 : vector<16x1xf32> to vector<16x16xf32>
    %764 = arith.divf %760, %763 : vector<16x16xf32>
    %765 = vector.broadcast %14 : vector<1x32xf32> to vector<16x32xf32>
    %766 = arith.mulf %733, %765 : vector<16x32xf32>
    %cst_223 = arith.constant dense<0.000000e+00> : vector<16x32xf32>
    %767 = tpu.matmul %764, %766, %cst_223 {dimension_numbers = #tpu.dot_dimension_numbers<[1], [0], [0], [1], [0, 0, 1, 1], [], []>} : vector<16x16xf32>, vector<16x32xf32>, vector<16x32xf32> -> vector<16x32xf32>
    %768 = arith.addf %751, %767 : vector<16x32xf32>
    %769 = vector.broadcast %21 : vector<1x32xf32> to vector<16x32xf32>
    %770 = arith.mulf %732, %769 : vector<16x32xf32>
    %cst_224 = arith.constant dense<0.000000e+00> : vector<16x16xf32>
    %771 = tpu.matmul %731, %770, %cst_224 {dimension_numbers = #tpu.dot_dimension_numbers<[1], [1], [0], [0], [0, 0, 1, 0], [], []>} : vector<16x32xf32>, vector<16x32xf32>, vector<16x16xf32> -> vector<16x16xf32>
    %772 = arith.addf %771, %88 : vector<16x16xf32>
    %cst_225 = arith.constant dense<0xFF800000> : vector<16xf32>
    %773 = vector.multi_reduction <maximumf>, %772, %cst_225 [1] : vector<16x16xf32> to vector<16xf32>
    %774 = vector.shape_cast %773 : vector<16xf32> to vector<16x1xf32>
    %775 = vector.broadcast %774 : vector<16x1xf32> to vector<16x16xf32>
    %776 = arith.subf %772, %775 : vector<16x16xf32>
    %777 = math.exp %776 : vector<16x16xf32>
    %cst_226 = arith.constant dense<0.000000e+00> : vector<16xf32>
    %778 = vector.multi_reduction <add>, %777, %cst_226 [1] : vector<16x16xf32> to vector<16xf32>
    %779 = vector.shape_cast %778 : vector<16xf32> to vector<16x1xf32>
    %780 = vector.broadcast %779 : vector<16x1xf32> to vector<16x16xf32>
    %781 = arith.divf %777, %780 : vector<16x16xf32>
    %782 = vector.broadcast %21 : vector<1x32xf32> to vector<16x32xf32>
    %783 = arith.mulf %733, %782 : vector<16x32xf32>
    %cst_227 = arith.constant dense<0.000000e+00> : vector<16x32xf32>
    %784 = tpu.matmul %781, %783, %cst_227 {dimension_numbers = #tpu.dot_dimension_numbers<[1], [0], [0], [1], [0, 0, 1, 1], [], []>} : vector<16x16xf32>, vector<16x32xf32>, vector<16x32xf32> -> vector<16x32xf32>
    %785 = arith.addf %768, %784 : vector<16x32xf32>
    %786 = vector.broadcast %28 : vector<1x32xf32> to vector<16x32xf32>
    %787 = arith.mulf %732, %786 : vector<16x32xf32>
    %cst_228 = arith.constant dense<0.000000e+00> : vector<16x16xf32>
    %788 = tpu.matmul %731, %787, %cst_228 {dimension_numbers = #tpu.dot_dimension_numbers<[1], [1], [0], [0], [0, 0, 1, 0], [], []>} : vector<16x32xf32>, vector<16x32xf32>, vector<16x16xf32> -> vector<16x16xf32>
    %789 = arith.addf %788, %88 : vector<16x16xf32>
    %cst_229 = arith.constant dense<0xFF800000> : vector<16xf32>
    %790 = vector.multi_reduction <maximumf>, %789, %cst_229 [1] : vector<16x16xf32> to vector<16xf32>
    %791 = vector.shape_cast %790 : vector<16xf32> to vector<16x1xf32>
    %792 = vector.broadcast %791 : vector<16x1xf32> to vector<16x16xf32>
    %793 = arith.subf %789, %792 : vector<16x16xf32>
    %794 = math.exp %793 : vector<16x16xf32>
    %cst_230 = arith.constant dense<0.000000e+00> : vector<16xf32>
    %795 = vector.multi_reduction <add>, %794, %cst_230 [1] : vector<16x16xf32> to vector<16xf32>
    %796 = vector.shape_cast %795 : vector<16xf32> to vector<16x1xf32>
    %797 = vector.broadcast %796 : vector<16x1xf32> to vector<16x16xf32>
    %798 = arith.divf %794, %797 : vector<16x16xf32>
    %799 = vector.broadcast %28 : vector<1x32xf32> to vector<16x32xf32>
    %800 = arith.mulf %733, %799 : vector<16x32xf32>
    %cst_231 = arith.constant dense<0.000000e+00> : vector<16x32xf32>
    %801 = tpu.matmul %798, %800, %cst_231 {dimension_numbers = #tpu.dot_dimension_numbers<[1], [0], [0], [1], [0, 0, 1, 1], [], []>} : vector<16x16xf32>, vector<16x32xf32>, vector<16x32xf32> -> vector<16x32xf32>
    %802 = arith.addf %785, %801 : vector<16x32xf32>
    %cst_232 = arith.constant dense<0.000000e+00> : vector<16x32xf32>
    %803 = tpu.matmul %802, %621, %cst_232 {dimension_numbers = #tpu.dot_dimension_numbers<[1], [0], [0], [1], [0, 0, 1, 1], [], []>} : vector<16x32xf32>, vector<32x32xf32>, vector<16x32xf32> -> vector<16x32xf32>
    %804 = arith.addf %729, %803 : vector<16x32xf32>
    %cst_233 = arith.constant dense<0.000000e+00> : vector<16xf32>
    %805 = vector.multi_reduction <add>, %804, %cst_233 [1] : vector<16x32xf32> to vector<16xf32>
    %806 = vector.shape_cast %805 : vector<16xf32> to vector<16x1xf32>
    %cst_234 = arith.constant 3.200000e+01 : f32
    %807 = vector.broadcast %cst_234 : f32 to vector<16x1xf32>
    %808 = arith.divf %806, %807 : vector<16x1xf32>
    %809 = vector.broadcast %808 : vector<16x1xf32> to vector<16x32xf32>
    %810 = arith.subf %804, %809 : vector<16x32xf32>
    %811 = arith.mulf %810, %810 : vector<16x32xf32>
    %cst_235 = arith.constant dense<0.000000e+00> : vector<16xf32>
    %812 = vector.multi_reduction <add>, %811, %cst_235 [1] : vector<16x32xf32> to vector<16xf32>
    %813 = vector.shape_cast %812 : vector<16xf32> to vector<16x1xf32>
    %cst_236 = arith.constant 3.200000e+01 : f32
    %814 = vector.broadcast %cst_236 : f32 to vector<16x1xf32>
    %815 = arith.divf %813, %814 : vector<16x1xf32>
    %816 = vector.broadcast %808 : vector<16x1xf32> to vector<16x32xf32>
    %817 = arith.subf %804, %816 : vector<16x32xf32>
    %cst_237 = arith.constant 9.99999974E-6 : f32
    %818 = vector.broadcast %cst_237 : f32 to vector<16x1xf32>
    %819 = arith.addf %815, %818 : vector<16x1xf32>
    %820 = math.rsqrt %819 : vector<16x1xf32>
    %821 = vector.broadcast %820 : vector<16x1xf32> to vector<16x32xf32>
    %822 = arith.mulf %817, %821 : vector<16x32xf32>
    %823 = vector.broadcast %626 : vector<1x32xf32> to vector<16x32xf32>
    %824 = arith.mulf %822, %823 : vector<16x32xf32>
    %825 = vector.broadcast %627 : vector<1x32xf32> to vector<16x32xf32>
    %826 = arith.addf %824, %825 : vector<16x32xf32>
    %cst_238 = arith.constant dense<0.000000e+00> : vector<16x64xf32>
    %827 = tpu.matmul %826, %631, %cst_238 {dimension_numbers = #tpu.dot_dimension_numbers<[1], [0], [0], [1], [0, 0, 1, 1], [], []>} : vector<16x32xf32>, vector<32x64xf32>, vector<16x64xf32> -> vector<16x64xf32>
    %828 = vector.broadcast %632 : vector<1x64xf32> to vector<16x64xf32>
    %829 = arith.addf %827, %828 : vector<16x64xf32>
    %cst_239 = arith.constant 0.000000e+00 : f32
    %830 = vector.broadcast %cst_239 : f32 to vector<16x64xf32>
    %831 = arith.maximumf %829, %830 : vector<16x64xf32>
    %cst_240 = arith.constant dense<0.000000e+00> : vector<16x32xf32>
    %832 = tpu.matmul %831, %622, %cst_240 {dimension_numbers = #tpu.dot_dimension_numbers<[1], [0], [0], [1], [0, 0, 1, 1], [], []>} : vector<16x64xf32>, vector<64x32xf32>, vector<16x32xf32> -> vector<16x32xf32>
    %833 = vector.broadcast %630 : vector<1x32xf32> to vector<16x32xf32>
    %834 = arith.addf %832, %833 : vector<16x32xf32>
    %835 = arith.addf %826, %834 : vector<16x32xf32>
    %cst_241 = arith.constant dense<0.000000e+00> : vector<16xf32>
    %836 = vector.multi_reduction <add>, %835, %cst_241 [1] : vector<16x32xf32> to vector<16xf32>
    %837 = vector.shape_cast %836 : vector<16xf32> to vector<16x1xf32>
    %cst_242 = arith.constant 3.200000e+01 : f32
    %838 = vector.broadcast %cst_242 : f32 to vector<16x1xf32>
    %839 = arith.divf %837, %838 : vector<16x1xf32>
    %840 = vector.broadcast %839 : vector<16x1xf32> to vector<16x32xf32>
    %841 = arith.subf %835, %840 : vector<16x32xf32>
    %842 = arith.mulf %841, %841 : vector<16x32xf32>
    %cst_243 = arith.constant dense<0.000000e+00> : vector<16xf32>
    %843 = vector.multi_reduction <add>, %842, %cst_243 [1] : vector<16x32xf32> to vector<16xf32>
    %844 = vector.shape_cast %843 : vector<16xf32> to vector<16x1xf32>
    %cst_244 = arith.constant 3.200000e+01 : f32
    %845 = vector.broadcast %cst_244 : f32 to vector<16x1xf32>
    %846 = arith.divf %844, %845 : vector<16x1xf32>
    %847 = vector.broadcast %839 : vector<16x1xf32> to vector<16x32xf32>
    %848 = arith.subf %835, %847 : vector<16x32xf32>
    %cst_245 = arith.constant 9.99999974E-6 : f32
    %849 = vector.broadcast %cst_245 : f32 to vector<16x1xf32>
    %850 = arith.addf %846, %849 : vector<16x1xf32>
    %851 = math.rsqrt %850 : vector<16x1xf32>
    %852 = vector.broadcast %851 : vector<16x1xf32> to vector<16x32xf32>
    %853 = arith.mulf %848, %852 : vector<16x32xf32>
    %854 = vector.broadcast %628 : vector<1x32xf32> to vector<16x32xf32>
    %855 = arith.mulf %853, %854 : vector<16x32xf32>
    %856 = vector.broadcast %629 : vector<1x32xf32> to vector<16x32xf32>
    %857 = arith.addf %855, %856 : vector<16x32xf32>
    %c0_246 = arith.constant 0 : index
    %c0_247 = arith.constant 0 : index
    %858 = vector.load %arg8[%c0_246, %c0_247] : memref<40x128xf32, #tpu.memory_space<vmem>>, vector<32x128xf32>
    %c32_248 = arith.constant 32 : index
    %c0_249 = arith.constant 0 : index
    %859 = vector.load %arg8[%c32_248, %c0_249] : memref<40x128xf32, #tpu.memory_space<vmem>>, vector<1x128xf32>
    %cst_250 = arith.constant dense<0.000000e+00> : vector<16x128xf32>
    %860 = tpu.matmul %857, %858, %cst_250 {dimension_numbers = #tpu.dot_dimension_numbers<[1], [0], [0], [1], [0, 0, 1, 1], [], []>} : vector<16x32xf32>, vector<32x128xf32>, vector<16x128xf32> -> vector<16x128xf32>
    %861 = vector.broadcast %859 : vector<1x128xf32> to vector<16x128xf32>
    %862 = arith.addf %860, %861 : vector<16x128xf32>
    %c0_251 = arith.constant 0 : index
    %c0_252 = arith.constant 0 : index
    %863 = vector.load %arg11[%c0_251, %c0_252] : memref<16x128xf32, #tpu.memory_space<vmem>>, vector<16x128xf32>
    tpu.vector_store %arg11[%c0_251, %c0_252], %862 {strides = array<i32>} : memref<16x128xf32, #tpu.memory_space<vmem>>, vector<16x128xf32>,
    return
  }
  func.func @transform_0(%arg0: i32, %arg1: memref<2xi32, #tpu.memory_space<smem>>) -> (i32, i32) {
    %c0_i32 = arith.constant 0 : i32
    %c0_i32_0 = arith.constant 0 : i32
    %c0_i32_1 = arith.constant 0 : i32
    return %c0_i32, %c0_i32_0 : i32, i32
  }
  func.func @transform_1(%arg0: i32, %arg1: memref<2xi32, #tpu.memory_space<smem>>) -> (i32, i32) {
    %c0_i32 = arith.constant 0 : i32
    %c0_i32_0 = arith.constant 0 : i32
    %c0_i32_1 = arith.constant 0 : i32
    return %c0_i32, %c0_i32_0 : i32, i32
  }
  func.func @transform_2(%arg0: i32, %arg1: memref<2xi32, #tpu.memory_space<smem>>) -> (i32, i32) {
    %c0_i32 = arith.constant 0 : i32
    %c0_i32_0 = arith.constant 0 : i32
    %c0_i32_1 = arith.constant 0 : i32
    return %c0_i32, %c0_i32_0 : i32, i32
  }
  func.func @transform_3(%arg0: i32, %arg1: memref<2xi32, #tpu.memory_space<smem>>) -> (i32, i32) {
    %c0_i32 = arith.constant 0 : i32
    %c0_i32_0 = arith.constant 0 : i32
    %c0_i32_1 = arith.constant 0 : i32
    return %c0_i32, %c0_i32_0 : i32, i32
  }
  func.func @transform_4(%arg0: i32, %arg1: memref<2xi32, #tpu.memory_space<smem>>) -> (i32, i32) {
    %c0_i32 = arith.constant 0 : i32
    %c0_i32_0 = arith.constant 0 : i32
    %c0_i32_1 = arith.constant 0 : i32
    return %c0_i32, %c0_i32_0 : i32, i32
  }
  func.func @transform_5(%arg0: i32, %arg1: memref<2xi32, #tpu.memory_space<smem>>) -> (i32, i32) {
    %c0_i32 = arith.constant 0 : i32
    %c0_i32_0 = arith.constant 0 : i32
    %c0_i32_1 = arith.constant 0 : i32
    return %c0_i32, %c0_i32_0 : i32, i32
  }
  func.func @transform_6(%arg0: i32, %arg1: memref<2xi32, #tpu.memory_space<smem>>) -> (i32, i32) {
    %c0_i32 = arith.constant 0 : i32
    %c0_i32_0 = arith.constant 0 : i32
    %c0_i32_1 = arith.constant 0 : i32
    return %c0_i32, %c0_i32_0 : i32, i32
  }
  func.func @transform_7(%arg0: i32, %arg1: memref<2xi32, #tpu.memory_space<smem>>) -> (i32, i32) {
    %c0_i32 = arith.constant 0 : i32
    %c0_i32_0 = arith.constant 0 : i32
    %c0_i32_1 = arith.constant 0 : i32
    return %c0_i32, %c0_i32_0 : i32, i32
  }
  func.func @transform_8(%arg0: i32, %arg1: memref<2xi32, #tpu.memory_space<smem>>) -> (i32, i32, i32) {
    %c0_i32 = arith.constant 0 : i32
    %c0_i32_0 = arith.constant 0 : i32
    %c0_i32_1 = arith.constant 0 : i32
    %c0_i32_2 = arith.constant 0 : i32
    return %c0_i32, %c0_i32_0, %c0_i32_1 : i32, i32, i32
  }
  func.func @transform_9(%arg0: i32, %arg1: memref<2xi32, #tpu.memory_space<smem>>) -> (i32, i32) {
    %c0_i32 = arith.constant 0 : i32
    %c0_i32_0 = arith.constant 0 : i32
    %c0_i32_1 = arith.constant 0 : i32
    return %c0_i32, %c0_i32_0 : i32, i32
  }
}

</mosaic_0001>

<bundles_post_ra>
// kernel: tpu_custom_call.1
= control target key start
LH: loop header
LB: loop body
LE: loop exit
PB: predicated region body
PF: predicated region fallthrough
CT: control target
= control target key end

     0   :  { %s10410_s0 = inlined_call_operand.vmem [shape: s32[2], index: 0, kind: input, shape index: {}]   ;;  %s10411_s1 = inlined_call_operand.vmem [shape: f32[16,32], index: 1, kind: input, shape index: {}]   ;;  %s10412_s2 = inlined_call_operand.vmem [shape: f32[16,32], index: 2, kind: input, shape index: {}]   ;;  %s10413_s3 = inlined_call_operand.vmem [shape: f32[128,96], index: 3, kind: input, shape index: {}]   ;;  %s10414_s4 = inlined_call_operand.vmem [shape: f32[64,64], index: 4, kind: input, shape index: {}]   ;;  %s10415_s5 = inlined_call_operand.vmem [shape: f32[544,32], index: 5, kind: input, shape index: {}]   ;;  %s10416_s6 = inlined_call_operand.vmem [shape: f32[160,64], index: 6, kind: input, shape index: {}]   ;;  %s10417_s7 = inlined_call_operand.vmem [shape: f32[40,128], index: 7, kind: input, shape index: {}]   ;;  %s10418_s8 = inlined_call_operand.hbm [shape: f32[16,32], index: 8, kind: output, shape index: {0}]   ;;  %s10419_s9 = inlined_call_operand.hbm [shape: f32[2,16,32], index: 9, kind: output, shape index: {1}]   ;;  %s10420_s10 = inlined_call_operand.hbm [shape: f32[16,128], index: 10, kind: output, shape index: {2}]  }
   0x1   :  { %s16_s15 = sshll.u32 %s10410_s0, 4  ;;  %s17_s15 = int_to_ptr.vmem [resolvable:$true] %s16_s15 }
   0x2   :  { %s8835_s16 = scalar_lea.vmem %s17_s15, 16  ;;  %p8840_p1 = scmp.lt.s32.totalorder %s17_s15, %s17_s15 }
   0x3   :  { %p8836_p0 = scmp.ne.s32.totalorder %s17_s15, %s8835_s16  ;;  %p8841_p2 = scmp.lt.s32.totalorder %s8835_s16, %s8835_s16 }
   0x5   :  { %p8842_p3 = por %p8841_p2, %p8840_p1 }
   0x7   :  { %p8843_p4 = pnand %p8842_p3, %p8836_p0 }
   0x9   :  { %8846 = shalt.err (!%p8843_p4)  }
   0xa   :  { %s8913_s17 = smov [#allocation3]  }
   0xb   :  { %19 = dma.vmem_to_smem %s17_s15, 16, %s8913_s17, [#allocation2] }
   0xc   :  { %8907 = dma.done.wait [#allocation2], 16 }
   0xd   :  { %8908 = vsyncadd [#allocation2], 4294967280 }
   0xe   :  { %21 = sfence }
   0xf   :  { %22 = vsyncpa [#allocation5], 0  ;;  %v90_v0 = vld [vmem:[%s10413_s3 + $0x18] sm:$0xff]  ;;  %v89_v1 = vld [vmem:[%s10413_s3 + $0x10] sm:$0xff]  ;;  %vm109_vm0 = vcmask 261120   ;;  %v38_v2 = vlaneseq }
  0x10   :  { %7970 = vmatprep.subr.mxu0 %v90_v0  ;;  %v8992_v3 = vld [vmem:[%s10411_s1] sm:$0xff]  ;;  %v88_v4 = vld [vmem:[%s10413_s3 + $0x8] sm:$0xff] }
  0x11   :  { %7971 = vmatpush3.msra.mxu0 %v90_v0  ;;  %7978 = vmatprep.mubr.msk.f32.mxu0 %vm109_vm0, %v8992_v3  ;;  %v9000_v5 = vand.u32 127, %v38_v2 }
  0x12   :  { %23 = vsyncpa [#allocation7], 0  ;;  %7972 = vmatprep.subr.mxu0 %v89_v1  ;;  %v87_v6 = vld [vmem:[%s10413_s3] sm:$0xff]  ;;  %v9015_v7 = vld [vmem:[%s10411_s1 + $0x8] sm:$0xff]  ;;  %v8914_v8 = vmov 0.0   ;;  %s8915_s29 = smov 32  }
  0x13   :  { %7973 = vmatpush3.msra.mxu0 %v89_v1  ;;  %vm45_vm1 = vcmp.ge.s32.totalorder %v9000_v5, 8  ;;  %vm46_vm2 = vcmp.lt.s32.totalorder %v9000_v5, 16  ;;  %vm50_vm3 = vcmp.ge.s32.totalorder %v9000_v5, 16  ;;  %vm51_vm4 = vcmp.lt.s32.totalorder %v9000_v5, 24  ;;  %s8916_s1 = smov 96   ;;  %s72_s30 = sld [smem:[#allocation3]] }
  0x14   :  { %7974 = vmatprep.subr.mxu0 %v88_v4  ;;  %vm47_vm5 = vmand %vm45_vm1, %vm46_vm2  ;;  %vm41_vm6 = vcmp.lt.s32.totalorder %v9000_v5, 8  ;;  %s7428_s11 = sld [smem:[#allocation3 + $0x1]]  ;;  %v8917_v29 = vmov 0   ;;  %v8918_v38 = vmov -1000000.0   ;;  %vm288_vm12 = vcmask 130048  }
  0x15   :  { %7975 = vmatpush3.msra.mxu0 %v88_v4  ;;  %v9018_v9 = vsel %vm47_vm5, 1.0, %v8914_v8  ;;  %vm52_vm7 = vmand %vm50_vm3, %vm51_vm4  ;;  %v9026_v11 = vsel %vm41_vm6, 1.0, %v8914_v8  ;;  %v62_v30 = vsel %vm45_vm1, 1, %v8917_v29  ;;  %s8919_s12 = smov 64   ;;  %vm55_vm13 = vcmp.ge.s32.totalorder %v9000_v5, 24  ;;  %s8920_s0 = smov [#allocation6]  }
  0x16   :  { %7976 = vmatprep.subr.mxu0 %v87_v6  ;;  %317 = vrot.lane.b32.xlu0 %v9018_v9, %s8915_s29  ;;  %v9023_v10 = vsel %vm52_vm7, 1.0, %v8914_v8  ;;  %vm9090_vm8 = vmneg %vm45_vm1  ;;  %v63_v33 = vmul.u32 8, %v62_v30  ;;  %vm56_vm14 = vcmp.lt.s32.totalorder %v9000_v5, 32  ;;  %vm1243_vm2 = vcmask 523264   ;;  %s7393_s21 = sshll.u32 %s8920_s0, 4  ;;  %s8921_s22 = smov [#allocation4]   ;;  %s7394_s21 = int_to_ptr.vmem [resolvable:$true] %s7393_s21 }
  0x17   :  { %7977 = vmatpush3.msra.mxu0 %v87_v6  ;;  %613 = vrot.lane.b32.xlu1 %v9023_v10, %s8915_s29  ;;  %vm57_vm15 = vmand %vm55_vm13, %vm56_vm14  ;;  %s7381_s23 = sshll.u32 %s8921_s22, 4  ;;  %p8852_p6 = scmp.lt.s32.totalorder %s7394_s21, %s7394_s21  ;;  %s7382_s23 = int_to_ptr.vmem [resolvable:$true] %s7381_s23 }
  0x18   :  { %7979 = vmatmul.mubr.msk.f32.vlgmr.msra.gmra.mxu0 %vm109_vm0, %v9015_v7  ;;  %v9097_v36 = vsub.s32 %v9000_v5, %v63_v33  ;;  %v9133_v59 = vsel %vm57_vm15, 1.0, %v8914_v8 }
  0x19   :  { %v73_v32 = vstv %s72_s30 }
  0x1a   :  { %192 = vrot.lane.b32.xlu0 %v9026_v11, %s8915_s29  ;;  %v74_v34 = vsel %vm9090_vm8, %v73_v32, 0  ;;  %v76_v35 = vstv %s7428_s11 }
  0x1b   :  { %v77_v37 = vsel %vm45_vm1, %v76_v35, %v74_v34 }
  0x1c   :  { %vm78_vm9 = vcmp.lt.s32.totalorder %v9097_v36, %v77_v37 }
  0x1d   :  { %vm82_vm10 = vmand %vm45_vm1, %vm78_vm9 }
  0x1e   :  { %vm81_vm11 = vmand %vm9090_vm8, %vm78_vm9  ;;  %v9107_v39 = vsel %vm82_vm10, 0.0, %v8918_v38 }
  0x1f   :  { %v9110_v40 = vsel %vm81_vm11, 0.0, %v8918_v38 }
  0x88   :  { %v9034_v12 = vpop.permute.xlu0 %317 }
  0x89   :  { %v9056_v20 = vpop.permute.xlu1 %613 }
  0x8c   :  { %v9036_v13 = vpop.permute.xlu0 %192 }
  0xd8   :  { %v9038_v14 = vpop.f32.mrf.mxu0 }
  0xd9   :  { %v321_v15 = vmul.f32 %v9038_v14, %v9034_v12  ;;  %v196_v16 = vmul.f32 %v9038_v14, %v9036_v13  ;;  %v617_v21 = vmul.f32 %v9038_v14, %v9056_v20 }
  0xda   :  { %v9044_v17 = vpop.f32.mrf.mxu0 }
  0xdb   :  { %7985 = vmatprep.mubr.msk.f32.mxu1 %vm109_vm0, %v9044_v17  ;;  %7992 = vmatprep.mubr.msk.f32.mxu0 %vm109_vm0, %v9044_v17  ;;  %v320_v18 = vmul.f32 %v9034_v12, %v9044_v17  ;;  %v195_v19 = vmul.f32 %v9036_v13, %v9044_v17  ;;  %v616_v22 = vmul.f32 %v9056_v20, %v9044_v17 }
  0xdc   :  { %326 = vrot.lane.b32.xlu1 %v321_v15, %s8916_s1  ;;  %201 = vrot.lane.b32.xlu0 %v196_v16, %s8916_s1 }
  0xe0   :  { %324 = vrot.lane.b32.xlu1 %v320_v18, %s8916_s1  ;;  %199 = vrot.lane.b32.xlu0 %v195_v19, %s8916_s1 }
  0xe4   :  { %622 = vrot.lane.b32.xlu1 %v617_v21, %s8916_s1  ;;  %620 = vrot.lane.b32.xlu0 %v616_v22, %s8916_s1 }
 0x14e   :  { %v327_v23 = vpop.permute.xlu1 %326  ;;  %v202_v24 = vpop.permute.xlu0 %201 }
 0x14f   :  { %7981 = vmatprep.subr.msk.mxu1 %vm109_vm0, %v202_v24  ;;  %7988 = vmatprep.subr.msk.mxu0 %vm109_vm0, %v327_v23 }
 0x150   :  { %7982 = vmatpush3.xpose.msk.msra.mxu1 %vm109_vm0, %v202_v24  ;;  %7989 = vmatpush3.xpose.msk.msra.mxu0 %vm109_vm0, %v327_v23 }
 0x152   :  { %v325_v25 = vpop.permute.xlu1 %324  ;;  %v200_v26 = vpop.permute.xlu0 %199 }
 0x153   :  { %7983 = vmatprep.subr.msk.mxu1 %vm109_vm0, %v200_v26  ;;  %7990 = vmatprep.subr.msk.mxu0 %vm109_vm0, %v325_v25 }
 0x154   :  { %7984 = vmatpush3.xpose.msk.msra.mxu1 %vm109_vm0, %v200_v26  ;;  %7991 = vmatpush3.xpose.msk.msra.mxu0 %vm109_vm0, %v325_v25 }
 0x156   :  { %v623_v27 = vpop.permute.xlu1 %622  ;;  %v621_v28 = vpop.permute.xlu0 %620 }
 0x157   :  { %7986 = vmatmul.mubr.msk.f32.vlgmr.msra.gmra.mxu1 %vm109_vm0, %v9038_v14  ;;  %7993 = vmatmul.mubr.msk.f32.vlgmr.msra.gmra.mxu0 %vm109_vm0, %v9038_v14 }
 0x158   :  { %8009 = vmatprep.subr.msk.mxu0 %vm109_vm0, %v623_v27  ;;  %8013 = vmatprep.mubr.msk.f32.mxu0 %vm109_vm0, %v9044_v17 }
 0x159   :  { %8010 = vmatpush3.xpose.msk.msra.mxu0 %vm109_vm0, %v623_v27 }
 0x15a   :  { %8011 = vmatprep.subr.msk.mxu0 %vm109_vm0, %v621_v28 }
 0x15d   :  { %8012 = vmatpush3.xpose.msk.msra.mxu0 %vm109_vm0, %v621_v28 }
 0x160   :  { %8014 = vmatmul.mubr.msk.f32.vlgmr.msra.gmra.mxu0 %vm109_vm0, %v9038_v14 }
 0x217   :  { %v7987_v41 = vpop.f32.mrf.mxu1  ;;  %v7994_v42 = vpop.f32.mrf.mxu0 }
 0x218   :  { %v404_v43 = vadd.f32 %v7994_v42, %v9107_v39  ;;  %v285_v49 = vadd.f32 %v7987_v41, %v9107_v39 }
 0x219   :  { %v279_v44 = vpop.f32.mrf.mxu1  ;;  %v398_v45 = vpop.f32.mrf.mxu0 }
 0x21a   :  { %v280_v46 = vadd.f32 %v279_v44, %v9110_v40  ;;  %v399_v47 = vadd.f32 %v398_v45, %v9110_v40  ;;  %v410_v48 = vsel %vm288_vm12, %v404_v43, -inf  ;;  %v292_v53 = vsel %vm288_vm12, %v285_v49, -inf }
 0x21b   :  { %411 = vmax.xlane.f32.xlu0 %v410_v48 }
 0x21c   :  { %v407_v50 = vsel %vm288_vm12, %v399_v47, -inf  ;;  %v289_v51 = vsel %vm288_vm12, %v280_v46, -inf }
 0x21d   :  { %408 = vmax.xlane.f32.xlu1 %v407_v50 }
 0x21f   :  { %290 = vmax.xlane.f32.xlu0 %v289_v51 }
 0x220   :  { %v8015_v52 = vpop.f32.mrf.mxu0 }
 0x221   :  { %v700_v54 = vadd.f32 %v8015_v52, %v9107_v39  ;;  %293 = vmax.xlane.f32.xlu1 %v292_v53 }
 0x222   :  { %v694_v55 = vpop.f32.mrf.mxu0 }
 0x223   :  { %v695_v56 = vadd.f32 %v694_v55, %v9110_v40  ;;  %v706_v57 = vsel %vm288_vm12, %v700_v54, -inf }
 0x225   :  { %707 = vmax.xlane.f32.xlu1 %v706_v57  ;;  %v703_v58 = vsel %vm288_vm12, %v695_v56, -inf }
 0x226   :  { %704 = vmax.xlane.f32.xlu0 %v703_v58 }
 0x236   :  { %311 = vrot.lane.b32.xlu1 %v9026_v11, %s8919_s12 }
 0x23a   :  { %725 = vrot.lane.b32.xlu1 %v9023_v10, %s8919_s12 }
 0x23c   :  { %429 = vrot.lane.b32.xlu0 %v9018_v9, %s8919_s12 }
 0x240   :  { %822 = vrot.lane.b32.xlu0 %v9133_v59, %s8915_s29 }
 0x2a4   :  { %v412_v60 = vpop.xlane.xlu0 %411 }
 0x2a5   :  { %v414_v22 = vsub.f32 %v404_v43, %v412_v60 }
 0x2a6   :  { %v409_v61 = vpop.xlane.xlu1 %408 }
 0x2a7   :  { %v417_v23 = vmul.f32 1.442695, %v414_v22  ;;  %v413_v29 = vsub.f32 %v399_v47, %v409_v61 }
 0x2a8   :  { %v291_v63 = vpop.xlane.xlu0 %290 }
 0x2a9   :  { %v295_v24 = vsub.f32 %v280_v46, %v291_v63  ;;  %8603 = vpow2.f32 %v417_v23  ;;  %v415_v32 = vmul.f32 1.442695, %v413_v29 }
 0x2aa   :  { %v294_v62 = vpop.xlane.xlu1 %293 }
 0x2ab   :  { %v297_v25 = vmul.f32 1.442695, %v295_v24  ;;  %v296_v27 = vsub.f32 %v285_v49, %v294_v62 }
 0x2ad   :  { %8605 = vpow2.f32 %v297_v25  ;;  %v299_v30 = vmul.f32 1.442695, %v296_v27 }
 0x2ae   :  { %v708_v0 = vpop.xlane.xlu1 %707 }
 0x2af   :  { %v705_v1 = vpop.xlane.xlu0 %704  ;;  %v710_v33 = vsub.f32 %v700_v54, %v708_v0 }
 0x2b0   :  { %v709_v26 = vsub.f32 %v695_v56, %v705_v1 }
 0x2b1   :  { %v713_v35 = vmul.f32 1.442695, %v710_v33 }
 0x2b2   :  { %v9137_v4 = vpop.permute.xlu1 %311  ;;  %v711_v28 = vmul.f32 1.442695, %v709_v26 }
 0x2b3   :  { %v9139_v6 = vpop.permute.xlu0 %429  ;;  %v314_v16 = vmul.f32 %v9137_v4, %v9044_v17  ;;  %v315_v18 = vmul.f32 %v9038_v14, %v9137_v4 }
 0x2b4   :  { %v433_v15 = vmul.f32 %v9038_v14, %v9139_v6  ;;  %v432_v8 = vmul.f32 %v9139_v6, %v9044_v17  ;;  %8607 = vpow2.f32 %v711_v28 }
 0x2b5   :  { %8609 = vpow2.f32 %v299_v30 }
 0x2b6   :  { %438 = vrot.lane.b32.xlu0 %v433_v15, %s8919_s12  ;;  %436 = vrot.lane.b32.xlu1 %v432_v8, %s8919_s12  ;;  %v9151_v19 = vpop.permute.xlu1 %725  ;;  %v8604_v34 = vpop.eup %8603  ;;  %8611 = vpow2.f32 %v415_v32 }
 0x2b7   :  { %v729_v21 = vmul.f32 %v9038_v14, %v9151_v19  ;;  %v422_v37 = vsel %vm288_vm12, %v8604_v34, 0.0  ;;  %8613 = vpow2.f32 %v713_v35  ;;  %v728_v51 = vmul.f32 %v9151_v19, %v9044_v17  ;;  %v9166_v52 = vpop.permute.xlu0 %822 }
 0x2b8   :  { %v826_v53 = vmul.f32 %v9038_v14, %v9166_v52  ;;  %v825_v54 = vmul.f32 %v9166_v52, %v9044_v17 }
 0x2ba   :  { %525 = vrot.lane.b32.xlu0 %v314_v16, %s8919_s12  ;;  %527 = vrot.lane.b32.xlu1 %v315_v18, %s8919_s12  ;;  %v8606_v41 = vpop.eup %8605 }
 0x2bb   :  { %v301_v42 = vsel %vm288_vm12, %v8606_v41, 0.0 }
 0x2be   :  { %734 = vrot.lane.b32.xlu1 %v729_v21, %s8919_s12 }
 0x2c1   :  { %v8608_v43 = vpop.eup %8607 }
 0x2c2   :  { %v8610_v44 = vpop.eup %8609  ;;  %v715_v45 = vsel %vm288_vm12, %v8608_v43, 0.0 }
 0x2c3   :  { %v304_v46 = vsel %vm288_vm12, %v8610_v44, 0.0  ;;  %v8612_v47 = vpop.eup %8611 }
 0x2c4   :  { %v419_v48 = vsel %vm288_vm12, %v8612_v47, 0.0  ;;  %v8614_v49 = vpop.eup %8613 }
 0x2c5   :  { %v718_v50 = vsel %vm288_vm12, %v8614_v49, 0.0 }
 0x2d9   :  { %423 = vadd.xlane.f32.xlu0 %v422_v37 }
 0x2dd   :  { %302 = vadd.xlane.f32.xlu0 %v301_v42 }
 0x2e1   :  { %716 = vadd.xlane.f32.xlu0 %v715_v45 }
 0x2e2   :  { %305 = vadd.xlane.f32.xlu1 %v304_v46 }
 0x2e6   :  { %420 = vadd.xlane.f32.xlu1 %v419_v48 }
 0x2ea   :  { %719 = vadd.xlane.f32.xlu1 %v718_v50 }
 0x2f7   :  { %732 = vrot.lane.b32.xlu0 %v728_v51, %s8919_s12 }
 0x2fb   :  { %831 = vrot.lane.b32.xlu1 %v826_v53, %s8916_s1  ;;  %829 = vrot.lane.b32.xlu0 %v825_v54, %s8916_s1 }
 0x328   :  { %v437_v55 = vpop.permute.xlu1 %436  ;;  %v439_v56 = vpop.permute.xlu0 %438 }
 0x329   :  { %7995 = vmatprep.subr.mxu1 %v439_v56 }
 0x32a   :  { %7996 = vmatpush3.msra.mxu1 %v439_v56 }
 0x32b   :  { %7997 = vmatprep.subr.mxu1 %v437_v55 }
 0x32c   :  { %v528_v57 = vpop.permute.xlu1 %527  ;;  %7998 = vmatpush3.msra.mxu1 %v437_v55  ;;  %v526_v58 = vpop.permute.xlu0 %525 }
 0x32d   :  { %8002 = vmatprep.subr.mxu1 %v528_v57 }
 0x330   :  { %v735_v61 = vpop.permute.xlu1 %734 }
 0x362   :  { %v424_v60 = vpop.xlane.xlu0 %423 }
 0x363   :  { %8615 = vrcp.f32 %v424_v60 }
 0x366   :  { %v303_v62 = vpop.xlane.xlu0 %302 }
 0x367   :  { %8617 = vrcp.f32 %v303_v62 }
 0x36a   :  { %v717_v1 = vpop.xlane.xlu0 %716 }
 0x36b   :  { %v306_v63 = vpop.xlane.xlu1 %305 }
 0x36e   :  { %v733_v28 = vpop.permute.xlu0 %732 }
 0x36f   :  { %v421_v0 = vpop.xlane.xlu1 %420 }
 0x370   :  { %8619 = vrcp.f32 %v421_v0  ;;  %v8616_v8 = vpop.eup %8615 }
 0x371   :  { %8621 = vrcp.f32 %v306_v63  ;;  %v428_v22 = vmul.f32 %v8616_v8, %v8604_v34 }
 0x372   :  { %8623 = vrcp.f32 %v717_v1  ;;  %v830_v33 = vpop.permute.xlu0 %829 }
 0x373   :  { %v720_v15 = vpop.xlane.xlu1 %719 }
 0x374   :  { %8625 = vrcp.f32 %v720_v15  ;;  %v8618_v16 = vpop.eup %8617 }
 0x375   :  { %v308_v24 = vmul.f32 %v8618_v16, %v8606_v41 }
 0x377   :  { %v832_v32 = vpop.permute.xlu1 %831 }
 0x37d   :  { %v8620_v18 = vpop.eup %8619 }
 0x37e   :  { %v426_v21 = vmul.f32 %v8620_v18, %v8612_v47  ;;  %v8622_v23 = vpop.eup %8621 }
 0x37f   :  { %v8624_v25 = vpop.eup %8623  ;;  %v310_v26 = vmul.f32 %v8622_v23, %v8610_v44 }
 0x380   :  { %7999 = vmatprep.mubr.msk.f32.mxu1 %vm288_vm12, %v426_v21  ;;  %v722_v29 = vmul.f32 %v8624_v25, %v8608_v43 }
 0x381   :  { %8000 = vmatmul.mubr.msk.f32.vlgmr.msra.gmra.mxu1 %vm288_vm12, %v428_v22  ;;  %v8626_v27 = vpop.eup %8625 }
 0x382   :  { %8003 = vmatpush3.msra.mxu1 %v528_v57  ;;  %8006 = vmatprep.mubr.msk.f32.mxu1 %vm288_vm12, %v308_v24  ;;  %v724_v30 = vmul.f32 %v8626_v27, %v8614_v49  ;;  %v93_v27 = vld [vmem:[%s10415_s5 + $0x10] sm:$0xff] }
 0x383   :  { %8004 = vmatprep.subr.mxu1 %v526_v58 }
 0x384   :  { %8005 = vmatpush3.msra.mxu1 %v526_v58 }
 0x385   :  { %8016 = vmatprep.subr.mxu1 %v735_v61  ;;  %8007 = vmatmul.mubr.msk.f32.vlgmr.msra.gmra.mxu1 %vm288_vm12, %v310_v26 }
 0x386   :  { %8017 = vmatpush3.msra.mxu1 %v735_v61  ;;  %8020 = vmatprep.mubr.msk.f32.mxu1 %vm288_vm12, %v722_v29  ;;  %v91_v29 = vld [vmem:[%s10415_s5] sm:$0xff] }
 0x387   :  { %8018 = vmatprep.subr.mxu1 %v733_v28 }
 0x388   :  { %8019 = vmatpush3.msra.mxu1 %v733_v28  ;;  %v92_v28 = vld [vmem:[%s10415_s5 + $0x8] sm:$0xff] }
 0x389   :  { %8023 = vmatprep.subr.msk.mxu1 %vm109_vm0, %v832_v32  ;;  %8021 = vmatmul.mubr.msk.f32.vlgmr.msra.gmra.mxu1 %vm288_vm12, %v724_v30 }
 0x38a   :  { %8024 = vmatpush3.xpose.msk.msra.mxu1 %vm109_vm0, %v832_v32  ;;  %8027 = vmatprep.mubr.msk.f32.mxu1 %vm109_vm0, %v9044_v17 }
 0x38b   :  { %8025 = vmatprep.subr.msk.mxu1 %vm109_vm0, %v830_v33 }
 0x38e   :  { %8026 = vmatpush3.xpose.msk.msra.mxu1 %vm109_vm0, %v830_v33 }
 0x391   :  { %8028 = vmatmul.mubr.msk.f32.vlgmr.msra.gmra.mxu1 %vm109_vm0, %v9038_v14 }
 0x441   :  { %v8001_v34 = vpop.f32.mrf.mxu1 }
 0x443   :  { %v514_v35 = vpop.f32.mrf.mxu1 }
 0x445   :  { %v8008_v37 = vpop.f32.mrf.mxu1 }
 0x446   :  { %v609_v41 = vadd.f32 %v8008_v37, %v8001_v34 }
 0x447   :  { %v603_v42 = vpop.f32.mrf.mxu1 }
 0x448   :  { %v604_v43 = vadd.f32 %v603_v42, %v514_v35 }
 0x449   :  { %v8022_v44 = vpop.f32.mrf.mxu1 }
 0x44a   :  { %v820_v45 = vadd.f32 %v8022_v44, %v609_v41 }
 0x44b   :  { %v810_v46 = vpop.f32.mrf.mxu1 }
 0x44c   :  { %v819_v47 = vadd.f32 %v810_v46, %v604_v43 }
 0x451   :  { %v8029_v48 = vpop.f32.mrf.mxu1 }
 0x452   :  { %v909_v49 = vadd.f32 %v8029_v48, %v9107_v39 }
 0x453   :  { %v903_v50 = vpop.f32.mrf.mxu1 }
 0x454   :  { %v904_v51 = vadd.f32 %v903_v50, %v9110_v40  ;;  %v915_v53 = vsel %vm288_vm12, %v909_v49, -inf }
 0x455   :  { %916 = vmax.xlane.f32.xlu0 %v915_v53 }
 0x456   :  { %v912_v54 = vsel %vm288_vm12, %v904_v51, -inf }
 0x457   :  { %913 = vmax.xlane.f32.xlu1 %v912_v54 }
 0x46b   :  { %934 = vrot.lane.b32.xlu0 %v9133_v59, %s8919_s12 }
 0x4de   :  { %v917_v55 = vpop.xlane.xlu0 %916 }
 0x4df   :  { %v919_v56 = vsub.f32 %v909_v49, %v917_v55  ;;  %v106_v55 = vld [vmem:[%s10416_s6 + $0x10] sm:$0xff] }
 0x4e0   :  { %v914_v57 = vpop.xlane.xlu1 %913 }
 0x4e1   :  { %v922_v58 = vmul.f32 1.442695, %v919_v56  ;;  %v918_v60 = vsub.f32 %v904_v51, %v914_v57  ;;  %v105_v56 = vld [vmem:[%s10416_s6 + $0x8] sm:$0xff]  ;;  %v104_v57 = vld [vmem:[%s10416_s6] sm:$0xff] }
 0x4e2   :  { %v9195_v61 = vpop.permute.xlu0 %934 }
 0x4e3   :  { %8627 = vpow2.f32 %v922_v58  ;;  %v920_v62 = vmul.f32 1.442695, %v918_v60  ;;  %v937_v63 = vmul.f32 %v9195_v61, %v9044_v17  ;;  %v938_v16 = vmul.f32 %v9038_v14, %v9195_v61  ;;  %v94_v17 = vld [vmem:[%s10415_s5 + $0x18] sm:$0xff]  ;;  %v101_v60 = vld [vmem:[%s10415_s5 + $0x50] sm:$0xff] }
 0x4e4   :  { %8037 = vmatprep.subr.mxu0 %v94_v17  ;;  %v102_v58 = vld [vmem:[%s10415_s5 + $0x58] sm:$0xff] }
 0x4e5   :  { %8629 = vpow2.f32 %v920_v62  ;;  %941 = vrot.lane.b32.xlu0 %v937_v63, %s8919_s12  ;;  %8038 = vmatpush3.msra.mxu0 %v94_v17  ;;  %v100_v62 = vld [vmem:[%s10415_s5 + $0x48] sm:$0xff]  ;;  %v99_v63 = vld [vmem:[%s10415_s5 + $0x40] sm:$0xff] }
 0x4e6   :  { %8039 = vmatprep.subr.mxu0 %v93_v27 }
 0x4e7   :  { %8040 = vmatpush3.msra.mxu0 %v93_v27 }
 0x4e8   :  { %8041 = vmatprep.subr.mxu0 %v92_v28 }
 0x4e9   :  { %8042 = vmatpush3.msra.mxu0 %v92_v28 }
 0x4ea   :  { %8043 = vmatprep.subr.mxu0 %v91_v29 }
 0x4eb   :  { %8044 = vmatpush3.msra.mxu0 %v91_v29 }
 0x4ec   :  { %8059 = vmatprep.subr.mxu0 %v102_v58 }
 0x4f0   :  { %v8628_v0 = vpop.eup %8627 }
 0x4f1   :  { %v927_v1 = vsel %vm288_vm12, %v8628_v0, 0.0 }
 0x4f2   :  { %v8630_v15 = vpop.eup %8629  ;;  %928 = vadd.xlane.f32.xlu1 %v927_v1 }
 0x4f3   :  { %v924_v8 = vsel %vm288_vm12, %v8630_v15, 0.0 }
 0x4f6   :  { %925 = vadd.xlane.f32.xlu1 %v924_v8 }
 0x507   :  { %943 = vrot.lane.b32.xlu1 %v938_v16, %s8919_s12 }
 0x557   :  { %v942_v23 = vpop.permute.xlu0 %941 }
 0x57b   :  { %v929_v18 = vpop.xlane.xlu1 %928 }
 0x57c   :  { %8631 = vrcp.f32 %v929_v18  ;;  %v9252_v18 = vshrl.u32 %v38_v2, 7 }
 0x57e   :  { %vm67_vm3 = vcmp.le.s32.totalorder %v9097_v36, %v9252_v18 }
 0x57f   :  { %v926_v21 = vpop.xlane.xlu1 %925  ;;  %vm69_vm4 = vmand %vm45_vm1, %vm67_vm3 }
 0x580   :  { %8633 = vrcp.f32 %v926_v21  ;;  %v9255_v21 = vsub.s32 0, %v9252_v18  ;;  %vm68_vm5 = vmand %vm9090_vm8, %vm67_vm3 }
 0x583   :  { %v944_v22 = vpop.permute.xlu1 %943 }
 0x584   :  { %8030 = vmatprep.subr.mxu1 %v944_v22 }
 0x585   :  { %8031 = vmatpush3.msra.mxu1 %v944_v22  ;;  %v9260_v22 = vld [vmem:[%s10415_s5 + $0x60] sm:$0xff] }
 0x586   :  { %8032 = vmatprep.subr.mxu1 %v942_v23 }
 0x587   :  { %8033 = vmatpush3.msra.mxu1 %v942_v23  ;;  %v9263_v23 = vsub.s32 1, %v9252_v18 }
 0x589   :  { %v8632_v24 = vpop.eup %8631  ;;  %v1149_v2 = vrot.slane %v9260_v22, %v9263_v23 }
 0x58a   :  { %v933_v26 = vmul.f32 %v8632_v24, %v8628_v0  ;;  %v1143_v24 = vrot.slane %v9260_v22, %v9255_v21 }
 0x58d   :  { %v8634_v14 = vpop.eup %8633 }
 0x58e   :  { %v931_v25 = vmul.f32 %v8634_v14, %v8630_v15 }
 0x590   :  { %8034 = vmatprep.mubr.msk.f32.mxu1 %vm288_vm12, %v931_v25 }
 0x591   :  { %8035 = vmatmul.mubr.msk.f32.vlgmr.msra.gmra.mxu1 %vm288_vm12, %v933_v26 }
 0x651   :  { %v8036_v30 = vpop.f32.mrf.mxu1 }
 0x652   :  { %v1029_v34 = vadd.f32 %v8036_v30, %v820_v45 }
 0x653   :  { %v1019_v32 = vpop.f32.mrf.mxu1 }
 0x654   :  { %v1028_v33 = vadd.f32 %v1019_v32, %v819_v47 }
 0x656   :  { %8045 = vmatprep.mubr.msk.f32.mxu0 %vm109_vm0, %v1028_v33  ;;  %v98_v33 = vld [vmem:[%s10415_s5 + $0x38] sm:$0xff] }
 0x657   :  { %8046 = vmatmul.mubr.msk.f32.vlgmr.msra.gmra.mxu0 %vm109_vm0, %v1029_v34  ;;  %v97_v34 = vld [vmem:[%s10415_s5 + $0x30] sm:$0xff] }
 0x658   :  { %8060 = vmatpush3.msra.mxu0 %v102_v58 }
 0x659   :  { %8061 = vmatprep.subr.mxu0 %v101_v60 }
 0x65a   :  { %8062 = vmatpush3.msra.mxu0 %v101_v60 }
 0x65b   :  { %8063 = vmatprep.subr.mxu0 %v100_v62 }
 0x65c   :  { %8064 = vmatpush3.msra.mxu0 %v100_v62 }
 0x65d   :  { %8065 = vmatprep.subr.mxu0 %v99_v63 }
 0x65e   :  { %8066 = vmatpush3.msra.mxu0 %v99_v63 }
 0x65f   :  { %8067 = vmatprep.subr.mxu0 %v98_v33 }
 0x660   :  { %8068 = vmatpush3.msra.mxu0 %v98_v33 }
 0x661   :  { %8069 = vmatprep.subr.mxu0 %v97_v34 }
 0x662   :  { %8070 = vmatpush3.msra.mxu0 %v97_v34 }
 0x717   :  { %v8047_v35 = vpop.f32.mrf.mxu0 }
 0x718   :  { %v1112_v37 = vadd.f32 %v8047_v35, %v9015_v7  ;;  %v96_v35 = vld [vmem:[%s10415_s5 + $0x28] sm:$0xff] }
 0x719   :  { %v1102_v41 = vpop.f32.mrf.mxu0  ;;  %8071 = vmatprep.subr.mxu0 %v96_v35 }
 0x71a   :  { %v1111_v42 = vadd.f32 %v1102_v41, %v8992_v3  ;;  %v1116_v43 = vsel %vm109_vm0, %v1112_v37, 0.0  ;;  %v107_v3 = vld [vmem:[%s10416_s6 + $0x18] sm:$0xff]  ;;  %8072 = vmatpush3.msra.mxu0 %v96_v35  ;;  %v7457_v41 = vld [vmem:[%s10416_s6 + $0x20] ss:$0 sm:$0xff]  ;;  %v9315_v35 = vsub.s32 3, %v9252_v18 }
 0x71b   :  { %1117 = vadd.xlane.f32.xlu1 %v1116_v43  ;;  %8048 = vmatprep.subr.mxu1 %v107_v3 }
 0x71c   :  { %v1113_v44 = vsel %vm109_vm0, %v1111_v42, 0.0  ;;  %8049 = vmatpush3.msra.mxu1 %v107_v3 }
 0x71d   :  { %1114 = vadd.xlane.f32.xlu0 %v1113_v44  ;;  %8050 = vmatprep.subr.mxu1 %v106_v55 }
 0x71e   :  { %8051 = vmatpush3.msra.mxu1 %v106_v55 }
 0x71f   :  { %8052 = vmatprep.subr.mxu1 %v105_v56 }
 0x720   :  { %8053 = vmatpush3.msra.mxu1 %v105_v56 }
 0x721   :  { %8054 = vmatprep.subr.mxu1 %v104_v57 }
 0x722   :  { %8055 = vmatpush3.msra.mxu1 %v104_v57 }
 0x7a4   :  { %v1118_v46 = vpop.xlane.xlu1 %1117 }
 0x7a5   :  { %v1121_v48 = vmul.f32 0.03125, %v1118_v46 }
 0x7a6   :  { %v1115_v47 = vpop.xlane.xlu0 %1114 }
 0x7a7   :  { %v1120_v45 = vmul.f32 0.03125, %v1115_v47  ;;  %v1123_v49 = vsub.f32 %v1112_v37, %v1121_v48  ;;  %v95_v37 = vld [vmem:[%s10415_s5 + $0x20] sm:$0xff] }
 0x7a8   :  { %8073 = vmatprep.subr.mxu0 %v95_v37 }
 0x7a9   :  { %v1122_v50 = vsub.f32 %v1111_v42, %v1120_v45  ;;  %v1125_v54 = vmul.f32 %v1123_v49, %v1123_v49  ;;  %8074 = vmatpush3.msra.mxu0 %v95_v37  ;;  %v9289_v45 = vsub.s32 4, %v9252_v18 }
 0x7ab   :  { %v1124_v51 = vmul.f32 %v1122_v50, %v1122_v50  ;;  %v1129_v7 = vsel %vm109_vm0, %v1125_v54, 0.0 }
 0x7ad   :  { %v1126_v53 = vsel %vm109_vm0, %v1124_v51, 0.0 }
 0x7ae   :  { %1127 = vadd.xlane.f32.xlu0 %v1126_v53 }
 0x7b2   :  { %1130 = vadd.xlane.f32.xlu0 %v1129_v7 }
 0x837   :  { %v1128_v0 = vpop.xlane.xlu0 %1127 }
 0x838   :  { %v1132_v1 = vmul.f32 0.03125, %v1128_v0 }
 0x83a   :  { %v1134_v15 = vadd.f32 1e-05, %v1132_v1 }
 0x83b   :  { %v1131_v8 = vpop.xlane.xlu0 %1130 }
 0x83c   :  { %8635 = vrsqrt.f32 %v1134_v15  ;;  %v1133_v16 = vmul.f32 0.03125, %v1131_v8 }
 0x83e   :  { %v1135_v17 = vadd.f32 1e-05, %v1133_v16 }
 0x840   :  { %8637 = vrsqrt.f32 %v1135_v17  ;;  %v1368_v17 = vld [vmem:[%s10413_s3 + $0x38] sm:$0xff] }
 0x841   :  { %8078 = vmatprep.subr.mxu1 %v1368_v17 }
 0x849   :  { %v8636_v14 = vpop.eup %8635 }
 0x84a   :  { %v1138_v25 = vmul.f32 %v8636_v14, %v1122_v50  ;;  %v1366_v14 = vld [vmem:[%s10413_s3 + $0x28] sm:$0xff] }
 0x84c   :  { %v1144_v26 = vmul.f32 %v1143_v24, %v1138_v25  ;;  %v1365_v25 = vld [vmem:[%s10413_s3 + $0x20] sm:$0xff] }
 0x84d   :  { %v8638_v27 = vpop.eup %8637 }
 0x84e   :  { %v1139_v28 = vmul.f32 %v8638_v27, %v1123_v49  ;;  %v1150_v29 = vadd.f32 %v1149_v2, %v1144_v26  ;;  %v1242_v49 = vrot.slane %v9260_v22, %v9289_v45 }
 0x850   :  { %v1145_v30 = vmul.f32 %v1143_v24, %v1139_v28  ;;  %8056 = vmatprep.mubr.msk.f32.mxu1 %vm109_vm0, %v1150_v29  ;;  %v1367_v24 = vld [vmem:[%s10413_s3 + $0x30] sm:$0xff] }
 0x852   :  { %v1151_v32 = vadd.f32 %v1149_v2, %v1145_v30 }
 0x854   :  { %8057 = vmatmul.mubr.msk.f32.vlgmr.msra.gmra.mxu1 %vm109_vm0, %v1151_v32 }
 0x855   :  { %8079 = vmatpush3.msra.mxu1 %v1368_v17 }
 0x856   :  { %8080 = vmatprep.subr.mxu1 %v1367_v24 }
 0x857   :  { %8081 = vmatpush3.msra.mxu1 %v1367_v24 }
 0x858   :  { %8082 = vmatprep.subr.mxu1 %v1366_v14 }
 0x859   :  { %8083 = vmatpush3.msra.mxu1 %v1366_v14 }
 0x85a   :  { %8084 = vmatprep.subr.mxu1 %v1365_v25 }
 0x85b   :  { %8085 = vmatpush3.msra.mxu1 %v1365_v25 }
 0x914   :  { %v8058_v42 = vpop.f32.mrf.mxu1 }
 0x915   :  { %v1234_v43 = vadd.f32 %v8058_v42, %v7457_v41 }
 0x916   :  { %v1228_v44 = vpop.f32.mrf.mxu1 }
 0x917   :  { %v1229_v46 = vadd.f32 %v7457_v41, %v1228_v44  ;;  %v1238_v47 = vmax.f32 %v1234_v43, 0.0  ;;  %v1362_v44 = vrot.slane %v9260_v22, %v9315_v35 }
 0x919   :  { %v1237_v48 = vmax.f32 %v1229_v46, 0.0 }
 0x91b   :  { %8075 = vmatprep.mubr.msk.f32.mxu0 %vm1243_vm2, %v1237_v48 }
 0x91c   :  { %8076 = vmatmul.mubr.msk.f32.vlgmr.msra.gmra.mxu0 %vm1243_vm2, %v1238_v47 }
 0x9dc   :  { %v8077_v50 = vpop.f32.mrf.mxu0 }
 0x9dd   :  { %v1322_v51 = vadd.f32 %v8077_v50, %v1242_v49 }
 0x9de   :  { %v1316_v53 = vpop.f32.mrf.mxu0 }
 0x9df   :  { %v1317_v54 = vadd.f32 %v1316_v53, %v1242_v49  ;;  %v1326_v7 = vadd.f32 %v1322_v51, %v1151_v32  ;;  %v9310_v32 = vsub.s32 2, %v9252_v18 }
 0x9e1   :  { %v1330_v3 = vsel %vm109_vm0, %v1326_v7, 0.0  ;;  %v1325_v55 = vadd.f32 %v1317_v54, %v1150_v29  ;;  %v1356_v34 = vrot.slane %v9260_v22, %v9310_v32 }
 0x9e2   :  { %1331 = vadd.xlane.f32.xlu0 %v1330_v3 }
 0x9e3   :  { %v1327_v56 = vsel %vm109_vm0, %v1325_v55, 0.0 }
 0x9e4   :  { %1328 = vadd.xlane.f32.xlu1 %v1327_v56 }
 0xa6b   :  { %v1332_v57 = vpop.xlane.xlu0 %1331 }
 0xa6c   :  { %v1334_v58 = vmul.f32 0.03125, %v1332_v57 }
 0xa6d   :  { %v1329_v60 = vpop.xlane.xlu1 %1328 }
 0xa6e   :  { %v1336_v62 = vsub.f32 %v1326_v7, %v1334_v58  ;;  %v1333_v63 = vmul.f32 0.03125, %v1329_v60 }
 0xa70   :  { %v1335_v0 = vsub.f32 %v1325_v55, %v1333_v63  ;;  %v1338_v1 = vmul.f32 %v1336_v62, %v1336_v62 }
 0xa72   :  { %v1342_v15 = vsel %vm109_vm0, %v1338_v1, 0.0  ;;  %v1337_v8 = vmul.f32 %v1335_v0, %v1335_v0 }
 0xa73   :  { %1343 = vadd.xlane.f32.xlu0 %v1342_v15 }
 0xa74   :  { %v1339_v16 = vsel %vm109_vm0, %v1337_v8, 0.0 }
 0xa75   :  { %1340 = vadd.xlane.f32.xlu1 %v1339_v16 }
 0xafc   :  { %v1344_v2 = vpop.xlane.xlu0 %1343 }
 0xafd   :  { %v1346_v26 = vmul.f32 0.03125, %v1344_v2 }
 0xafe   :  { %v1341_v27 = vpop.xlane.xlu1 %1340 }
 0xaff   :  { %v1348_v28 = vadd.f32 1e-05, %v1346_v26  ;;  %v1345_v29 = vmul.f32 0.03125, %v1341_v27 }
 0xb01   :  { %8639 = vrsqrt.f32 %v1348_v28  ;;  %v1347_v30 = vadd.f32 1e-05, %v1345_v29 }
 0xb03   :  { %8641 = vrsqrt.f32 %v1347_v30 }
 0xb0e   :  { %v8640_v33 = vpop.eup %8639 }
 0xb0f   :  { %v1352_v37 = vmul.f32 %v8640_v33, %v1336_v62 }
 0xb10   :  { %v8642_v41 = vpop.eup %8641 }
 0xb11   :  { %v1351_v42 = vmul.f32 %v8642_v41, %v1335_v0  ;;  %v1358_v43 = vmul.f32 %v1356_v34, %v1352_v37 }
 0xb13   :  { %v1357_v46 = vmul.f32 %v1356_v34, %v1351_v42  ;;  %v9321_v47 = vadd.f32 %v1362_v44, %v1358_v43 }
 0xb15   :  { %v9319_v48 = vadd.f32 %v1362_v44, %v1357_v46 }
 0xb17   :  { %8086 = vmatprep.mubr.msk.f32.mxu1 %vm109_vm0, %v9319_v48 }
 0xb18   :  { %8087 = vmatmul.mubr.msk.f32.vlgmr.msra.gmra.mxu1 %vm109_vm0, %v9321_v47 }
 0xbd8   :  { %v9327_v49 = vpop.f32.mrf.mxu1 }
 0xbd9   :  { %v1586_v50 = vmul.f32 %v9327_v49, %v9034_v12  ;;  %v1469_v51 = vmul.f32 %v9327_v49, %v9036_v13  ;;  %v1875_v53 = vmul.f32 %v9327_v49, %v9056_v20  ;;  %v1695_v37 = vmul.f32 %v9327_v49, %v9139_v6 }
 0xbda   :  { %v9333_v22 = vpop.f32.mrf.mxu1  ;;  %v1584_v41 = vmul.f32 %v9327_v49, %v9137_v4  ;;  %v1984_v46 = vmul.f32 %v9327_v49, %v9151_v19 }
 0xbdb   :  { %1591 = vrot.lane.b32.xlu1 %v1586_v50, %s8916_s1  ;;  %1474 = vrot.lane.b32.xlu0 %v1469_v51, %s8916_s1  ;;  %v1585_v54 = vmul.f32 %v9333_v22, %v9034_v12  ;;  %v1468_v7 = vmul.f32 %v9333_v22, %v9036_v13  ;;  %v1874_v3 = vmul.f32 %v9333_v22, %v9056_v20 }
 0xbdc   :  { %8093 = vmatprep.mubr.msk.f32.mxu1 %vm109_vm0, %v9333_v22  ;;  %8100 = vmatprep.mubr.msk.f32.mxu0 %vm109_vm0, %v9333_v22  ;;  %v1583_v42 = vmul.f32 %v9333_v22, %v9137_v4  ;;  %v1694_v43 = vmul.f32 %v9333_v22, %v9139_v6  ;;  %v1983_v44 = vmul.f32 %v9333_v22, %v9151_v19 }
 0xbdf   :  { %1880 = vrot.lane.b32.xlu0 %v1875_v53, %s8916_s1  ;;  %1589 = vrot.lane.b32.xlu1 %v1585_v54, %s8916_s1 }
 0xbe3   :  { %1472 = vrot.lane.b32.xlu1 %v1468_v7, %s8916_s1 }
 0xbe7   :  { %1878 = vrot.lane.b32.xlu1 %v1874_v3, %s8916_s1 }
 0xc4d   :  { %v1592_v55 = vpop.permute.xlu1 %1591  ;;  %v1475_v56 = vpop.permute.xlu0 %1474 }
 0xc4e   :  { %8089 = vmatprep.subr.msk.mxu1 %vm109_vm0, %v1475_v56  ;;  %8096 = vmatprep.subr.msk.mxu0 %vm109_vm0, %v1592_v55 }
 0xc4f   :  { %8090 = vmatpush3.xpose.msk.msra.mxu1 %vm109_vm0, %v1475_v56  ;;  %8097 = vmatpush3.xpose.msk.msra.mxu0 %vm109_vm0, %v1592_v55 }
 0xc51   :  { %v1590_v57 = vpop.permute.xlu1 %1589  ;;  %v1881_v58 = vpop.permute.xlu0 %1880 }
 0xc52   :  { %8098 = vmatprep.subr.msk.mxu0 %vm109_vm0, %v1590_v57 }
 0xc53   :  { %8099 = vmatpush3.xpose.msk.msra.mxu0 %vm109_vm0, %v1590_v57 }
 0xc54   :  { %8117 = vmatprep.subr.msk.mxu0 %vm109_vm0, %v1881_v58 }
 0xc55   :  { %v1473_v60 = vpop.permute.xlu1 %1472 }
 0xc56   :  { %8091 = vmatprep.subr.msk.mxu1 %vm109_vm0, %v1473_v60  ;;  %8101 = vmatmul.mubr.msk.f32.vlgmr.msra.gmra.mxu0 %vm109_vm0, %v9327_v49 }
 0xc57   :  { %8092 = vmatpush3.xpose.msk.msra.mxu1 %vm109_vm0, %v1473_v60  ;;  %8118 = vmatpush3.xpose.msk.msra.mxu0 %vm109_vm0, %v1881_v58 }
 0xc58   :  { %8121 = vmatprep.mubr.msk.f32.mxu0 %vm109_vm0, %v9333_v22 }
 0xc59   :  { %v1879_v62 = vpop.permute.xlu1 %1878 }
 0xc5a   :  { %8094 = vmatmul.mubr.msk.f32.vlgmr.msra.gmra.mxu1 %vm109_vm0, %v9327_v49  ;;  %8119 = vmatprep.subr.msk.mxu0 %vm109_vm0, %v1879_v62 }
 0xc5b   :  { %8120 = vmatpush3.xpose.msk.msra.mxu0 %vm109_vm0, %v1879_v62 }
 0xc5e   :  { %8122 = vmatmul.mubr.msk.f32.vlgmr.msra.gmra.mxu0 %vm109_vm0, %v9327_v49 }
 0xd16   :  { %v8102_v63 = vpop.f32.mrf.mxu0 }
 0xd17   :  { %v1669_v0 = vadd.f32 %v8102_v63, %v9107_v39 }
 0xd18   :  { %v1663_v1 = vpop.f32.mrf.mxu0 }
 0xd19   :  { %v1664_v15 = vadd.f32 %v1663_v1, %v9110_v40  ;;  %v1675_v8 = vsel %vm288_vm12, %v1669_v0, -inf }
 0xd1a   :  { %1676 = vmax.xlane.f32.xlu1 %v1675_v8  ;;  %v8095_v16 = vpop.f32.mrf.mxu1 }
 0xd1b   :  { %v1672_v17 = vsel %vm288_vm12, %v1664_v15, -inf  ;;  %v1558_v2 = vadd.f32 %v8095_v16, %v9107_v39 }
 0xd1c   :  { %1673 = vmax.xlane.f32.xlu0 %v1672_v17  ;;  %v1552_v24 = vpop.f32.mrf.mxu1 }
 0xd1d   :  { %v1553_v14 = vadd.f32 %v1552_v24, %v9110_v40  ;;  %v1564_v30 = vsel %vm288_vm12, %v1558_v2, -inf }
 0xd1e   :  { %v8123_v25 = vpop.f32.mrf.mxu0 }
 0xd1f   :  { %v1561_v26 = vsel %vm288_vm12, %v1553_v14, -inf  ;;  %v1958_v29 = vadd.f32 %v8123_v25, %v9107_v39 }
 0xd20   :  { %1562 = vmax.xlane.f32.xlu0 %v1561_v26  ;;  %v1952_v27 = vpop.f32.mrf.mxu0 }
 0xd21   :  { %v1953_v28 = vadd.f32 %v1952_v27, %v9110_v40  ;;  %v1964_v34 = vsel %vm288_vm12, %v1958_v29, -inf }
 0xd23   :  { %v1961_v33 = vsel %vm288_vm12, %v1953_v28, -inf }
 0xd24   :  { %1565 = vmax.xlane.f32.xlu0 %v1564_v30  ;;  %1962 = vmax.xlane.f32.xlu1 %v1961_v33 }
 0xd28   :  { %1965 = vmax.xlane.f32.xlu0 %v1964_v34 }
 0xd35   :  { %1700 = vrot.lane.b32.xlu1 %v1695_v37, %s8919_s12 }
 0xd39   :  { %1789 = vrot.lane.b32.xlu1 %v1584_v41, %s8919_s12 }
 0xd3d   :  { %1787 = vrot.lane.b32.xlu1 %v1583_v42, %s8919_s12 }
 0xd3e   :  { %1698 = vrot.lane.b32.xlu0 %v1694_v43, %s8919_s12  ;;  %v2076_v43 = vmul.f32 %v9333_v22, %v9166_v52 }
 0xd41   :  { %1987 = vrot.lane.b32.xlu1 %v1983_v44, %s8919_s12  ;;  %v2077_v44 = vmul.f32 %v9327_v49, %v9166_v52 }
 0xd42   :  { %1989 = vrot.lane.b32.xlu0 %v1984_v46, %s8919_s12 }
 0xda3   :  { %v1677_v50 = vpop.xlane.xlu1 %1676 }
 0xda4   :  { %v1679_v51 = vsub.f32 %v1669_v0, %v1677_v50 }
 0xda5   :  { %v1674_v53 = vpop.xlane.xlu0 %1673 }
 0xda6   :  { %v1682_v54 = vmul.f32 1.442695, %v1679_v51  ;;  %v1678_v7 = vsub.f32 %v1664_v15, %v1674_v53 }
 0xda8   :  { %8643 = vpow2.f32 %v1682_v54  ;;  %v1680_v3 = vmul.f32 1.442695, %v1678_v7 }
 0xda9   :  { %v1563_v55 = vpop.xlane.xlu0 %1562 }
 0xdaa   :  { %8645 = vpow2.f32 %v1680_v3  ;;  %v1567_v56 = vsub.f32 %v1553_v14, %v1563_v55 }
 0xdac   :  { %v1569_v57 = vmul.f32 1.442695, %v1567_v56 }
 0xdad   :  { %v1566_v58 = vpop.xlane.xlu0 %1565  ;;  %v1963_v60 = vpop.xlane.xlu1 %1962 }
 0xdae   :  { %8647 = vpow2.f32 %v1569_v57  ;;  %v1568_v62 = vsub.f32 %v1558_v2, %v1566_v58  ;;  %v1967_v63 = vsub.f32 %v1953_v28, %v1963_v60 }
 0xdb0   :  { %v1571_v1 = vmul.f32 1.442695, %v1568_v62  ;;  %v1969_v8 = vmul.f32 1.442695, %v1967_v63 }
 0xdb1   :  { %v1966_v16 = vpop.xlane.xlu0 %1965  ;;  %v1701_v17 = vpop.permute.xlu1 %1700 }
 0xdb2   :  { %8649 = vpow2.f32 %v1571_v1  ;;  %v1968_v0 = vsub.f32 %v1958_v29, %v1966_v16  ;;  %8103 = vmatprep.subr.mxu1 %v1701_v17 }
 0xdb3   :  { %8651 = vpow2.f32 %v1969_v8  ;;  %8104 = vmatpush3.msra.mxu1 %v1701_v17 }
 0xdb4   :  { %v1971_v15 = vmul.f32 1.442695, %v1968_v0 }
 0xdb5   :  { %v8644_v24 = vpop.eup %8643  ;;  %v1699_v25 = vpop.permute.xlu0 %1698 }
 0xdb6   :  { %8653 = vpow2.f32 %v1971_v15  ;;  %8105 = vmatprep.subr.mxu1 %v1699_v25  ;;  %v1687_v14 = vsel %vm288_vm12, %v8644_v24, 0.0  ;;  %v1790_v27 = vpop.permute.xlu1 %1789 }
 0xdb7   :  { %v8646_v26 = vpop.eup %8645  ;;  %1688 = vadd.xlane.f32.xlu0 %v1687_v14  ;;  %8106 = vmatpush3.msra.mxu1 %v1699_v25 }
 0xdb8   :  { %8110 = vmatprep.subr.mxu1 %v1790_v27  ;;  %v1684_v2 = vsel %vm288_vm12, %v8646_v26, 0.0 }
 0xdb9   :  { %1685 = vadd.xlane.f32.xlu1 %v1684_v2  ;;  %v1990_v50 = vpop.permute.xlu0 %1989 }
 0xdba   :  { %v1788_v46 = vpop.permute.xlu1 %1787 }
 0xdbb   :  { %v8648_v28 = vpop.eup %8647 }
 0xdbc   :  { %v1573_v29 = vsel %vm288_vm12, %v8648_v28, 0.0 }
 0xdbd   :  { %1574 = vadd.xlane.f32.xlu1 %v1573_v29 }
 0xdbe   :  { %v1988_v51 = vpop.permute.xlu1 %1987 }
 0xdbf   :  { %v8650_v30 = vpop.eup %8649 }
 0xdc0   :  { %v8652_v33 = vpop.eup %8651  ;;  %v1576_v34 = vsel %vm288_vm12, %v8650_v30, 0.0 }
 0xdc1   :  { %1577 = vadd.xlane.f32.xlu0 %v1576_v34  ;;  %v1973_v37 = vsel %vm288_vm12, %v8652_v33, 0.0 }
 0xdc2   :  { %1974 = vadd.xlane.f32.xlu1 %v1973_v37 }
 0xdc3   :  { %v8654_v41 = vpop.eup %8653 }
 0xdc4   :  { %v1976_v42 = vsel %vm288_vm12, %v8654_v41, 0.0 }
 0xdc5   :  { %1977 = vadd.xlane.f32.xlu0 %v1976_v42 }
 0xdd3   :  { %2080 = vrot.lane.b32.xlu1 %v2076_v43, %s8916_s1 }
 0xddb   :  { %2082 = vrot.lane.b32.xlu0 %v2077_v44, %s8916_s1 }
 0xe40   :  { %v1689_v53 = vpop.xlane.xlu0 %1688 }
 0xe41   :  { %8655 = vrcp.f32 %v1689_v53  ;;  %v2186_v53 = vmul.f32 %v9327_v49, %v9195_v61 }
 0xe42   :  { %v1686_v54 = vpop.xlane.xlu1 %1685 }
 0xe43   :  { %8657 = vrcp.f32 %v1686_v54 }
 0xe46   :  { %v1575_v7 = vpop.xlane.xlu1 %1574 }
 0xe47   :  { %8659 = vrcp.f32 %v1575_v7 }
 0xe4a   :  { %v1578_v3 = vpop.xlane.xlu0 %1577 }
 0xe4b   :  { %8661 = vrcp.f32 %v1578_v3  ;;  %v1975_v55 = vpop.xlane.xlu1 %1974 }
 0xe4c   :  { %8663 = vrcp.f32 %v1975_v55 }
 0xe4e   :  { %v1978_v56 = vpop.xlane.xlu0 %1977  ;;  %v8656_v57 = vpop.eup %8655 }
 0xe4f   :  { %8665 = vrcp.f32 %v1978_v56  ;;  %v1693_v62 = vmul.f32 %v8656_v57, %v8644_v24  ;;  %v2081_v14 = vpop.permute.xlu1 %2080 }
 0xe50   :  { %v8658_v58 = vpop.eup %8657 }
 0xe51   :  { %v1691_v60 = vmul.f32 %v8658_v58, %v8646_v26 }
 0xe52   :  { %v2083_v25 = vpop.permute.xlu0 %2082 }
 0xe53   :  { %8107 = vmatprep.mubr.msk.f32.mxu1 %vm288_vm12, %v1691_v60 }
 0xe54   :  { %v8660_v63 = vpop.eup %8659  ;;  %8108 = vmatmul.mubr.msk.f32.vlgmr.msra.gmra.mxu1 %vm288_vm12, %v1693_v62 }
 0xe55   :  { %8111 = vmatpush3.msra.mxu1 %v1790_v27  ;;  %v1580_v1 = vmul.f32 %v8660_v63, %v8648_v28 }
 0xe56   :  { %8112 = vmatprep.subr.mxu1 %v1788_v46 }
 0xe57   :  { %8113 = vmatpush3.msra.mxu1 %v1788_v46  ;;  %8114 = vmatprep.mubr.msk.f32.mxu1 %vm288_vm12, %v1580_v1  ;;  %v2185_v1 = vmul.f32 %v9333_v22, %v9195_v61 }
 0xe58   :  { %v8662_v8 = vpop.eup %8661  ;;  %8124 = vmatprep.subr.mxu1 %v1990_v50 }
 0xe59   :  { %v8664_v16 = vpop.eup %8663  ;;  %v1582_v17 = vmul.f32 %v8662_v8, %v8650_v30 }
 0xe5a   :  { %v1980_v0 = vmul.f32 %v8664_v16, %v8652_v33 }
 0xe5b   :  { %8115 = vmatmul.mubr.msk.f32.vlgmr.msra.gmra.mxu1 %vm288_vm12, %v1582_v17 }
 0xe5c   :  { %v8666_v15 = vpop.eup %8665  ;;  %8125 = vmatpush3.msra.mxu1 %v1990_v50  ;;  %8128 = vmatprep.mubr.msk.f32.mxu1 %vm288_vm12, %v1980_v0  ;;  %v1372_v0 = vld [vmem:[%s10415_s5 + $0x80] sm:$0xff] }
 0xe5d   :  { %8126 = vmatprep.subr.mxu1 %v1988_v51  ;;  %v1982_v24 = vmul.f32 %v8666_v15, %v8654_v41 }
 0xe5e   :  { %8127 = vmatpush3.msra.mxu1 %v1988_v51 }
 0xe5f   :  { %8131 = vmatprep.subr.msk.mxu1 %vm109_vm0, %v2083_v25  ;;  %8129 = vmatmul.mubr.msk.f32.vlgmr.msra.gmra.mxu1 %vm288_vm12, %v1982_v24 }
 0xe60   :  { %8132 = vmatpush3.xpose.msk.msra.mxu1 %vm109_vm0, %v2083_v25  ;;  %8135 = vmatprep.mubr.msk.f32.mxu1 %vm109_vm0, %v9333_v22  ;;  %v1371_v22 = vld [vmem:[%s10415_s5 + $0x78] sm:$0xff] }
 0xe61   :  { %8133 = vmatprep.subr.msk.mxu1 %vm109_vm0, %v2081_v14 }
 0xe64   :  { %8134 = vmatpush3.xpose.msk.msra.mxu1 %vm109_vm0, %v2081_v14 }
 0xe67   :  { %8136 = vmatmul.mubr.msk.f32.vlgmr.msra.gmra.mxu1 %vm109_vm0, %v9327_v49 }
 0xf14   :  { %v8109_v26 = vpop.f32.mrf.mxu1 }
 0xf16   :  { %v1776_v27 = vpop.f32.mrf.mxu1 }
 0xf1b   :  { %v8116_v2 = vpop.f32.mrf.mxu1 }
 0xf1c   :  { %v1871_v28 = vadd.f32 %v8116_v2, %v8109_v26  ;;  %v1370_v26 = vld [vmem:[%s10415_s5 + $0x70] sm:$0xff] }
 0xf1d   :  { %v1865_v29 = vpop.f32.mrf.mxu1 }
 0xf1e   :  { %v1866_v30 = vadd.f32 %v1865_v29, %v1776_v27  ;;  %v1369_v27 = vld [vmem:[%s10415_s5 + $0x68] sm:$0xff] }
 0xf1f   :  { %v8130_v33 = vpop.f32.mrf.mxu1 }
 0xf20   :  { %v2075_v34 = vadd.f32 %v8130_v33, %v1871_v28 }
 0xf21   :  { %v2065_v37 = vpop.f32.mrf.mxu1 }
 0xf22   :  { %v2074_v41 = vadd.f32 %v2065_v37, %v1866_v30 }
 0xf27   :  { %v8137_v42 = vpop.f32.mrf.mxu1 }
 0xf28   :  { %v2160_v43 = vadd.f32 %v8137_v42, %v9107_v39 }
 0xf29   :  { %v2154_v44 = vpop.f32.mrf.mxu1 }
 0xf2a   :  { %v2155_v46 = vadd.f32 %v2154_v44, %v9110_v40  ;;  %v2166_v50 = vsel %vm288_vm12, %v2160_v43, -inf }
 0xf2b   :  { %2167 = vmax.xlane.f32.xlu1 %v2166_v50 }
 0xf2c   :  { %v2163_v51 = vsel %vm288_vm12, %v2155_v46, -inf }
 0xf2d   :  { %2164 = vmax.xlane.f32.xlu0 %v2163_v51 }
 0xf3c   :  { %2191 = vrot.lane.b32.xlu1 %v2186_v53, %s8919_s12 }
 0xfb4   :  { %v2168_v54 = vpop.xlane.xlu1 %2167 }
 0xfb5   :  { %v2170_v7 = vsub.f32 %v2160_v43, %v2168_v54 }
 0xfb6   :  { %v2165_v3 = vpop.xlane.xlu0 %2164 }
 0xfb7   :  { %v2173_v55 = vmul.f32 1.442695, %v2170_v7  ;;  %v2169_v56 = vsub.f32 %v2155_v46, %v2165_v3 }
 0xfb8   :  { %v2192_v57 = vpop.permute.xlu1 %2191 }
 0xfb9   :  { %8667 = vpow2.f32 %v2173_v55  ;;  %v2171_v58 = vmul.f32 1.442695, %v2169_v56  ;;  %8138 = vmatprep.subr.mxu0 %v2192_v57  ;;  %v1384_v56 = vld [vmem:[%s10416_s6 + $0x38] sm:$0xff] }
 0xfba   :  { %8139 = vmatpush3.msra.mxu0 %v2192_v57  ;;  %v1383_v57 = vld [vmem:[%s10416_s6 + $0x30] sm:$0xff] }
 0xfbb   :  { %8669 = vpow2.f32 %v2171_v58  ;;  %v1382_v58 = vld [vmem:[%s10416_s6 + $0x28] sm:$0xff] }
 0xfc6   :  { %v8668_v60 = vpop.eup %8667 }
 0xfc7   :  { %v2178_v62 = vsel %vm288_vm12, %v8668_v60, 0.0 }
 0xfc8   :  { %v8670_v63 = vpop.eup %8669  ;;  %2179 = vadd.xlane.f32.xlu0 %v2178_v62  ;;  %v9481_v62 = vld [vmem:[%s10412_s2] sm:$0xff] }
 0xfc9   :  { %v2175_v49 = vsel %vm288_vm12, %v8670_v63, 0.0  ;;  %2615 = vst.msk [vmem:[#allocation6] sm:$0xff] %vm109_vm0, %v9481_v62 }
 0xfcc   :  { %2176 = vadd.xlane.f32.xlu0 %v2175_v49  ;;  %v1380_v49 = vld [vmem:[%s10415_s5 + $0xc0] sm:$0xff] }
 0xfe2   :  { %2189 = vrot.lane.b32.xlu0 %v2185_v1, %s8919_s12  ;;  %v1379_v1 = vld [vmem:[%s10415_s5 + $0xb8] sm:$0xff] }
0x1051   :  { %v2180_v8 = vpop.xlane.xlu0 %2179 }
0x1052   :  { %8671 = vrcp.f32 %v2180_v8  ;;  %v1378_v8 = vld [vmem:[%s10415_s5 + $0xb0] sm:$0xff] }
0x1055   :  { %v2177_v16 = vpop.xlane.xlu0 %2176 }
0x1056   :  { %8673 = vrcp.f32 %v2177_v16  ;;  %v1377_v16 = vld [vmem:[%s10415_s5 + $0xa8] sm:$0xff] }
0x1059   :  { %v2190_v17 = vpop.permute.xlu0 %2189 }
0x105a   :  { %8140 = vmatprep.subr.mxu0 %v2190_v17 }
0x105b   :  { %8141 = vmatpush3.msra.mxu0 %v2190_v17 }
0x105c   :  { %8145 = vmatprep.subr.mxu0 %v1372_v0 }
0x105f   :  { %v8672_v15 = vpop.eup %8671 }
0x1060   :  { %v2184_v14 = vmul.f32 %v8672_v15, %v8668_v60  ;;  %v2620_v60 = vld [vmem:[%s10413_s3 + $0x58] sm:$0xff] }
0x1063   :  { %v8674_v24 = vpop.eup %8673 }
0x1064   :  { %v2182_v25 = vmul.f32 %v8674_v24, %v8670_v63  ;;  %v9488_v63 = vld [vmem:[%s10412_s2 + $0x8] sm:$0xff]  ;;  %s8847_s2 = scalar_lea.vmem %s7394_s21, 512 }
0x1065   :  { %2616 = vst.msk [vmem:[#allocation6 + $0x8] sm:$0xff] %vm109_vm0, %v9488_v63  ;;  %p8848_p5 = scmp.ne.s32.totalorder %s7394_s21, %s8847_s2  ;;  %p8853_p7 = scmp.lt.s32.totalorder %s8847_s2, %s8847_s2 }
0x1066   :  { %8142 = vmatprep.mubr.msk.f32.mxu0 %vm288_vm12, %v2182_v25 }
0x1067   :  { %8143 = vmatmul.mubr.msk.f32.vlgmr.msra.gmra.mxu0 %vm288_vm12, %v2184_v14  ;;  %p8854_p8 = por %p8853_p7, %p8852_p6 }
0x1068   :  { %8146 = vmatpush3.msra.mxu0 %v1372_v0 }
0x1069   :  { %8147 = vmatprep.subr.mxu0 %v1371_v22  ;;  %p8855_p9 = pnand %p8854_p8, %p8848_p5 }
0x106a   :  { %8148 = vmatpush3.msra.mxu0 %v1371_v22  ;;  %v9507_v22 = vld [vmem:[%s10415_s5 + $0xc8] sm:$0xff] }
0x106b   :  { %8149 = vmatprep.subr.mxu0 %v1370_v26 }
0x106c   :  { %8150 = vmatpush3.msra.mxu0 %v1370_v26 }
0x106d   :  { %8151 = vmatprep.subr.mxu0 %v1369_v27 }
0x106e   :  { %8152 = vmatpush3.msra.mxu0 %v1369_v27  ;;  %v2390_v27 = vrot.slane %v9507_v22, %v9255_v21 }
0x106f   :  { %8167 = vmatprep.subr.mxu0 %v1380_v49 }
0x1127   :  { %v8144_v2 = vpop.f32.mrf.mxu0 }
0x1128   :  { %v2277_v30 = vadd.f32 %v8144_v2, %v2075_v34 }
0x1129   :  { %v2267_v28 = vpop.f32.mrf.mxu0 }
0x112a   :  { %v2276_v29 = vadd.f32 %v2267_v28, %v2074_v41 }
0x112c   :  { %8153 = vmatprep.mubr.msk.f32.mxu0 %vm109_vm0, %v2276_v29 }
0x112d   :  { %8154 = vmatmul.mubr.msk.f32.vlgmr.msra.gmra.mxu0 %vm109_vm0, %v2277_v30 }
0x112e   :  { %8168 = vmatpush3.msra.mxu0 %v1380_v49 }
0x112f   :  { %8169 = vmatprep.subr.mxu0 %v1379_v1 }
0x1130   :  { %8170 = vmatpush3.msra.mxu0 %v1379_v1 }
0x1131   :  { %8171 = vmatprep.subr.mxu0 %v1378_v8 }
0x1132   :  { %8172 = vmatpush3.msra.mxu0 %v1378_v8 }
0x1133   :  { %8173 = vmatprep.subr.mxu0 %v1377_v16 }
0x1134   :  { %8174 = vmatpush3.msra.mxu0 %v1377_v16 }
0x11ed   :  { %v8155_v33 = vpop.f32.mrf.mxu0 }
0x11ee   :  { %v2360_v37 = vadd.f32 %v8155_v33, %v9321_v47  ;;  %v2396_v33 = vrot.slane %v9507_v22, %v9263_v23 }
0x11ef   :  { %v2350_v42 = vpop.f32.mrf.mxu0 }
0x11f0   :  { %v2359_v43 = vadd.f32 %v2350_v42, %v9319_v48  ;;  %v2364_v44 = vsel %vm109_vm0, %v2360_v37, 0.0  ;;  %v1385_v48 = vld [vmem:[%s10416_s6 + $0x40] sm:$0xff] }
0x11f1   :  { %2365 = vadd.xlane.f32.xlu0 %v2364_v44  ;;  %8156 = vmatprep.subr.mxu1 %v1385_v48  ;;  %v2619_v44 = vld [vmem:[%s10413_s3 + $0x50] sm:$0xff] }
0x11f2   :  { %v2361_v46 = vsel %vm109_vm0, %v2359_v43, 0.0  ;;  %8157 = vmatpush3.msra.mxu1 %v1385_v48 }
0x11f3   :  { %2362 = vadd.xlane.f32.xlu1 %v2361_v46  ;;  %8158 = vmatprep.subr.mxu1 %v1384_v56  ;;  %v2618_v46 = vld [vmem:[%s10413_s3 + $0x48] sm:$0xff] }
0x11f4   :  { %8159 = vmatpush3.msra.mxu1 %v1384_v56 }
0x11f5   :  { %8160 = vmatprep.subr.mxu1 %v1383_v57 }
0x11f6   :  { %8161 = vmatpush3.msra.mxu1 %v1383_v57 }
0x11f7   :  { %8162 = vmatprep.subr.mxu1 %v1382_v58 }
0x11f8   :  { %8163 = vmatpush3.msra.mxu1 %v1382_v58 }
0x11f9   :  { %8186 = vmatprep.subr.mxu1 %v2620_v60 }
0x127a   :  { %v2366_v50 = vpop.xlane.xlu0 %2365 }
0x127b   :  { %v2368_v51 = vmul.f32 0.03125, %v2366_v50  ;;  %v2617_v50 = vld [vmem:[%s10413_s3 + $0x40] sm:$0xff] }
0x127c   :  { %v2363_v41 = vpop.xlane.xlu1 %2362 }
0x127d   :  { %v2370_v34 = vsub.f32 %v2360_v37, %v2368_v51  ;;  %v2367_v53 = vmul.f32 0.03125, %v2363_v41  ;;  %v1376_v51 = vld [vmem:[%s10415_s5 + $0xa0] sm:$0xff]  ;;  %v1375_v41 = vld [vmem:[%s10415_s5 + $0x98] sm:$0xff] }
0x127e   :  { %8175 = vmatprep.subr.mxu0 %v1376_v51 }
0x127f   :  { %v2369_v54 = vsub.f32 %v2359_v43, %v2367_v53  ;;  %v2372_v7 = vmul.f32 %v2370_v34, %v2370_v34  ;;  %8176 = vmatpush3.msra.mxu0 %v1376_v51  ;;  %v1373_v53 = vld [vmem:[%s10415_s5 + $0x88] sm:$0xff] }
0x1280   :  { %8177 = vmatprep.subr.mxu0 %v1375_v41 }
0x1281   :  { %v2376_v3 = vsel %vm109_vm0, %v2372_v7, 0.0  ;;  %v2371_v55 = vmul.f32 %v2369_v54, %v2369_v54  ;;  %8178 = vmatpush3.msra.mxu0 %v1375_v41 }
0x1282   :  { %2377 = vadd.xlane.f32.xlu0 %v2376_v3 }
0x1283   :  { %v2373_v47 = vsel %vm109_vm0, %v2371_v55, 0.0 }
0x1284   :  { %2374 = vadd.xlane.f32.xlu1 %v2373_v47 }
0x130b   :  { %v2378_v17 = vpop.xlane.xlu0 %2377 }
0x130c   :  { %v2380_v0 = vmul.f32 0.03125, %v2378_v17 }
0x130d   :  { %v2375_v15 = vpop.xlane.xlu1 %2374 }
0x130e   :  { %v2382_v24 = vadd.f32 1e-05, %v2380_v0  ;;  %v2379_v25 = vmul.f32 0.03125, %v2375_v15 }
0x1310   :  { %8675 = vrsqrt.f32 %v2382_v24  ;;  %v2381_v14 = vadd.f32 1e-05, %v2379_v25 }
0x1312   :  { %8677 = vrsqrt.f32 %v2381_v14 }
0x131d   :  { %v8676_v26 = vpop.eup %8675 }
0x131e   :  { %v2386_v2 = vmul.f32 %v8676_v26, %v2370_v34  ;;  %v1374_v34 = vld [vmem:[%s10415_s5 + $0x90] sm:$0xff] }
0x131f   :  { %v8678_v28 = vpop.eup %8677  ;;  %8179 = vmatprep.subr.mxu0 %v1374_v34 }
0x1320   :  { %v2385_v29 = vmul.f32 %v8678_v28, %v2369_v54  ;;  %v2392_v30 = vmul.f32 %v2390_v27, %v2386_v2  ;;  %8180 = vmatpush3.msra.mxu0 %v1374_v34  ;;  %v7490_v54 = vld [vmem:[%s10416_s6 + $0x48] ss:$0 sm:$0xff] }
0x1321   :  { %8181 = vmatprep.subr.mxu0 %v1373_v53 }
0x1322   :  { %v2391_v37 = vmul.f32 %v2390_v27, %v2385_v29  ;;  %v9515_v43 = vadd.f32 %v2396_v33, %v2392_v30  ;;  %8182 = vmatpush3.msra.mxu0 %v1373_v53  ;;  %v9599_v27 = vrot.slane %v9507_v22, %v9289_v45  ;;  %v9613_v30 = vsel %vm69_vm4, 0.0, %v8918_v38 }
0x1324   :  { %v9513_v42 = vadd.f32 %v2396_v33, %v2391_v37  ;;  %v9616_v37 = vsel %vm68_vm5, 0.0, %v8918_v38 }
0x1326   :  { %8164 = vmatprep.mubr.msk.f32.mxu1 %vm109_vm0, %v9513_v42 }
0x1327   :  { %8165 = vmatmul.mubr.msk.f32.vlgmr.msra.gmra.mxu1 %vm109_vm0, %v9515_v43 }
0x1328   :  { %8187 = vmatpush3.msra.mxu1 %v2620_v60  ;;  %8194 = vmatprep.mubr.msk.f32.mxu1 %vm109_vm0, %v9481_v62 }
0x1329   :  { %8188 = vmatprep.subr.mxu1 %v2619_v44 }
0x132a   :  { %8189 = vmatpush3.msra.mxu1 %v2619_v44 }
0x132b   :  { %8190 = vmatprep.subr.mxu1 %v2618_v46 }
0x132c   :  { %8191 = vmatpush3.msra.mxu1 %v2618_v46 }
0x132d   :  { %8192 = vmatprep.subr.mxu1 %v2617_v50 }
0x132e   :  { %8193 = vmatpush3.msra.mxu1 %v2617_v50 }
0x132f   :  { %8195 = vmatmul.mubr.msk.f32.vlgmr.msra.gmra.mxu1 %vm109_vm0, %v9488_v63 }
0x13e7   :  { %v8166_v7 = vpop.f32.mrf.mxu1 }
0x13e8   :  { %v2481_v3 = vadd.f32 %v8166_v7, %v7490_v54 }
0x13e9   :  { %v2475_v55 = vpop.f32.mrf.mxu1 }
0x13ea   :  { %v2476_v47 = vadd.f32 %v7490_v54, %v2475_v55  ;;  %v2485_v56 = vmax.f32 %v2481_v3, 0.0 }
0x13ec   :  { %v2484_v48 = vmax.f32 %v2476_v47, 0.0 }
0x13ee   :  { %8183 = vmatprep.mubr.msk.f32.mxu0 %vm1243_vm2, %v2484_v48 }
0x13ef   :  { %v9550_v57 = vpop.f32.mrf.mxu1  ;;  %8184 = vmatmul.mubr.msk.f32.vlgmr.msra.gmra.mxu0 %vm1243_vm2, %v2485_v56 }
0x13f0   :  { %v2850_v58 = vmul.f32 %v9550_v57, %v9034_v12  ;;  %v2733_v60 = vmul.f32 %v9550_v57, %v9036_v13  ;;  %v3139_v1 = vmul.f32 %v9550_v57, %v9056_v20  ;;  %v2959_v56 = vmul.f32 %v9550_v57, %v9139_v6 }
0x13f1   :  { %v9557_v49 = vpop.f32.mrf.mxu1 }
0x13f2   :  { %2855 = vrot.lane.b32.xlu1 %v2850_v58, %s8916_s1  ;;  %2738 = vrot.lane.b32.xlu0 %v2733_v60, %s8916_s1  ;;  %v2849_v8 = vmul.f32 %v9557_v49, %v9034_v12  ;;  %v2732_v16 = vmul.f32 %v9557_v49, %v9036_v13  ;;  %v3138_v17 = vmul.f32 %v9557_v49, %v9056_v20 }
0x13f3   :  { %8201 = vmatprep.mubr.msk.f32.mxu1 %vm109_vm0, %v9557_v49  ;;  %8208 = vmatprep.mubr.msk.f32.mxu0 %vm109_vm0, %v9557_v49  ;;  %v2848_v58 = vmul.f32 %v9550_v57, %v9137_v4  ;;  %v2847_v60 = vmul.f32 %v9557_v49, %v9137_v4 }
0x13f6   :  { %3144 = vrot.lane.b32.xlu0 %v3139_v1, %s8916_s1  ;;  %2853 = vrot.lane.b32.xlu1 %v2849_v8, %s8916_s1  ;;  %v2958_v1 = vmul.f32 %v9557_v49, %v9139_v6  ;;  %v3247_v8 = vmul.f32 %v9557_v49, %v9151_v19 }
0x13fa   :  { %2736 = vrot.lane.b32.xlu1 %v2732_v16, %s8916_s1  ;;  %v3248_v16 = vmul.f32 %v9550_v57, %v9151_v19 }
0x13fe   :  { %3142 = vrot.lane.b32.xlu1 %v3138_v17, %s8916_s1 }
0x1464   :  { %v2856_v0 = vpop.permute.xlu1 %2855  ;;  %v2739_v15 = vpop.permute.xlu0 %2738 }
0x1465   :  { %8197 = vmatprep.subr.msk.mxu1 %vm109_vm0, %v2739_v15  ;;  %8204 = vmatprep.subr.msk.mxu0 %vm109_vm0, %v2856_v0 }
0x1466   :  { %8198 = vmatpush3.xpose.msk.msra.mxu1 %vm109_vm0, %v2739_v15  ;;  %8205 = vmatpush3.xpose.msk.msra.mxu0 %vm109_vm0, %v2856_v0 }
0x1468   :  { %v2854_v24 = vpop.permute.xlu1 %2853  ;;  %v3145_v25 = vpop.permute.xlu0 %3144 }
0x1469   :  { %8206 = vmatprep.subr.msk.mxu0 %vm109_vm0, %v2854_v24 }
0x146a   :  { %8207 = vmatpush3.xpose.msk.msra.mxu0 %vm109_vm0, %v2854_v24 }
0x146b   :  { %8225 = vmatprep.subr.msk.mxu0 %vm109_vm0, %v3145_v25 }
0x146c   :  { %v2737_v14 = vpop.permute.xlu1 %2736 }
0x146d   :  { %8199 = vmatprep.subr.msk.mxu1 %vm109_vm0, %v2737_v14  ;;  %8209 = vmatmul.mubr.msk.f32.vlgmr.msra.gmra.mxu0 %vm109_vm0, %v9550_v57 }
0x146e   :  { %8200 = vmatpush3.xpose.msk.msra.mxu1 %vm109_vm0, %v2737_v14  ;;  %8226 = vmatpush3.xpose.msk.msra.mxu0 %vm109_vm0, %v3145_v25 }
0x146f   :  { %8229 = vmatprep.mubr.msk.f32.mxu0 %vm109_vm0, %v9557_v49 }
0x1470   :  { %v3143_v26 = vpop.permute.xlu1 %3142 }
0x1471   :  { %8202 = vmatmul.mubr.msk.f32.vlgmr.msra.gmra.mxu1 %vm109_vm0, %v9550_v57  ;;  %8227 = vmatprep.subr.msk.mxu0 %vm109_vm0, %v3143_v26 }
0x1472   :  { %8228 = vmatpush3.xpose.msk.msra.mxu0 %vm109_vm0, %v3143_v26 }
0x1475   :  { %8230 = vmatmul.mubr.msk.f32.vlgmr.msra.gmra.mxu0 %vm109_vm0, %v9550_v57 }
0x14af   :  { %v8185_v2 = vpop.f32.mrf.mxu0 }
0x14b0   :  { %v9602_v28 = vadd.f32 %v8185_v2, %v9599_v27 }
0x14b1   :  { %v9610_v29 = vpop.f32.mrf.mxu0 }
0x152d   :  { %v8210_v33 = vpop.f32.mrf.mxu0 }
0x152e   :  { %v2933_v44 = vadd.f32 %v8210_v33, %v9613_v30 }
0x152f   :  { %v2927_v46 = vpop.f32.mrf.mxu0 }
0x1530   :  { %v2928_v36 = vadd.f32 %v2927_v46, %v9616_v37  ;;  %v2939_v5 = vsel %vm288_vm12, %v2933_v44, -inf }
0x1531   :  { %v8203_v50 = vpop.f32.mrf.mxu1  ;;  %2940 = vmax.xlane.f32.xlu1 %v2939_v5 }
0x1532   :  { %v2936_v31 = vsel %vm288_vm12, %v2928_v36, -inf  ;;  %v2822_v53 = vadd.f32 %v8203_v50, %v9613_v30 }
0x1533   :  { %v2816_v51 = vpop.f32.mrf.mxu1  ;;  %2937 = vmax.xlane.f32.xlu0 %v2936_v31 }
0x1534   :  { %v2817_v41 = vadd.f32 %v2816_v51, %v9616_v37  ;;  %v2828_v47 = vsel %vm288_vm12, %v2822_v53, -inf }
0x1535   :  { %v8231_v34 = vpop.f32.mrf.mxu0 }
0x1536   :  { %v2825_v38 = vsel %vm288_vm12, %v2817_v41, -inf  ;;  %v3222_v3 = vadd.f32 %v8231_v34, %v9613_v30 }
0x1537   :  { %v3216_v54 = vpop.f32.mrf.mxu0  ;;  %2826 = vmax.xlane.f32.xlu0 %v2825_v38 }
0x1538   :  { %v3217_v7 = vadd.f32 %v3216_v54, %v9616_v37  ;;  %v3228_v48 = vsel %vm288_vm12, %v3222_v3, -inf }
0x153a   :  { %v3225_v55 = vsel %vm288_vm12, %v3217_v7, -inf }
0x153b   :  { %3226 = vmax.xlane.f32.xlu1 %v3225_v55  ;;  %2829 = vmax.xlane.f32.xlu0 %v2828_v47 }
0x153f   :  { %3229 = vmax.xlane.f32.xlu0 %v3228_v48 }
0x154c   :  { %2964 = vrot.lane.b32.xlu1 %v2959_v56, %s8919_s12 }
0x1550   :  { %3053 = vrot.lane.b32.xlu1 %v2848_v58, %s8919_s12 }
0x1554   :  { %3051 = vrot.lane.b32.xlu1 %v2847_v60, %s8919_s12 }
0x1555   :  { %2962 = vrot.lane.b32.xlu0 %v2958_v1, %s8919_s12 }
0x1558   :  { %3251 = vrot.lane.b32.xlu1 %v3247_v8, %s8919_s12 }
0x1559   :  { %3253 = vrot.lane.b32.xlu0 %v3248_v16, %s8919_s12 }
0x15ba   :  { %v2941_v17 = vpop.xlane.xlu1 %2940 }
0x15bb   :  { %v2943_v0 = vsub.f32 %v2933_v44, %v2941_v17 }
0x15bc   :  { %v2938_v15 = vpop.xlane.xlu0 %2937 }
0x15bd   :  { %v2946_v24 = vmul.f32 1.442695, %v2943_v0  ;;  %v2942_v25 = vsub.f32 %v2928_v36, %v2938_v15  ;;  %v3340_v0 = vmul.f32 %v9557_v49, %v9166_v52  ;;  %v3341_v15 = vmul.f32 %v9550_v57, %v9166_v52 }
0x15bf   :  { %8679 = vpow2.f32 %v2946_v24  ;;  %v2944_v14 = vmul.f32 1.442695, %v2942_v25 }
0x15c0   :  { %v2827_v26 = vpop.xlane.xlu0 %2826 }
0x15c1   :  { %8681 = vpow2.f32 %v2944_v14  ;;  %v2831_v2 = vsub.f32 %v2817_v41, %v2827_v26 }
0x15c3   :  { %v2833_v33 = vmul.f32 1.442695, %v2831_v2 }
0x15c4   :  { %v3227_v46 = vpop.xlane.xlu1 %3226  ;;  %v2830_v5 = vpop.xlane.xlu0 %2829 }
0x15c5   :  { %8683 = vpow2.f32 %v2833_v33  ;;  %v3231_v50 = vsub.f32 %v3217_v7, %v3227_v46  ;;  %v2832_v31 = vsub.f32 %v2822_v53, %v2830_v5 }
0x15c7   :  { %v3233_v51 = vmul.f32 1.442695, %v3231_v50  ;;  %v2835_v34 = vmul.f32 1.442695, %v2832_v31 }
0x15c8   :  { %v2965_v38 = vpop.permute.xlu1 %2964  ;;  %v3230_v54 = vpop.xlane.xlu0 %3229 }
0x15c9   :  { %8685 = vpow2.f32 %v3233_v51  ;;  %v3232_v44 = vsub.f32 %v3222_v3, %v3230_v54  ;;  %8211 = vmatprep.subr.mxu1 %v2965_v38 }
0x15ca   :  { %8687 = vpow2.f32 %v2835_v34  ;;  %8212 = vmatpush3.msra.mxu1 %v2965_v38 }
0x15cb   :  { %v3235_v36 = vmul.f32 1.442695, %v3232_v44 }
0x15cc   :  { %v8680_v55 = vpop.eup %8679  ;;  %v2963_v47 = vpop.permute.xlu0 %2962 }
0x15cd   :  { %8689 = vpow2.f32 %v3235_v36  ;;  %8213 = vmatprep.subr.mxu1 %v2963_v47  ;;  %v2951_v41 = vsel %vm288_vm12, %v8680_v55, 0.0  ;;  %v3054_v56 = vpop.permute.xlu1 %3053 }
0x15ce   :  { %v8682_v48 = vpop.eup %8681  ;;  %2952 = vadd.xlane.f32.xlu0 %v2951_v41  ;;  %8214 = vmatpush3.msra.mxu1 %v2963_v47 }
0x15cf   :  { %8218 = vmatprep.subr.mxu1 %v3054_v56  ;;  %v2948_v53 = vsel %vm288_vm12, %v8682_v48, 0.0 }
0x15d0   :  { %2949 = vadd.xlane.f32.xlu1 %v2948_v53  ;;  %v3254_v25 = vpop.permute.xlu0 %3253 }
0x15d1   :  { %v3052_v24 = vpop.permute.xlu1 %3051 }
0x15d2   :  { %v8684_v7 = vpop.eup %8683 }
0x15d3   :  { %v2837_v3 = vsel %vm288_vm12, %v8684_v7, 0.0 }
0x15d4   :  { %2838 = vadd.xlane.f32.xlu1 %v2837_v3 }
0x15d5   :  { %v3252_v14 = vpop.permute.xlu1 %3251 }
0x15d6   :  { %v8686_v58 = vpop.eup %8685 }
0x15d7   :  { %v8688_v60 = vpop.eup %8687  ;;  %v3237_v1 = vsel %vm288_vm12, %v8686_v58, 0.0 }
0x15d8   :  { %3238 = vadd.xlane.f32.xlu1 %v3237_v1  ;;  %v2840_v8 = vsel %vm288_vm12, %v8688_v60, 0.0 }
0x15d9   :  { %2841 = vadd.xlane.f32.xlu0 %v2840_v8 }
0x15da   :  { %v8690_v16 = vpop.eup %8689 }
0x15db   :  { %v3240_v17 = vsel %vm288_vm12, %v8690_v16, 0.0 }
0x15dd   :  { %3241 = vadd.xlane.f32.xlu0 %v3240_v17 }
0x15e9   :  { %3344 = vrot.lane.b32.xlu1 %v3340_v0, %s8916_s1 }
0x15f3   :  { %3346 = vrot.lane.b32.xlu0 %v3341_v15, %s8916_s1 }
0x1657   :  { %v2953_v26 = vpop.xlane.xlu0 %2952 }
0x1658   :  { %8691 = vrcp.f32 %v2953_v26 }
0x1659   :  { %v2950_v2 = vpop.xlane.xlu1 %2949 }
0x165a   :  { %8693 = vrcp.f32 %v2950_v2 }
0x165d   :  { %v2839_v33 = vpop.xlane.xlu1 %2838 }
0x165e   :  { %8695 = vrcp.f32 %v2839_v33 }
0x1661   :  { %v3239_v46 = vpop.xlane.xlu1 %3238 }
0x1662   :  { %8697 = vrcp.f32 %v3239_v46  ;;  %v2842_v5 = vpop.xlane.xlu0 %2841 }
0x1663   :  { %8699 = vrcp.f32 %v2842_v5  ;;  %v3450_v5 = vmul.f32 %v9550_v57, %v9195_v61 }
0x1665   :  { %v8692_v50 = vpop.eup %8691 }
0x1666   :  { %v3242_v31 = vpop.xlane.xlu0 %3241  ;;  %v2957_v38 = vmul.f32 %v8692_v50, %v8680_v55  ;;  %v2563_v50 = vadd.f32 %v9610_v29, %v9599_v27  ;;  %v3449_v29 = vmul.f32 %v9557_v49, %v9195_v61 }
0x1667   :  { %v8694_v51 = vpop.eup %8693  ;;  %8701 = vrcp.f32 %v3242_v31 }
0x1668   :  { %v2955_v34 = vmul.f32 %v8694_v51, %v8682_v48  ;;  %v2571_v31 = vadd.f32 %v2563_v50, %v9513_v42 }
0x166a   :  { %8215 = vmatprep.mubr.msk.f32.mxu1 %vm288_vm12, %v2955_v34  ;;  %v3347_v3 = vpop.permute.xlu0 %3346  ;;  %v2573_v51 = vsel %vm109_vm0, %v2571_v31, 0.0 }
0x166b   :  { %v8696_v54 = vpop.eup %8695  ;;  %8216 = vmatmul.mubr.msk.f32.vlgmr.msra.gmra.mxu1 %vm288_vm12, %v2957_v38 }
0x166c   :  { %8219 = vmatpush3.msra.mxu1 %v3054_v56  ;;  %v2844_v44 = vmul.f32 %v8696_v54, %v8684_v7  ;;  %v3345_v56 = vpop.permute.xlu1 %3344 }
0x166d   :  { %8220 = vmatprep.subr.mxu1 %v3052_v24 }
0x166e   :  { %8221 = vmatpush3.msra.mxu1 %v3052_v24  ;;  %8222 = vmatprep.mubr.msk.f32.mxu1 %vm288_vm12, %v2844_v44 }
0x166f   :  { %v8698_v36 = vpop.eup %8697  ;;  %8232 = vmatprep.subr.mxu1 %v3254_v25 }
0x1670   :  { %v8700_v47 = vpop.eup %8699  ;;  %v3244_v41 = vmul.f32 %v8698_v36, %v8686_v58 }
0x1671   :  { %v2846_v53 = vmul.f32 %v8700_v47, %v8688_v60 }
0x1673   :  { %8223 = vmatmul.mubr.msk.f32.vlgmr.msra.gmra.mxu1 %vm288_vm12, %v2846_v53 }
0x1674   :  { %v8702_v48 = vpop.eup %8701  ;;  %8233 = vmatpush3.msra.mxu1 %v3254_v25  ;;  %8236 = vmatprep.mubr.msk.f32.mxu1 %vm288_vm12, %v3244_v41 }
0x1675   :  { %8234 = vmatprep.subr.mxu1 %v3252_v14  ;;  %v3246_v55 = vmul.f32 %v8702_v48, %v8690_v16  ;;  %v2572_v48 = vadd.f32 %v9602_v28, %v9515_v43  ;;  %v2627_v43 = vld [vmem:[%s10415_s5 + $0xe0] sm:$0xff]  ;;  %v2626_v28 = vld [vmem:[%s10415_s5 + $0xd8] sm:$0xff] }
0x1676   :  { %8235 = vmatpush3.msra.mxu1 %v3252_v14 }
0x1677   :  { %8239 = vmatprep.subr.msk.mxu1 %vm109_vm0, %v3347_v3  ;;  %8237 = vmatmul.mubr.msk.f32.vlgmr.msra.gmra.mxu1 %vm288_vm12, %v3246_v55  ;;  %v2576_v55 = vsel %vm109_vm0, %v2572_v48, 0.0 }
0x1678   :  { %8240 = vmatpush3.xpose.msk.msra.mxu1 %vm109_vm0, %v3347_v3  ;;  %8243 = vmatprep.mubr.msk.f32.mxu1 %vm109_vm0, %v9557_v49 }
0x1679   :  { %8241 = vmatprep.subr.msk.mxu1 %vm109_vm0, %v3345_v56 }
0x167c   :  { %8242 = vmatpush3.xpose.msk.msra.mxu1 %vm109_vm0, %v3345_v56 }
0x167f   :  { %8244 = vmatmul.mubr.msk.f32.vlgmr.msra.gmra.mxu1 %vm109_vm0, %v9550_v57 }
0x172b   :  { %v8217_v7 = vpop.f32.mrf.mxu1 }
0x172d   :  { %v3040_v58 = vpop.f32.mrf.mxu1 }
0x1733   :  { %v8224_v60 = vpop.f32.mrf.mxu1 }
0x1734   :  { %v3135_v1 = vadd.f32 %v8224_v60, %v8217_v7 }
0x1735   :  { %v3129_v8 = vpop.f32.mrf.mxu1 }
0x1736   :  { %v3130_v16 = vadd.f32 %v3129_v8, %v3040_v58  ;;  %v2628_v58 = vld [vmem:[%s10415_s5 + $0xe8] sm:$0xff] }
0x1737   :  { %v8238_v17 = vpop.f32.mrf.mxu1 }
0x1738   :  { %v9674_v0 = vadd.f32 %v8238_v17, %v3135_v1 }
0x1739   :  { %v3329_v15 = vpop.f32.mrf.mxu1 }
0x173a   :  { %v9676_v24 = vadd.f32 %v3329_v15, %v3130_v16  ;;  %v2625_v16 = vld [vmem:[%s10415_s5 + $0xd0] sm:$0xff] }
0x173f   :  { %v8245_v25 = vpop.f32.mrf.mxu1 }
0x1740   :  { %v3424_v14 = vadd.f32 %v8245_v25, %v9613_v30 }
0x1741   :  { %v3418_v26 = vpop.f32.mrf.mxu1 }
0x1742   :  { %v3419_v2 = vadd.f32 %v3418_v26, %v9616_v37  ;;  %v3430_v33 = vsel %vm288_vm12, %v3424_v14, -inf }
0x1743   :  { %3431 = vmax.xlane.f32.xlu1 %v3430_v33 }
0x1744   :  { %v3427_v46 = vsel %vm288_vm12, %v3419_v2, -inf }
0x1745   :  { %3428 = vmax.xlane.f32.xlu0 %v3427_v46 }
0x1754   :  { %3455 = vrot.lane.b32.xlu1 %v3450_v5, %s8919_s12 }
0x1778   :  { %2574 = vadd.xlane.f32.xlu1 %v2573_v51 }
0x17cc   :  { %v3432_v34 = vpop.xlane.xlu1 %3431 }
0x17cd   :  { %v3434_v38 = vsub.f32 %v3424_v14, %v3432_v34 }
0x17ce   :  { %v3429_v54 = vpop.xlane.xlu0 %3428 }
0x17cf   :  { %v3437_v44 = vmul.f32 1.442695, %v3434_v38  ;;  %v3433_v36 = vsub.f32 %v3419_v2, %v3429_v54 }
0x17d0   :  { %v3456_v47 = vpop.permute.xlu1 %3455 }
0x17d1   :  { %8703 = vpow2.f32 %v3437_v44  ;;  %v3435_v41 = vmul.f32 1.442695, %v3433_v36  ;;  %8246 = vmatprep.subr.mxu0 %v3456_v47 }
0x17d2   :  { %8247 = vmatpush3.msra.mxu0 %v3456_v47 }
0x17d3   :  { %8705 = vpow2.f32 %v3435_v41 }
0x17de   :  { %v8704_v57 = vpop.eup %8703 }
0x17df   :  { %v3442_v53 = vsel %vm288_vm12, %v8704_v57, 0.0 }
0x17e0   :  { %v8706_v27 = vpop.eup %8705  ;;  %3443 = vadd.xlane.f32.xlu0 %v3442_v53 }
0x17e1   :  { %v3439_v42 = vsel %vm288_vm12, %v8706_v27, 0.0 }
0x17e4   :  { %3440 = vadd.xlane.f32.xlu0 %v3439_v42 }
0x17fa   :  { %3453 = vrot.lane.b32.xlu0 %v3449_v29, %s8919_s12 }
0x1801   :  { %v2575_v2 = vpop.xlane.xlu1 %2574 }
0x1802   :  { %v2579_v46 = vmul.f32 0.03125, %v2575_v2  ;;  %v2631_v2 = vld [vmem:[%s10415_s5 + $0x100] sm:$0xff] }
0x1804   :  { %v2581_v51 = vsub.f32 %v2571_v31, %v2579_v46  ;;  %v2622_v31 = vld [vmem:[%s10414_s4 + $0x8] sm:$0xff] }
0x1806   :  { %v2583_v36 = vmul.f32 %v2581_v51, %v2581_v51 }
0x1808   :  { %v2585_v41 = vsel %vm109_vm0, %v2583_v36, 0.0 }
0x1819   :  { %2577 = vadd.xlane.f32.xlu0 %v2576_v55 }
0x1869   :  { %v3444_v3 = vpop.xlane.xlu0 %3443 }
0x186a   :  { %8707 = vrcp.f32 %v3444_v3 }
0x186d   :  { %v3441_v56 = vpop.xlane.xlu0 %3440 }
0x186e   :  { %8709 = vrcp.f32 %v3441_v56 }
0x1871   :  { %v3454_v7 = vpop.permute.xlu0 %3453 }
0x1872   :  { %8248 = vmatprep.subr.mxu0 %v3454_v7 }
0x1873   :  { %8249 = vmatpush3.msra.mxu0 %v3454_v7 }
0x1874   :  { %8253 = vmatprep.subr.mxu0 %v2628_v58 }
0x1877   :  { %v8708_v49 = vpop.eup %8707 }
0x1878   :  { %v3448_v8 = vmul.f32 %v8708_v49, %v8704_v57  ;;  %v2621_v57 = vld [vmem:[%s10414_s4] sm:$0xff] }
0x187b   :  { %v8710_v60 = vpop.eup %8709 }
0x187c   :  { %v3446_v1 = vmul.f32 %v8710_v60, %v8706_v27 }
0x187e   :  { %8250 = vmatprep.mubr.msk.f32.mxu0 %vm288_vm12, %v3446_v1 }
0x187f   :  { %8251 = vmatmul.mubr.msk.f32.vlgmr.msra.gmra.mxu0 %vm288_vm12, %v3448_v8 }
0x1880   :  { %8254 = vmatpush3.msra.mxu0 %v2628_v58 }
0x1881   :  { %8255 = vmatprep.subr.mxu0 %v2627_v43 }
0x1882   :  { %8256 = vmatpush3.msra.mxu0 %v2627_v43 }
0x1883   :  { %8257 = vmatprep.subr.mxu0 %v2626_v28 }
0x1884   :  { %8258 = vmatpush3.msra.mxu0 %v2626_v28 }
0x1885   :  { %8259 = vmatprep.subr.mxu0 %v2625_v16 }
0x1886   :  { %8260 = vmatpush3.msra.mxu0 %v2625_v16  ;;  %v2602_v16 = vrot.slane %v9507_v22, %v9310_v32 }
0x18a2   :  { %v2578_v26 = vpop.xlane.xlu0 %2577 }
0x18a3   :  { %v2580_v33 = vmul.f32 0.03125, %v2578_v26  ;;  %v2632_v26 = vld [vmem:[%s10415_s5 + $0x108] sm:$0xff] }
0x18a4   :  { %8275 = vmatprep.subr.mxu0 %v2632_v26 }
0x18a5   :  { %v2582_v5 = vsub.f32 %v2572_v48, %v2580_v33 }
0x18a7   :  { %v2584_v44 = vmul.f32 %v2582_v5, %v2582_v5 }
0x18a9   :  { %v2588_v47 = vsel %vm109_vm0, %v2584_v44, 0.0 }
0x193f   :  { %v8252_v17 = vpop.f32.mrf.mxu0 }
0x1940   :  { %v3541_v14 = vadd.f32 %v8252_v17, %v9674_v0 }
0x1941   :  { %v3531_v15 = vpop.f32.mrf.mxu0 }
0x1942   :  { %v3540_v25 = vadd.f32 %v3531_v15, %v9676_v24 }
0x1944   :  { %8261 = vmatprep.mubr.msk.f32.mxu0 %vm109_vm0, %v3540_v25  ;;  %v2608_v25 = vrot.slane %v9507_v22, %v9315_v35  ;;  %v2629_v22 = vld [vmem:[%s10415_s5 + $0xf0] sm:$0xff] }
0x1945   :  { %8262 = vmatmul.mubr.msk.f32.vlgmr.msra.gmra.mxu0 %vm109_vm0, %v3541_v14 }
0x1946   :  { %8276 = vmatpush3.msra.mxu0 %v2632_v26 }
0x1947   :  { %8277 = vmatprep.subr.mxu0 %v2631_v2 }
0x1948   :  { %8278 = vmatpush3.msra.mxu0 %v2631_v2 }
0x1a05   :  { %v8263_v50 = vpop.f32.mrf.mxu0 }
0x1a06   :  { %v3624_v34 = vadd.f32 %v8263_v50, %v9488_v63  ;;  %v2624_v63 = vld [vmem:[%s10414_s4 + $0x18] sm:$0xff] }
0x1a07   :  { %v3614_v38 = vpop.f32.mrf.mxu0  ;;  %8264 = vmatprep.subr.mxu1 %v2624_v63 }
0x1a08   :  { %v3623_v54 = vadd.f32 %v3614_v38, %v9481_v62  ;;  %v3628_v24 = vsel %vm109_vm0, %v3624_v34, 0.0  ;;  %v2623_v62 = vld [vmem:[%s10414_s4 + $0x10] sm:$0xff]  ;;  %8265 = vmatpush3.msra.mxu1 %v2624_v63 }
0x1a09   :  { %3629 = vadd.xlane.f32.xlu0 %v3628_v24  ;;  %8266 = vmatprep.subr.mxu1 %v2623_v62 }
0x1a0a   :  { %v3625_v0 = vsel %vm109_vm0, %v3623_v54, 0.0  ;;  %8267 = vmatpush3.msra.mxu1 %v2623_v62 }
0x1a0b   :  { %3626 = vadd.xlane.f32.xlu1 %v3625_v0  ;;  %8268 = vmatprep.subr.mxu1 %v2622_v31 }
0x1a0c   :  { %8269 = vmatpush3.msra.mxu1 %v2622_v31 }
0x1a0d   :  { %2589 = vadd.xlane.f32.xlu0 %v2588_v47  ;;  %8270 = vmatprep.subr.mxu1 %v2621_v57  ;;  %v9766_v47 = vld [vmem:[%s10415_s5 + $0x170] sm:$0xff] }
0x1a0e   :  { %8271 = vmatpush3.msra.mxu1 %v2621_v57  ;;  %v3654_v63 = vrot.slane %v9766_v47, %v9255_v21 }
0x1a0f   :  { %2586 = vadd.xlane.f32.xlu1 %v2585_v41 }
0x1a92   :  { %v3630_v53 = vpop.xlane.xlu0 %3629 }
0x1a93   :  { %v3632_v27 = vmul.f32 0.03125, %v3630_v53 }
0x1a94   :  { %v3627_v42 = vpop.xlane.xlu1 %3626 }
0x1a95   :  { %v3634_v29 = vsub.f32 %v3624_v34, %v3632_v27  ;;  %v3631_v48 = vmul.f32 0.03125, %v3627_v42  ;;  %v3660_v27 = vrot.slane %v9766_v47, %v9263_v23 }
0x1a96   :  { %v2590_v55 = vpop.xlane.xlu0 %2589 }
0x1a97   :  { %v3633_v3 = vsub.f32 %v3623_v54, %v3631_v48  ;;  %v2592_v56 = vmul.f32 0.03125, %v2590_v55  ;;  %v3636_v7 = vmul.f32 %v3634_v29, %v3634_v29 }
0x1a98   :  { %v2587_v58 = vpop.xlane.xlu1 %2586 }
0x1a99   :  { %v2594_v49 = vadd.f32 1e-05, %v2592_v56  ;;  %v2591_v60 = vmul.f32 0.03125, %v2587_v58  ;;  %v3640_v1 = vsel %vm109_vm0, %v3636_v7, 0.0  ;;  %v3635_v8 = vmul.f32 %v3633_v3, %v3633_v3 }
0x1a9a   :  { %3641 = vadd.xlane.f32.xlu0 %v3640_v1 }
0x1a9b   :  { %8711 = vrsqrt.f32 %v2594_v49  ;;  %v2593_v43 = vadd.f32 1e-05, %v2591_v60  ;;  %v3637_v28 = vsel %vm109_vm0, %v3635_v8, 0.0 }
0x1a9c   :  { %3638 = vadd.xlane.f32.xlu1 %v3637_v28 }
0x1a9d   :  { %8713 = vrsqrt.f32 %v2593_v43 }
0x1aa8   :  { %v8712_v17 = vpop.eup %8711 }
0x1aa9   :  { %v2598_v15 = vmul.f32 %v8712_v17, %v2582_v5  ;;  %v2630_v5 = vld [vmem:[%s10415_s5 + $0xf8] sm:$0xff] }
0x1aaa   :  { %v8714_v14 = vpop.eup %8713  ;;  %8279 = vmatprep.subr.mxu0 %v2630_v5 }
0x1aab   :  { %v2597_v33 = vmul.f32 %v8714_v14, %v2581_v51  ;;  %v2604_v46 = vmul.f32 %v2602_v16, %v2598_v15  ;;  %8280 = vmatpush3.msra.mxu0 %v2630_v5 }
0x1aac   :  { %8281 = vmatprep.subr.mxu0 %v2629_v22 }
0x1aad   :  { %v2603_v50 = vmul.f32 %v2602_v16, %v2597_v33  ;;  %v9748_v34 = vadd.f32 %v2608_v25, %v2604_v46  ;;  %8282 = vmatpush3.msra.mxu0 %v2629_v22 }
0x1aaf   :  { %v9753_v38 = vadd.f32 %v2608_v25, %v2603_v50  ;;  %2612 = vst.msk [vmem:[#allocation4 + $0x8] sm:$0xff] %vm109_vm0, %v9748_v34 }
0x1ab1   :  { %8272 = vmatprep.mubr.msk.f32.mxu1 %vm109_vm0, %v9753_v38  ;;  %2611 = vst.msk [vmem:[#allocation4] sm:$0xff] %vm109_vm0, %v9753_v38 }
0x1ab2   :  { %8273 = vmatmul.mubr.msk.f32.vlgmr.msra.gmra.mxu1 %vm109_vm0, %v9748_v34 }
0x1b23   :  { %v3642_v51 = vpop.xlane.xlu0 %3641 }
0x1b24   :  { %v3644_v54 = vmul.f32 0.03125, %v3642_v51 }
0x1b25   :  { %v3639_v24 = vpop.xlane.xlu1 %3638 }
0x1b26   :  { %v3646_v44 = vadd.f32 1e-05, %v3644_v54  ;;  %v3643_v0 = vmul.f32 0.03125, %v3639_v24 }
0x1b28   :  { %8715 = vrsqrt.f32 %v3646_v44  ;;  %v3645_v36 = vadd.f32 1e-05, %v3643_v0 }
0x1b2a   :  { %8717 = vrsqrt.f32 %v3645_v36 }
0x1b35   :  { %v8716_v41 = vpop.eup %8715 }
0x1b36   :  { %v3650_v62 = vmul.f32 %v8716_v41, %v3634_v29 }
0x1b37   :  { %v8718_v31 = vpop.eup %8717 }
0x1b38   :  { %v3649_v57 = vmul.f32 %v8718_v31, %v3633_v3  ;;  %v3656_v53 = vmul.f32 %v3654_v63, %v3650_v62 }
0x1b3a   :  { %v3655_v42 = vmul.f32 %v3654_v63, %v3649_v57  ;;  %v9774_v55 = vadd.f32 %v3660_v27, %v3656_v53 }
0x1b3c   :  { %v9772_v48 = vadd.f32 %v3660_v27, %v3655_v42 }
0x1b3e   :  { %8283 = vmatprep.mubr.msk.f32.mxu0 %vm109_vm0, %v9772_v48 }
0x1b3f   :  { %8284 = vmatmul.mubr.msk.f32.vlgmr.msra.gmra.mxu0 %vm109_vm0, %v9774_v55 }
0x1b72   :  { %v9780_v56 = vpop.f32.mrf.mxu1 }
0x1b73   :  { %v3826_v29 = vmul.f32 %v9780_v56, %v9026_v11  ;;  %v3939_v3 = vmul.f32 %v9780_v56, %v9018_v9  ;;  %v4224_v60 = vmul.f32 %v9780_v56, %v9023_v10  ;;  %v4044_v36 = vmul.f32 %v9780_v56, %v9034_v12 }
0x1b74   :  { %v9786_v7 = vpop.f32.mrf.mxu1  ;;  %v3937_v63 = vmul.f32 %v9780_v56, %v9036_v13 }
0x1b75   :  { %8286 = vmatprep.subr.msk.mxu1 %vm109_vm0, %v3826_v29  ;;  %8293 = vmatprep.subr.msk.mxu0 %vm109_vm0, %v3939_v3  ;;  %v3825_v58 = vmul.f32 %v9026_v11, %v9786_v7  ;;  %v3938_v49 = vmul.f32 %v9018_v9, %v9786_v7  ;;  %v4223_v43 = vmul.f32 %v9023_v10, %v9786_v7 }
0x1b76   :  { %8287 = vmatpush3.xpose.msk.msra.mxu1 %vm109_vm0, %v3826_v29  ;;  %8294 = vmatpush3.xpose.msk.msra.mxu0 %vm109_vm0, %v3939_v3  ;;  %v4043_v41 = vmul.f32 %v9786_v7, %v9034_v12  ;;  %v3936_v62 = vmul.f32 %v9786_v7, %v9036_v13 }
0x1b77   :  { %8288 = vmatprep.subr.msk.mxu1 %vm109_vm0, %v3825_v58  ;;  %8295 = vmatprep.subr.msk.mxu0 %vm109_vm0, %v3938_v49 }
0x1b7a   :  { %8289 = vmatpush3.xpose.msk.msra.mxu1 %vm109_vm0, %v3825_v58  ;;  %8296 = vmatpush3.xpose.msk.msra.mxu0 %vm109_vm0, %v3938_v49 }
0x1b7b   :  { %8314 = vmatprep.subr.msk.mxu0 %vm109_vm0, %v4224_v60 }
0x1bff   :  { %v9803_v1 = vpop.f32.mrf.mxu0 }
0x1c01   :  { %v9805_v8 = vpop.f32.mrf.mxu0 }
0x1c02   :  { %8290 = vmatprep.mubr.msk.f32.mxu1 %vm109_vm0, %v9805_v8  ;;  %8297 = vmatprep.mubr.msk.f32.mxu0 %vm109_vm0, %v9805_v8 }
0x1c03   :  { %8291 = vmatmul.mubr.msk.f32.vlgmr.msra.gmra.mxu1 %vm109_vm0, %v9803_v1  ;;  %8298 = vmatmul.mubr.msk.f32.vlgmr.msra.gmra.mxu0 %vm109_vm0, %v9803_v1 }
0x1c04   :  { %8315 = vmatpush3.xpose.msk.msra.mxu0 %vm109_vm0, %v4224_v60  ;;  %8318 = vmatprep.mubr.msk.f32.mxu0 %vm109_vm0, %v9805_v8 }
0x1c05   :  { %8316 = vmatprep.subr.msk.mxu0 %vm109_vm0, %v4223_v43 }
0x1c08   :  { %8317 = vmatpush3.xpose.msk.msra.mxu0 %vm109_vm0, %v4223_v43 }
0x1c0b   :  { %8319 = vmatmul.mubr.msk.f32.vlgmr.msra.gmra.mxu0 %vm109_vm0, %v9803_v1 }
0x1cc3   :  { %v8292_v28 = vpop.f32.mrf.mxu1  ;;  %v8299_v16 = vpop.f32.mrf.mxu0 }
0x1cc4   :  { %v4018_v17 = vadd.f32 %v8299_v16, %v9107_v39  ;;  %v3911_v14 = vadd.f32 %v8292_v28, %v9107_v39 }
0x1cc5   :  { %v3905_v15 = vpop.f32.mrf.mxu1  ;;  %v4012_v25 = vpop.f32.mrf.mxu0 }
0x1cc6   :  { %v4013_v26 = vadd.f32 %v4012_v25, %v9110_v40  ;;  %v4024_v2 = vsel %vm288_vm12, %v4018_v17, -inf  ;;  %v3906_v33 = vadd.f32 %v3905_v15, %v9110_v40  ;;  %v3917_v5 = vsel %vm288_vm12, %v3911_v14, -inf }
0x1cc7   :  { %4025 = vmax.xlane.f32.xlu0 %v4024_v2 }
0x1cc8   :  { %v4021_v46 = vsel %vm288_vm12, %v4013_v26, -inf  ;;  %v3914_v51 = vsel %vm288_vm12, %v3906_v33, -inf }
0x1cc9   :  { %4022 = vmax.xlane.f32.xlu1 %v4021_v46 }
0x1ccb   :  { %v8320_v50 = vpop.f32.mrf.mxu0  ;;  %3918 = vmax.xlane.f32.xlu0 %v3917_v5 }
0x1ccc   :  { %v4303_v22 = vadd.f32 %v8320_v50, %v9107_v39 }
0x1ccd   :  { %v4297_v54 = vpop.f32.mrf.mxu0  ;;  %3915 = vmax.xlane.f32.xlu1 %v3914_v51 }
0x1cce   :  { %v4298_v24 = vadd.f32 %v4297_v54, %v9110_v40  ;;  %v4309_v44 = vsel %vm288_vm12, %v4303_v22, -inf }
0x1ccf   :  { %4310 = vmax.xlane.f32.xlu0 %v4309_v44 }
0x1cd0   :  { %v4306_v0 = vsel %vm288_vm12, %v4298_v24, -inf }
0x1cd1   :  { %4307 = vmax.xlane.f32.xlu1 %v4306_v0 }
0x1ce2   :  { %4049 = vrot.lane.b32.xlu1 %v4044_v36, %s8916_s1 }
0x1ce5   :  { %4047 = vrot.lane.b32.xlu0 %v4043_v41, %s8916_s1 }
0x1ce6   :  { %4138 = vrot.lane.b32.xlu1 %v3937_v63, %s8916_s1 }
0x1cea   :  { %4136 = vrot.lane.b32.xlu1 %v3936_v62, %s8916_s1 }
0x1d50   :  { %v4026_v31 = vpop.xlane.xlu0 %4025 }
0x1d51   :  { %v4028_v57 = vsub.f32 %v4018_v17, %v4026_v31  ;;  %v4328_v31 = vmul.f32 %v9786_v7, %v9056_v20 }
0x1d52   :  { %v4023_v53 = vpop.xlane.xlu1 %4022 }
0x1d53   :  { %v4031_v27 = vmul.f32 1.442695, %v4028_v57  ;;  %v4027_v42 = vsub.f32 %v4013_v26, %v4023_v53  ;;  %v4329_v57 = vmul.f32 %v9780_v56, %v9056_v20 }
0x1d54   :  { %v3919_v29 = vpop.xlane.xlu0 %3918 }
0x1d55   :  { %8719 = vpow2.f32 %v4031_v27  ;;  %v4029_v3 = vmul.f32 1.442695, %v4027_v42  ;;  %v3921_v58 = vsub.f32 %v3911_v14, %v3919_v29 }
0x1d56   :  { %v3916_v49 = vpop.xlane.xlu1 %3915 }
0x1d57   :  { %8721 = vpow2.f32 %v4029_v3  ;;  %v3924_v60 = vmul.f32 1.442695, %v3921_v58  ;;  %v3920_v43 = vsub.f32 %v3906_v33, %v3916_v49 }
0x1d58   :  { %v4311_v28 = vpop.xlane.xlu0 %4310 }
0x1d59   :  { %8723 = vpow2.f32 %v3924_v60  ;;  %v3922_v16 = vmul.f32 1.442695, %v3920_v43  ;;  %v4313_v15 = vsub.f32 %v4303_v22, %v4311_v28 }
0x1d5a   :  { %v4308_v25 = vpop.xlane.xlu1 %4307 }
0x1d5b   :  { %8725 = vpow2.f32 %v3922_v16  ;;  %v4316_v2 = vmul.f32 1.442695, %v4313_v15  ;;  %v4312_v46 = vsub.f32 %v4298_v24, %v4308_v25 }
0x1d5c   :  { %v4048_v26 = vpop.permute.xlu0 %4047 }
0x1d5d   :  { %8727 = vpow2.f32 %v4316_v2  ;;  %v4314_v17 = vmul.f32 1.442695, %v4312_v46 }
0x1d5e   :  { %v4050_v5 = vpop.permute.xlu1 %4049 }
0x1d5f   :  { %8729 = vpow2.f32 %v4314_v17  ;;  %8300 = vmatprep.subr.mxu1 %v4050_v5 }
0x1d60   :  { %8301 = vmatpush3.msra.mxu1 %v4050_v5 }
0x1d61   :  { %8302 = vmatprep.subr.mxu1 %v4048_v26 }
0x1d62   :  { %v8720_v14 = vpop.eup %8719  ;;  %8303 = vmatpush3.msra.mxu1 %v4048_v26  ;;  %v4139_v50 = vpop.permute.xlu1 %4138 }
0x1d63   :  { %8307 = vmatprep.subr.mxu1 %v4139_v50  ;;  %v4036_v33 = vsel %vm288_vm12, %v8720_v14, 0.0 }
0x1d64   :  { %v8722_v51 = vpop.eup %8721  ;;  %4037 = vadd.xlane.f32.xlu0 %v4036_v33 }
0x1d65   :  { %v4033_v22 = vsel %vm288_vm12, %v8722_v51, 0.0 }
0x1d66   :  { %v8724_v54 = vpop.eup %8723  ;;  %4034 = vadd.xlane.f32.xlu1 %v4033_v22  ;;  %v4137_v53 = vpop.permute.xlu1 %4136  ;;  %v4421_v22 = vmul.f32 %v9133_v59, %v9786_v7 }
0x1d67   :  { %v3929_v24 = vsel %vm288_vm12, %v8724_v54, 0.0 }
0x1d68   :  { %v8726_v44 = vpop.eup %8725  ;;  %3930 = vadd.xlane.f32.xlu0 %v3929_v24 }
0x1d69   :  { %v3926_v0 = vsel %vm288_vm12, %v8726_v44, 0.0 }
0x1d6a   :  { %v8728_v36 = vpop.eup %8727  ;;  %3927 = vadd.xlane.f32.xlu1 %v3926_v0 }
0x1d6b   :  { %v4321_v41 = vsel %vm288_vm12, %v8728_v36, 0.0 }
0x1d6c   :  { %v8730_v63 = vpop.eup %8729  ;;  %4322 = vadd.xlane.f32.xlu0 %v4321_v41 }
0x1d6d   :  { %v4318_v62 = vsel %vm288_vm12, %v8730_v63, 0.0 }
0x1d6e   :  { %4319 = vadd.xlane.f32.xlu1 %v4318_v62 }
0x1d7f   :  { %4332 = vrot.lane.b32.xlu1 %v4328_v31, %s8916_s1 }
0x1d82   :  { %4334 = vrot.lane.b32.xlu0 %v4329_v57, %s8916_s1 }
0x1ded   :  { %v4038_v27 = vpop.xlane.xlu0 %4037 }
0x1dee   :  { %8731 = vrcp.f32 %v4038_v27 }
0x1def   :  { %v4035_v42 = vpop.xlane.xlu1 %4034 }
0x1df0   :  { %8733 = vrcp.f32 %v4035_v42 }
0x1df1   :  { %v3931_v29 = vpop.xlane.xlu0 %3930 }
0x1df2   :  { %8735 = vrcp.f32 %v3931_v29 }
0x1df3   :  { %v3928_v3 = vpop.xlane.xlu1 %3927 }
0x1df4   :  { %8737 = vrcp.f32 %v3928_v3  ;;  %v4527_v3 = vmul.f32 %v9780_v56, %v9166_v52 }
0x1df5   :  { %v4323_v58 = vpop.xlane.xlu0 %4322 }
0x1df6   :  { %8739 = vrcp.f32 %v4323_v58 }
0x1df7   :  { %v4320_v49 = vpop.xlane.xlu1 %4319 }
0x1df8   :  { %8741 = vrcp.f32 %v4320_v49 }
0x1df9   :  { %v4335_v5 = vpop.permute.xlu0 %4334 }
0x1dfb   :  { %v8732_v60 = vpop.eup %8731 }
0x1dfc   :  { %v4042_v16 = vmul.f32 %v8732_v60, %v8720_v14  ;;  %v4333_v14 = vpop.permute.xlu1 %4332 }
0x1dfd   :  { %v8734_v43 = vpop.eup %8733 }
0x1dfe   :  { %v4040_v28 = vmul.f32 %v8734_v43, %v8722_v51  ;;  %v4422_v51 = vmul.f32 %v9780_v56, %v9133_v59 }
0x1dff   :  { %v8736_v15 = vpop.eup %8735 }
0x1e00   :  { %8304 = vmatprep.mubr.msk.f32.mxu1 %vm288_vm12, %v4040_v28  ;;  %v3935_v46 = vmul.f32 %v8736_v15, %v8724_v54 }
0x1e01   :  { %v8738_v25 = vpop.eup %8737  ;;  %8305 = vmatmul.mubr.msk.f32.vlgmr.msra.gmra.mxu1 %vm288_vm12, %v4042_v16 }
0x1e02   :  { %8308 = vmatpush3.msra.mxu1 %v4139_v50  ;;  %v3933_v2 = vmul.f32 %v8738_v25, %v8726_v44 }
0x1e03   :  { %8309 = vmatprep.subr.mxu1 %v4137_v53  ;;  %v8740_v17 = vpop.eup %8739 }
0x1e04   :  { %8310 = vmatpush3.msra.mxu1 %v4137_v53  ;;  %8311 = vmatprep.mubr.msk.f32.mxu1 %vm288_vm12, %v3933_v2  ;;  %v4327_v50 = vmul.f32 %v8740_v17, %v8728_v36  ;;  %v4526_v17 = vmul.f32 %v9786_v7, %v9166_v52  ;;  %v2635_v7 = vld [vmem:[%s10415_s5 + $0x120] sm:$0xff] }
0x1e05   :  { %v8742_v26 = vpop.eup %8741  ;;  %8321 = vmatprep.subr.mxu1 %v4335_v5  ;;  %8312 = vmatmul.mubr.msk.f32.vlgmr.msra.gmra.mxu1 %vm288_vm12, %v3935_v46 }
0x1e06   :  { %8322 = vmatpush3.msra.mxu1 %v4335_v5  ;;  %v4325_v33 = vmul.f32 %v8742_v26, %v8730_v63 }
0x1e07   :  { %8323 = vmatprep.subr.mxu1 %v4333_v14 }
0x1e08   :  { %8324 = vmatpush3.msra.mxu1 %v4333_v14  ;;  %8325 = vmatprep.mubr.msk.f32.mxu1 %vm288_vm12, %v4325_v33  ;;  %v2636_v33 = vld [vmem:[%s10415_s5 + $0x128] sm:$0xff] }
0x1e09   :  { %8328 = vmatprep.subr.msk.mxu1 %vm109_vm0, %v4422_v51  ;;  %8326 = vmatmul.mubr.msk.f32.vlgmr.msra.gmra.mxu1 %vm288_vm12, %v4327_v50 }
0x1e0a   :  { %8329 = vmatpush3.xpose.msk.msra.mxu1 %vm109_vm0, %v4422_v51  ;;  %8332 = vmatprep.mubr.msk.f32.mxu1 %vm109_vm0, %v9805_v8 }
0x1e0b   :  { %8330 = vmatprep.subr.msk.mxu1 %vm109_vm0, %v4421_v22 }
0x1e0e   :  { %8331 = vmatpush3.xpose.msk.msra.mxu1 %vm109_vm0, %v4421_v22 }
0x1e11   :  { %8333 = vmatmul.mubr.msk.f32.vlgmr.msra.gmra.mxu1 %vm109_vm0, %v9803_v1 }
0x1ec1   :  { %v8306_v54 = vpop.f32.mrf.mxu1 }
0x1ec3   :  { %v4125_v24 = vpop.f32.mrf.mxu1 }
0x1ec5   :  { %v8313_v44 = vpop.f32.mrf.mxu1 }
0x1ec6   :  { %v4220_v0 = vadd.f32 %v8313_v44, %v8306_v54  ;;  %v2633_v44 = vld [vmem:[%s10415_s5 + $0x110] sm:$0xff] }
0x1ec7   :  { %v4214_v36 = vpop.f32.mrf.mxu1 }
0x1ec8   :  { %v4215_v41 = vadd.f32 %v4214_v36, %v4125_v24  ;;  %v2634_v24 = vld [vmem:[%s10415_s5 + $0x118] sm:$0xff] }
0x1ec9   :  { %v8327_v63 = vpop.f32.mrf.mxu1 }
0x1eca   :  { %v4420_v62 = vadd.f32 %v8327_v63, %v4220_v0 }
0x1ecb   :  { %v4410_v31 = vpop.f32.mrf.mxu1 }
0x1ecc   :  { %v4419_v57 = vadd.f32 %v4410_v31, %v4215_v41 }
0x1ed1   :  { %v8334_v53 = vpop.f32.mrf.mxu1 }
0x1ed2   :  { %v4501_v8 = vadd.f32 %v8334_v53, %v9107_v39 }
0x1ed3   :  { %v4495_v27 = vpop.f32.mrf.mxu1 }
0x1ed4   :  { %v4496_v42 = vadd.f32 %v4495_v27, %v9110_v40  ;;  %v4507_v29 = vsel %vm288_vm12, %v4501_v8, -inf }
0x1ed5   :  { %4508 = vmax.xlane.f32.xlu1 %v4507_v29 }
0x1ed6   :  { %v4504_v1 = vsel %vm288_vm12, %v4496_v42, -inf }
0x1ed7   :  { %4505 = vmax.xlane.f32.xlu0 %v4504_v1 }
0x1ee6   :  { %4532 = vrot.lane.b32.xlu1 %v4527_v3, %s8916_s1 }
0x1f5e   :  { %v4509_v58 = vpop.xlane.xlu1 %4508 }
0x1f5f   :  { %v4511_v49 = vsub.f32 %v4501_v8, %v4509_v58 }
0x1f60   :  { %v4506_v60 = vpop.xlane.xlu0 %4505 }
0x1f61   :  { %v4514_v43 = vmul.f32 1.442695, %v4511_v49  ;;  %v4510_v28 = vsub.f32 %v4496_v42, %v4506_v60 }
0x1f62   :  { %v4533_v16 = vpop.permute.xlu1 %4532 }
0x1f63   :  { %8743 = vpow2.f32 %v4514_v43  ;;  %v4512_v15 = vmul.f32 1.442695, %v4510_v28  ;;  %8335 = vmatprep.subr.mxu0 %v4533_v16 }
0x1f64   :  { %8336 = vmatpush3.msra.mxu0 %v4533_v16  ;;  %v2648_v16 = vld [vmem:[%s10416_s6 + $0x60] sm:$0xff] }
0x1f65   :  { %8745 = vpow2.f32 %v4512_v15  ;;  %v2647_v15 = vld [vmem:[%s10416_s6 + $0x58] sm:$0xff] }
0x1f70   :  { %v8744_v25 = vpop.eup %8743 }
0x1f71   :  { %v4519_v2 = vsel %vm288_vm12, %v8744_v25, 0.0 }
0x1f72   :  { %v8746_v46 = vpop.eup %8745  ;;  %4520 = vadd.xlane.f32.xlu0 %v4519_v2  ;;  %v2644_v2 = vld [vmem:[%s10415_s5 + $0x168] sm:$0xff] }
0x1f73   :  { %v4516_v56 = vsel %vm288_vm12, %v8746_v46, 0.0 }
0x1f76   :  { %4517 = vadd.xlane.f32.xlu0 %v4516_v56  ;;  %v2642_v56 = vld [vmem:[%s10415_s5 + $0x158] sm:$0xff] }
0x1f8c   :  { %4530 = vrot.lane.b32.xlu0 %v4526_v17, %s8916_s1  ;;  %v2641_v17 = vld [vmem:[%s10415_s5 + $0x150] sm:$0xff] }
0x1ffb   :  { %v4521_v5 = vpop.xlane.xlu0 %4520 }
0x1ffc   :  { %8747 = vrcp.f32 %v4521_v5 }
0x1fff   :  { %v4518_v26 = vpop.xlane.xlu0 %4517 }
0x2000   :  { %8749 = vrcp.f32 %v4518_v26 }
0x2003   :  { %v4531_v14 = vpop.permute.xlu0 %4530 }
0x2004   :  { %8337 = vmatprep.subr.mxu0 %v4531_v14 }
0x2005   :  { %8338 = vmatpush3.msra.mxu0 %v4531_v14 }
0x2006   :  { %8342 = vmatprep.subr.mxu0 %v2636_v33 }
0x2009   :  { %v8748_v51 = vpop.eup %8747 }
0x200a   :  { %v4525_v54 = vmul.f32 %v8748_v51, %v8744_v25  ;;  %v2646_v25 = vld [vmem:[%s10416_s6 + $0x50] sm:$0xff] }
0x200d   :  { %v8750_v50 = vpop.eup %8749 }
0x200e   :  { %v4523_v22 = vmul.f32 %v8750_v50, %v8746_v46  ;;  %v2643_v46 = vld [vmem:[%s10415_s5 + $0x160] sm:$0xff] }
0x2010   :  { %8339 = vmatprep.mubr.msk.f32.mxu0 %vm288_vm12, %v4523_v22 }
0x2011   :  { %8340 = vmatmul.mubr.msk.f32.vlgmr.msra.gmra.mxu0 %vm288_vm12, %v4525_v54  ;;  %v4731_v54 = vrot.slane %v9766_v47, %v9310_v32 }
0x2012   :  { %8343 = vmatpush3.msra.mxu0 %v2636_v33 }
0x2013   :  { %8344 = vmatprep.subr.mxu0 %v2635_v7 }
0x2014   :  { %8345 = vmatpush3.msra.mxu0 %v2635_v7 }
0x2015   :  { %8346 = vmatprep.subr.mxu0 %v2634_v24 }
0x2016   :  { %8347 = vmatpush3.msra.mxu0 %v2634_v24 }
0x2017   :  { %8348 = vmatprep.subr.mxu0 %v2633_v44 }
0x2018   :  { %8349 = vmatpush3.msra.mxu0 %v2633_v44 }
0x2019   :  { %8364 = vmatprep.subr.mxu0 %v2644_v2 }
0x20d1   :  { %v8341_v0 = vpop.f32.mrf.mxu0 }
0x20d2   :  { %v4618_v63 = vadd.f32 %v8341_v0, %v4420_v62 }
0x20d3   :  { %v4608_v36 = vpop.f32.mrf.mxu0 }
0x20d4   :  { %v4617_v41 = vadd.f32 %v4608_v36, %v4419_v57  ;;  %v4737_v36 = vrot.slane %v9766_v47, %v9315_v35 }
0x20d6   :  { %8350 = vmatprep.mubr.msk.f32.mxu0 %vm109_vm0, %v4617_v41 }
0x20d7   :  { %8351 = vmatmul.mubr.msk.f32.vlgmr.msra.gmra.mxu0 %vm109_vm0, %v4618_v63 }
0x20d8   :  { %8365 = vmatpush3.msra.mxu0 %v2644_v2 }
0x20d9   :  { %8366 = vmatprep.subr.mxu0 %v2643_v46 }
0x20da   :  { %8367 = vmatpush3.msra.mxu0 %v2643_v46 }
0x20db   :  { %8368 = vmatprep.subr.mxu0 %v2642_v56 }
0x20dc   :  { %8369 = vmatpush3.msra.mxu0 %v2642_v56 }
0x20dd   :  { %8370 = vmatprep.subr.mxu0 %v2641_v17 }
0x20de   :  { %8371 = vmatpush3.msra.mxu0 %v2641_v17 }
0x2197   :  { %v8352_v31 = vpop.f32.mrf.mxu0 }
0x2198   :  { %v4701_v53 = vadd.f32 %v8352_v31, %v9774_v55 }
0x2199   :  { %v4691_v8 = vpop.f32.mrf.mxu0 }
0x219a   :  { %v4700_v27 = vadd.f32 %v4691_v8, %v9772_v48  ;;  %v4705_v42 = vsel %vm109_vm0, %v4701_v53, 0.0  ;;  %v2649_v48 = vld [vmem:[%s10416_s6 + $0x68] sm:$0xff]  ;;  %v2639_v8 = vld [vmem:[%s10415_s5 + $0x140] sm:$0xff] }
0x219b   :  { %4706 = vadd.xlane.f32.xlu0 %v4705_v42  ;;  %8353 = vmatprep.subr.mxu1 %v2649_v48  ;;  %v2637_v42 = vld [vmem:[%s10415_s5 + $0x130] sm:$0xff] }
0x219c   :  { %v4702_v29 = vsel %vm109_vm0, %v4700_v27, 0.0  ;;  %8354 = vmatpush3.msra.mxu1 %v2649_v48 }
0x219d   :  { %4703 = vadd.xlane.f32.xlu1 %v4702_v29  ;;  %8355 = vmatprep.subr.mxu1 %v2648_v16  ;;  %v7553_v29 = vld [vmem:[%s10416_s6 + $0x70] ss:$0 sm:$0xff] }
0x219e   :  { %8356 = vmatpush3.msra.mxu1 %v2648_v16 }
0x219f   :  { %8357 = vmatprep.subr.mxu1 %v2647_v15 }
0x21a0   :  { %8358 = vmatpush3.msra.mxu1 %v2647_v15 }
0x21a1   :  { %8359 = vmatprep.subr.mxu1 %v2646_v25 }
0x21a2   :  { %8360 = vmatpush3.msra.mxu1 %v2646_v25 }
0x2224   :  { %v4707_v1 = vpop.xlane.xlu0 %4706 }
0x2225   :  { %v4709_v3 = vmul.f32 0.03125, %v4707_v1 }
0x2226   :  { %v4704_v57 = vpop.xlane.xlu1 %4703 }
0x2227   :  { %v4711_v62 = vsub.f32 %v4701_v53, %v4709_v3  ;;  %v4708_v58 = vmul.f32 0.03125, %v4704_v57  ;;  %v2640_v53 = vld [vmem:[%s10415_s5 + $0x148] sm:$0xff] }
0x2228   :  { %8372 = vmatprep.subr.mxu0 %v2640_v53 }
0x2229   :  { %v4710_v49 = vsub.f32 %v4700_v27, %v4708_v58  ;;  %v4713_v60 = vmul.f32 %v4711_v62, %v4711_v62  ;;  %8373 = vmatpush3.msra.mxu0 %v2640_v53  ;;  %v2638_v27 = vld [vmem:[%s10415_s5 + $0x138] sm:$0xff] }
0x222a   :  { %8374 = vmatprep.subr.mxu0 %v2639_v8 }
0x222b   :  { %v4717_v43 = vsel %vm109_vm0, %v4713_v60, 0.0  ;;  %v4712_v28 = vmul.f32 %v4710_v49, %v4710_v49  ;;  %8375 = vmatpush3.msra.mxu0 %v2639_v8  ;;  %v4829_v60 = vsub.s32 6, %v9252_v18 }
0x222c   :  { %4718 = vadd.xlane.f32.xlu0 %v4717_v43  ;;  %8376 = vmatprep.subr.mxu0 %v2638_v27 }
0x222d   :  { %v4714_v55 = vsel %vm109_vm0, %v4712_v28, 0.0  ;;  %8377 = vmatpush3.msra.mxu0 %v2638_v27  ;;  %v4830_v43 = vrot.slane %v9766_v47, %v4829_v60  ;;  %v4948_v27 = vsub.s32 5, %v9252_v18 }
0x222e   :  { %4715 = vadd.xlane.f32.xlu1 %v4714_v55  ;;  %8378 = vmatprep.subr.mxu0 %v2637_v42 }
0x222f   :  { %8379 = vmatpush3.msra.mxu0 %v2637_v42  ;;  %v4943_v42 = vrot.slane %v9766_v47, %v9289_v45 }
0x22b5   :  { %v4719_v5 = vpop.xlane.xlu0 %4718 }
0x22b6   :  { %v4721_v26 = vmul.f32 0.03125, %v4719_v5 }
0x22b7   :  { %v4716_v14 = vpop.xlane.xlu1 %4715 }
0x22b8   :  { %v4723_v33 = vadd.f32 1e-05, %v4721_v26  ;;  %v4720_v51 = vmul.f32 0.03125, %v4716_v14 }
0x22ba   :  { %8751 = vrsqrt.f32 %v4723_v33  ;;  %v4722_v50 = vadd.f32 1e-05, %v4720_v51 }
0x22bc   :  { %8753 = vrsqrt.f32 %v4722_v50 }
0x22c7   :  { %v8752_v22 = vpop.eup %8751 }
0x22c8   :  { %v4727_v7 = vmul.f32 %v8752_v22, %v4711_v62 }
0x22c9   :  { %v8754_v24 = vpop.eup %8753 }
0x22ca   :  { %v4726_v44 = vmul.f32 %v8754_v24, %v4710_v49  ;;  %v4733_v0 = vmul.f32 %v4731_v54, %v4727_v7  ;;  %v4958_v7 = vld [vmem:[%s10413_s3 + $0x78] sm:$0xff]  ;;  %v4957_v24 = vld [vmem:[%s10413_s3 + $0x70] sm:$0xff] }
0x22cb   :  { %8383 = vmatprep.subr.mxu1 %v4958_v7 }
0x22cc   :  { %v4732_v41 = vmul.f32 %v4731_v54, %v4726_v44  ;;  %v4739_v31 = vadd.f32 %v4737_v36, %v4733_v0  ;;  %v4956_v44 = vld [vmem:[%s10413_s3 + $0x68] sm:$0xff]  ;;  %v4955_v0 = vld [vmem:[%s10413_s3 + $0x60] sm:$0xff] }
0x22ce   :  { %v4738_v63 = vadd.f32 %v4737_v36, %v4732_v41 }
0x22d0   :  { %8361 = vmatprep.mubr.msk.f32.mxu1 %vm109_vm0, %v4738_v63 }
0x22d1   :  { %8362 = vmatmul.mubr.msk.f32.vlgmr.msra.gmra.mxu1 %vm109_vm0, %v4739_v31 }
0x22d2   :  { %8384 = vmatpush3.msra.mxu1 %v4958_v7 }
0x22d3   :  { %8385 = vmatprep.subr.mxu1 %v4957_v24 }
0x22d4   :  { %8386 = vmatpush3.msra.mxu1 %v4957_v24 }
0x22d5   :  { %8387 = vmatprep.subr.mxu1 %v4956_v44 }
0x22d6   :  { %8388 = vmatpush3.msra.mxu1 %v4956_v44 }
0x22d7   :  { %8389 = vmatprep.subr.mxu1 %v4955_v0 }
0x22d8   :  { %8390 = vmatpush3.msra.mxu1 %v4955_v0 }
0x2391   :  { %v8363_v1 = vpop.f32.mrf.mxu1 }
0x2392   :  { %v4822_v3 = vadd.f32 %v8363_v1, %v7553_v29 }
0x2393   :  { %v4816_v57 = vpop.f32.mrf.mxu1 }
0x2394   :  { %v4817_v62 = vadd.f32 %v7553_v29, %v4816_v57  ;;  %v4826_v49 = vmax.f32 %v4822_v3, 0.0  ;;  %v4949_v3 = vrot.slane %v9766_v47, %v4948_v27 }
0x2396   :  { %v4825_v58 = vmax.f32 %v4817_v62, 0.0 }
0x2398   :  { %8380 = vmatprep.mubr.msk.f32.mxu0 %vm1243_vm2, %v4825_v58 }
0x2399   :  { %8381 = vmatmul.mubr.msk.f32.vlgmr.msra.gmra.mxu0 %vm1243_vm2, %v4826_v49 }
0x2459   :  { %v8382_v28 = vpop.f32.mrf.mxu0 }
0x245a   :  { %v4909_v55 = vadd.f32 %v8382_v28, %v4830_v43 }
0x245b   :  { %v4903_v48 = vpop.f32.mrf.mxu0 }
0x245c   :  { %v4913_v16 = vadd.f32 %v4909_v55, %v4739_v31  ;;  %v4904_v15 = vadd.f32 %v4903_v48, %v4830_v43 }
0x245e   :  { %v4912_v25 = vadd.f32 %v4904_v15, %v4738_v63  ;;  %v4917_v2 = vsel %vm109_vm0, %v4913_v16, 0.0 }
0x245f   :  { %4918 = vadd.xlane.f32.xlu0 %v4917_v2 }
0x2460   :  { %v4914_v46 = vsel %vm109_vm0, %v4912_v25, 0.0 }
0x2461   :  { %4915 = vadd.xlane.f32.xlu1 %v4914_v46 }
0x24e8   :  { %v4919_v56 = vpop.xlane.xlu0 %4918 }
0x24e9   :  { %v4921_v17 = vmul.f32 0.03125, %v4919_v56 }
0x24ea   :  { %v4916_v5 = vpop.xlane.xlu1 %4915 }
0x24eb   :  { %v4923_v26 = vsub.f32 %v4913_v16, %v4921_v17  ;;  %v4920_v14 = vmul.f32 0.03125, %v4916_v5 }
0x24ed   :  { %v4922_v33 = vsub.f32 %v4912_v25, %v4920_v14  ;;  %v4925_v51 = vmul.f32 %v4923_v26, %v4923_v26 }
0x24ef   :  { %v4929_v50 = vsel %vm109_vm0, %v4925_v51, 0.0  ;;  %v4924_v22 = vmul.f32 %v4922_v33, %v4922_v33 }
0x24f0   :  { %4930 = vadd.xlane.f32.xlu0 %v4929_v50 }
0x24f1   :  { %v4926_v54 = vsel %vm109_vm0, %v4924_v22, 0.0 }
0x24f2   :  { %4927 = vadd.xlane.f32.xlu1 %v4926_v54 }
0x2579   :  { %v4931_v36 = vpop.xlane.xlu0 %4930 }
0x257a   :  { %v4933_v41 = vmul.f32 0.03125, %v4931_v36 }
0x257b   :  { %v4928_v63 = vpop.xlane.xlu1 %4927 }
0x257c   :  { %v4935_v31 = vadd.f32 1e-05, %v4933_v41  ;;  %v4932_v53 = vmul.f32 0.03125, %v4928_v63 }
0x257e   :  { %8755 = vrsqrt.f32 %v4935_v31  ;;  %v4934_v8 = vadd.f32 1e-05, %v4932_v53 }
0x2580   :  { %8757 = vrsqrt.f32 %v4934_v8 }
0x258b   :  { %v8756_v29 = vpop.eup %8755 }
0x258c   :  { %v4939_v1 = vmul.f32 %v8756_v29, %v4923_v26 }
0x258d   :  { %v8758_v57 = vpop.eup %8757 }
0x258e   :  { %v4938_v62 = vmul.f32 %v8758_v57, %v4922_v33  ;;  %v4945_v58 = vmul.f32 %v4943_v42, %v4939_v1 }
0x2590   :  { %v4944_v49 = vmul.f32 %v4943_v42, %v4938_v62  ;;  %v9985_v43 = vadd.f32 %v4949_v3, %v4945_v58 }
0x2592   :  { %v9987_v28 = vadd.f32 %v4949_v3, %v4944_v49  ;;  %4954 = vst.msk [vmem:[#allocation6 + $0x18] sm:$0xff] %vm109_vm0, %v9985_v43 }
0x2594   :  { %4953 = vst.msk [vmem:[#allocation6 + $0x10] sm:$0xff] %vm109_vm0, %v9987_v28  ;;  %8391 = vmatprep.mubr.msk.f32.mxu1 %vm109_vm0, %v9987_v28 }
0x2595   :  { %8392 = vmatmul.mubr.msk.f32.vlgmr.msra.gmra.mxu1 %vm109_vm0, %v9985_v43 }
0x2655   :  { %v9997_v47 = vpop.f32.mrf.mxu1 }
0x2656   :  { %v5188_v55 = vmul.f32 %v9997_v47, %v9034_v12  ;;  %v5071_v48 = vmul.f32 %v9997_v47, %v9036_v13  ;;  %v5477_v15 = vmul.f32 %v9997_v47, %v9056_v20  ;;  %v5297_v57 = vmul.f32 %v9997_v47, %v9139_v6 }
0x2657   :  { %v10003_v16 = vpop.f32.mrf.mxu1  ;;  %v5186_v62 = vmul.f32 %v9997_v47, %v9137_v4 }
0x2658   :  { %5193 = vrot.lane.b32.xlu1 %v5188_v55, %s8916_s1  ;;  %5076 = vrot.lane.b32.xlu0 %v5071_v48, %s8916_s1  ;;  %v5187_v25 = vmul.f32 %v10003_v16, %v9034_v12  ;;  %v5070_v2 = vmul.f32 %v10003_v16, %v9036_v13  ;;  %v5476_v46 = vmul.f32 %v10003_v16, %v9056_v20 }
0x2659   :  { %8398 = vmatprep.mubr.msk.f32.mxu1 %vm109_vm0, %v10003_v16  ;;  %8405 = vmatprep.mubr.msk.f32.mxu0 %vm109_vm0, %v10003_v16  ;;  %v5185_v58 = vmul.f32 %v10003_v16, %v9137_v4  ;;  %v5296_v49 = vmul.f32 %v10003_v16, %v9139_v6  ;;  %v5585_v55 = vmul.f32 %v10003_v16, %v9151_v19 }
0x265a   :  { %v5586_v48 = vmul.f32 %v9997_v47, %v9151_v19 }
0x265c   :  { %5482 = vrot.lane.b32.xlu0 %v5477_v15, %s8916_s1  ;;  %5191 = vrot.lane.b32.xlu1 %v5187_v25, %s8916_s1 }
0x2660   :  { %5074 = vrot.lane.b32.xlu1 %v5070_v2, %s8916_s1 }
0x2664   :  { %5480 = vrot.lane.b32.xlu1 %v5476_v46, %s8916_s1 }
0x26ca   :  { %v5194_v56 = vpop.permute.xlu1 %5193  ;;  %v5077_v17 = vpop.permute.xlu0 %5076 }
0x26cb   :  { %8394 = vmatprep.subr.msk.mxu1 %vm109_vm0, %v5077_v17  ;;  %8401 = vmatprep.subr.msk.mxu0 %vm109_vm0, %v5194_v56 }
0x26cc   :  { %8395 = vmatpush3.xpose.msk.msra.mxu1 %vm109_vm0, %v5077_v17  ;;  %8402 = vmatpush3.xpose.msk.msra.mxu0 %vm109_vm0, %v5194_v56 }
0x26ce   :  { %v5192_v5 = vpop.permute.xlu1 %5191  ;;  %v5483_v26 = vpop.permute.xlu0 %5482 }
0x26cf   :  { %8403 = vmatprep.subr.msk.mxu0 %vm109_vm0, %v5192_v5 }
0x26d0   :  { %8404 = vmatpush3.xpose.msk.msra.mxu0 %vm109_vm0, %v5192_v5 }
0x26d1   :  { %8422 = vmatprep.subr.msk.mxu0 %vm109_vm0, %v5483_v26 }
0x26d2   :  { %v5075_v14 = vpop.permute.xlu1 %5074 }
0x26d3   :  { %8396 = vmatprep.subr.msk.mxu1 %vm109_vm0, %v5075_v14  ;;  %8406 = vmatmul.mubr.msk.f32.vlgmr.msra.gmra.mxu0 %vm109_vm0, %v9997_v47 }
0x26d4   :  { %8397 = vmatpush3.xpose.msk.msra.mxu1 %vm109_vm0, %v5075_v14  ;;  %8423 = vmatpush3.xpose.msk.msra.mxu0 %vm109_vm0, %v5483_v26 }
0x26d5   :  { %8426 = vmatprep.mubr.msk.f32.mxu0 %vm109_vm0, %v10003_v16 }
0x26d6   :  { %v5481_v33 = vpop.permute.xlu1 %5480 }
0x26d7   :  { %8399 = vmatmul.mubr.msk.f32.vlgmr.msra.gmra.mxu1 %vm109_vm0, %v9997_v47  ;;  %8424 = vmatprep.subr.msk.mxu0 %vm109_vm0, %v5481_v33 }
0x26d8   :  { %8425 = vmatpush3.xpose.msk.msra.mxu0 %vm109_vm0, %v5481_v33 }
0x26db   :  { %8427 = vmatmul.mubr.msk.f32.vlgmr.msra.gmra.mxu0 %vm109_vm0, %v9997_v47 }
0x2793   :  { %v8407_v51 = vpop.f32.mrf.mxu0 }
0x2794   :  { %v5271_v50 = vadd.f32 %v8407_v51, %v9613_v30 }
0x2795   :  { %v5265_v22 = vpop.f32.mrf.mxu0 }
0x2796   :  { %v5266_v54 = vadd.f32 %v5265_v22, %v9616_v37  ;;  %v5277_v7 = vsel %vm288_vm12, %v5271_v50, -inf }
0x2797   :  { %5278 = vmax.xlane.f32.xlu1 %v5277_v7  ;;  %v8400_v24 = vpop.f32.mrf.mxu1 }
0x2798   :  { %v5274_v44 = vsel %vm288_vm12, %v5266_v54, -inf  ;;  %v5160_v63 = vadd.f32 %v8400_v24, %v9613_v30 }
0x2799   :  { %5275 = vmax.xlane.f32.xlu0 %v5274_v44  ;;  %v5154_v0 = vpop.f32.mrf.mxu1 }
0x279a   :  { %v5155_v36 = vadd.f32 %v5154_v0, %v9616_v37  ;;  %v5166_v29 = vsel %vm288_vm12, %v5160_v63, -inf }
0x279b   :  { %v8428_v41 = vpop.f32.mrf.mxu0 }
0x279c   :  { %v5163_v31 = vsel %vm288_vm12, %v5155_v36, -inf  ;;  %v5560_v42 = vadd.f32 %v8428_v41, %v9613_v30 }
0x279d   :  { %5164 = vmax.xlane.f32.xlu0 %v5163_v31  ;;  %v5554_v53 = vpop.f32.mrf.mxu0 }
0x279e   :  { %v5555_v8 = vadd.f32 %v5554_v53, %v9616_v37  ;;  %v5566_v3 = vsel %vm288_vm12, %v5560_v42, -inf }
0x27a0   :  { %v5563_v1 = vsel %vm288_vm12, %v5555_v8, -inf }
0x27a1   :  { %5167 = vmax.xlane.f32.xlu0 %v5166_v29  ;;  %5564 = vmax.xlane.f32.xlu1 %v5563_v1 }
0x27a5   :  { %5567 = vmax.xlane.f32.xlu0 %v5566_v3 }
0x27b2   :  { %5302 = vrot.lane.b32.xlu1 %v5297_v57, %s8919_s12 }
0x27b6   :  { %5391 = vrot.lane.b32.xlu1 %v5186_v62, %s8919_s12 }
0x27ba   :  { %5389 = vrot.lane.b32.xlu1 %v5185_v58, %s8919_s12  ;;  %v5678_v58 = vmul.f32 %v10003_v16, %v9166_v52 }
0x27bb   :  { %5300 = vrot.lane.b32.xlu0 %v5296_v49, %s8919_s12  ;;  %v5679_v49 = vmul.f32 %v9997_v47, %v9166_v52 }
0x27be   :  { %5589 = vrot.lane.b32.xlu1 %v5585_v55, %s8919_s12 }
0x27bf   :  { %5591 = vrot.lane.b32.xlu0 %v5586_v48, %s8919_s12 }
0x2820   :  { %v5279_v15 = vpop.xlane.xlu1 %5278 }
0x2821   :  { %v5281_v25 = vsub.f32 %v5271_v50, %v5279_v15 }
0x2822   :  { %v5276_v4 = vpop.xlane.xlu0 %5275 }
0x2823   :  { %v5284_v2 = vmul.f32 1.442695, %v5281_v25  ;;  %v5280_v46 = vsub.f32 %v5266_v54, %v5276_v4 }
0x2825   :  { %8759 = vpow2.f32 %v5284_v2  ;;  %v5282_v6 = vmul.f32 1.442695, %v5280_v46 }
0x2826   :  { %v5165_v56 = vpop.xlane.xlu0 %5164 }
0x2827   :  { %8761 = vpow2.f32 %v5282_v6  ;;  %v5169_v17 = vsub.f32 %v5155_v36, %v5165_v56 }
0x2829   :  { %v5171_v5 = vmul.f32 1.442695, %v5169_v17 }
0x282a   :  { %v5168_v26 = vpop.xlane.xlu0 %5167  ;;  %v5565_v14 = vpop.xlane.xlu1 %5564 }
0x282b   :  { %8763 = vpow2.f32 %v5171_v5  ;;  %v5170_v33 = vsub.f32 %v5160_v63, %v5168_v26  ;;  %v5569_v19 = vsub.f32 %v5555_v8, %v5565_v14 }
0x282d   :  { %v5173_v51 = vmul.f32 1.442695, %v5170_v33  ;;  %v5571_v22 = vmul.f32 1.442695, %v5569_v19 }
0x282e   :  { %v5568_v7 = vpop.xlane.xlu0 %5567  ;;  %v5303_v24 = vpop.permute.xlu1 %5302 }
0x282f   :  { %8765 = vpow2.f32 %v5173_v51  ;;  %v5570_v50 = vsub.f32 %v5560_v42, %v5568_v7  ;;  %8408 = vmatprep.subr.mxu1 %v5303_v24 }
0x2830   :  { %8767 = vpow2.f32 %v5571_v22  ;;  %8409 = vmatpush3.msra.mxu1 %v5303_v24 }
0x2831   :  { %v5573_v54 = vmul.f32 1.442695, %v5570_v50 }
0x2832   :  { %v8760_v44 = vpop.eup %8759  ;;  %v5301_v0 = vpop.permute.xlu0 %5300 }
0x2833   :  { %8769 = vpow2.f32 %v5573_v54  ;;  %8410 = vmatprep.subr.mxu1 %v5301_v0  ;;  %v5289_v36 = vsel %vm288_vm12, %v8760_v44, 0.0  ;;  %v5392_v31 = vpop.permute.xlu1 %5391 }
0x2834   :  { %v8762_v41 = vpop.eup %8761  ;;  %5290 = vadd.xlane.f32.xlu0 %v5289_v36  ;;  %8411 = vmatpush3.msra.mxu1 %v5301_v0  ;;  %v4962_v36 = vld [vmem:[%s10414_s4 + $0x38] sm:$0xff] }
0x2835   :  { %8415 = vmatprep.subr.mxu1 %v5392_v31  ;;  %v5286_v63 = vsel %vm288_vm12, %v8762_v41, 0.0 }
0x2836   :  { %5287 = vadd.xlane.f32.xlu1 %v5286_v63  ;;  %v5592_v48 = vpop.permute.xlu0 %5591  ;;  %v4959_v63 = vld [vmem:[%s10414_s4 + $0x20] sm:$0xff] }
0x2837   :  { %v5390_v55 = vpop.permute.xlu1 %5389 }
0x2838   :  { %v8764_v53 = vpop.eup %8763 }
0x2839   :  { %v5175_v8 = vsel %vm288_vm12, %v8764_v53, 0.0 }
0x283a   :  { %5176 = vadd.xlane.f32.xlu1 %v5175_v8 }
0x283b   :  { %v5590_v15 = vpop.permute.xlu1 %5589 }
0x283c   :  { %v8766_v42 = vpop.eup %8765 }
0x283d   :  { %v8768_v29 = vpop.eup %8767  ;;  %v5178_v1 = vsel %vm288_vm12, %v8766_v42, 0.0 }
0x283e   :  { %5179 = vadd.xlane.f32.xlu0 %v5178_v1  ;;  %v5575_v3 = vsel %vm288_vm12, %v8768_v29, 0.0 }
0x283f   :  { %5576 = vadd.xlane.f32.xlu1 %v5575_v3 }
0x2840   :  { %v8770_v57 = vpop.eup %8769 }
0x2841   :  { %v5578_v62 = vsel %vm288_vm12, %v8770_v57, 0.0 }
0x2842   :  { %5579 = vadd.xlane.f32.xlu0 %v5578_v62 }
0x2850   :  { %5682 = vrot.lane.b32.xlu1 %v5678_v58, %s8916_s1 }
0x2858   :  { %5684 = vrot.lane.b32.xlu0 %v5679_v49, %s8916_s1 }
0x28bd   :  { %v5291_v25 = vpop.xlane.xlu0 %5290 }
0x28be   :  { %8771 = vrcp.f32 %v5291_v25 }
0x28bf   :  { %v5288_v4 = vpop.xlane.xlu1 %5287 }
0x28c0   :  { %8773 = vrcp.f32 %v5288_v4 }
0x28c3   :  { %v5177_v2 = vpop.xlane.xlu1 %5176 }
0x28c4   :  { %8775 = vrcp.f32 %v5177_v2 }
0x28c7   :  { %v5180_v46 = vpop.xlane.xlu0 %5179 }
0x28c8   :  { %8777 = vrcp.f32 %v5180_v46  ;;  %v5577_v6 = vpop.xlane.xlu1 %5576 }
0x28c9   :  { %8779 = vrcp.f32 %v5577_v6 }
0x28cb   :  { %v5580_v56 = vpop.xlane.xlu0 %5579  ;;  %v8772_v17 = vpop.eup %8771 }
0x28cc   :  { %8781 = vrcp.f32 %v5580_v56  ;;  %v5295_v14 = vmul.f32 %v8772_v17, %v8760_v44  ;;  %v5683_v0 = vpop.permute.xlu1 %5682 }
0x28cd   :  { %v8774_v5 = vpop.eup %8773 }
0x28ce   :  { %v5293_v26 = vmul.f32 %v8774_v5, %v8762_v41  ;;  %v4961_v41 = vld [vmem:[%s10414_s4 + $0x30] sm:$0xff] }
0x28cf   :  { %v5685_v44 = vpop.permute.xlu0 %5684 }
0x28d0   :  { %8412 = vmatprep.mubr.msk.f32.mxu1 %vm288_vm12, %v5293_v26 }
0x28d1   :  { %v8776_v33 = vpop.eup %8775  ;;  %8413 = vmatmul.mubr.msk.f32.vlgmr.msra.gmra.mxu1 %vm288_vm12, %v5295_v14 }
0x28d2   :  { %8416 = vmatpush3.msra.mxu1 %v5392_v31  ;;  %v5182_v19 = vmul.f32 %v8776_v33, %v8764_v53  ;;  %v4960_v31 = vld [vmem:[%s10414_s4 + $0x28] sm:$0xff] }
0x28d3   :  { %8417 = vmatprep.subr.mxu1 %v5390_v55 }
0x28d4   :  { %8418 = vmatpush3.msra.mxu1 %v5390_v55  ;;  %8419 = vmatprep.mubr.msk.f32.mxu1 %vm288_vm12, %v5182_v19 }
0x28d5   :  { %v8778_v51 = vpop.eup %8777  ;;  %8429 = vmatprep.subr.mxu1 %v5592_v48 }
0x28d6   :  { %v8780_v22 = vpop.eup %8779  ;;  %v5184_v7 = vmul.f32 %v8778_v51, %v8766_v42 }
0x28d7   :  { %v5582_v24 = vmul.f32 %v8780_v22, %v8768_v29  ;;  %v5787_v22 = vmul.f32 %v10003_v16, %v9195_v61 }
0x28d8   :  { %8420 = vmatmul.mubr.msk.f32.vlgmr.msra.gmra.mxu1 %vm288_vm12, %v5184_v7 }
0x28d9   :  { %v8782_v50 = vpop.eup %8781  ;;  %8430 = vmatpush3.msra.mxu1 %v5592_v48  ;;  %8433 = vmatprep.mubr.msk.f32.mxu1 %vm288_vm12, %v5582_v24 }
0x28da   :  { %8431 = vmatprep.subr.mxu1 %v5590_v15  ;;  %v5584_v54 = vmul.f32 %v8782_v50, %v8770_v57 }
0x28db   :  { %8432 = vmatpush3.msra.mxu1 %v5590_v15 }
0x28dc   :  { %8436 = vmatprep.subr.msk.mxu1 %vm109_vm0, %v5685_v44  ;;  %8434 = vmatmul.mubr.msk.f32.vlgmr.msra.gmra.mxu1 %vm288_vm12, %v5584_v54  ;;  %v4966_v54 = vld [vmem:[%s10415_s5 + $0x190] sm:$0xff] }
0x28dd   :  { %8437 = vmatpush3.xpose.msk.msra.mxu1 %vm109_vm0, %v5685_v44  ;;  %8440 = vmatprep.mubr.msk.f32.mxu1 %vm109_vm0, %v10003_v16  ;;  %v4964_v16 = vld [vmem:[%s10415_s5 + $0x180] sm:$0xff] }
0x28de   :  { %8438 = vmatprep.subr.msk.mxu1 %vm109_vm0, %v5683_v0 }
0x28e1   :  { %8439 = vmatpush3.xpose.msk.msra.mxu1 %vm109_vm0, %v5683_v0 }
0x28e2   :  { %8461 = vmatprep.subr.mxu1 %v4962_v36 }
0x28e4   :  { %8441 = vmatmul.mubr.msk.f32.vlgmr.msra.gmra.mxu1 %vm109_vm0, %v9997_v47 }
0x28e5   :  { %8462 = vmatpush3.msra.mxu1 %v4962_v36  ;;  %8469 = vmatprep.mubr.msk.f32.mxu1 %vm109_vm0, %v9753_v38 }
0x28e6   :  { %8463 = vmatprep.subr.mxu1 %v4961_v41 }
0x28e7   :  { %8464 = vmatpush3.msra.mxu1 %v4961_v41 }
0x28e8   :  { %8465 = vmatprep.subr.mxu1 %v4960_v31 }
0x28e9   :  { %8466 = vmatpush3.msra.mxu1 %v4960_v31  ;;  %v4963_v31 = vld [vmem:[%s10415_s5 + $0x178] sm:$0xff] }
0x28ea   :  { %8467 = vmatprep.subr.mxu1 %v4959_v63 }
0x28eb   :  { %8468 = vmatpush3.msra.mxu1 %v4959_v63  ;;  %v4970_v63 = vld [vmem:[%s10415_s5 + $0x1b0] sm:$0xff] }
0x28ec   :  { %8470 = vmatmul.mubr.msk.f32.vlgmr.msra.gmra.mxu1 %vm109_vm0, %v9748_v34 }
0x2991   :  { %v8414_v53 = vpop.f32.mrf.mxu1 }
0x2993   :  { %v5378_v8 = vpop.f32.mrf.mxu1 }
0x2998   :  { %v8421_v38 = vpop.f32.mrf.mxu1 }
0x2999   :  { %v5473_v42 = vadd.f32 %v8421_v38, %v8414_v53 }
0x299a   :  { %v5467_v29 = vpop.f32.mrf.mxu1 }
0x299b   :  { %v5468_v1 = vadd.f32 %v5467_v29, %v5378_v8  ;;  %v4969_v29 = vld [vmem:[%s10415_s5 + $0x1a8] sm:$0xff] }
0x299c   :  { %v8435_v3 = vpop.f32.mrf.mxu1 }
0x299d   :  { %v10115_v57 = vadd.f32 %v8435_v3, %v5473_v42  ;;  %v4967_v3 = vld [vmem:[%s10415_s5 + $0x198] sm:$0xff] }
0x299e   :  { %v5667_v62 = vpop.f32.mrf.mxu1 }
0x299f   :  { %v10117_v58 = vadd.f32 %v5667_v62, %v5468_v1  ;;  %v4968_v1 = vld [vmem:[%s10415_s5 + $0x1a0] sm:$0xff] }
0x29a4   :  { %v8442_v49 = vpop.f32.mrf.mxu1 }
0x29a5   :  { %v5762_v55 = vadd.f32 %v8442_v49, %v9613_v30 }
0x29a6   :  { %v5756_v48 = vpop.f32.mrf.mxu1 }
0x29a7   :  { %v5757_v15 = vadd.f32 %v5756_v48, %v9616_v37  ;;  %v5768_v34 = vsel %vm288_vm12, %v5762_v55, -inf  ;;  %v5788_v37 = vmul.f32 %v9997_v47, %v9195_v61  ;;  %v4965_v61 = vld [vmem:[%s10415_s5 + $0x188] sm:$0xff] }
0x29a8   :  { %5769 = vmax.xlane.f32.xlu1 %v5768_v34 }
0x29a9   :  { %v5765_v25 = vsel %vm288_vm12, %v5757_v15, -inf }
0x29aa   :  { %5766 = vmax.xlane.f32.xlu0 %v5765_v25 }
0x29ac   :  { %v10123_v4 = vpop.f32.mrf.mxu1 }
0x29ad   :  { %v6158_v2 = vmul.f32 %v10123_v4, %v9026_v11 }
0x29ae   :  { %v10127_v46 = vpop.f32.mrf.mxu1 }
0x29af   :  { %8483 = vmatprep.subr.msk.mxu1 %vm109_vm0, %v6158_v2  ;;  %v6157_v30 = vmul.f32 %v9026_v11, %v10127_v46 }
0x29b0   :  { %8484 = vmatpush3.xpose.msk.msra.mxu1 %vm109_vm0, %v6158_v2 }
0x29b1   :  { %8485 = vmatprep.subr.msk.mxu1 %vm109_vm0, %v6157_v30 }
0x29b4   :  { %8486 = vmatpush3.xpose.msk.msra.mxu1 %vm109_vm0, %v6157_v30 }
0x29b9   :  { %5793 = vrot.lane.b32.xlu1 %v5788_v37, %s8919_s12 }
0x2a31   :  { %v5770_v6 = vpop.xlane.xlu1 %5769 }
0x2a32   :  { %v5772_v56 = vsub.f32 %v5762_v55, %v5770_v6 }
0x2a33   :  { %v5767_v17 = vpop.xlane.xlu0 %5766 }
0x2a34   :  { %v5775_v5 = vmul.f32 1.442695, %v5772_v56  ;;  %v5771_v26 = vsub.f32 %v5757_v15, %v5767_v17 }
0x2a35   :  { %v5794_v14 = vpop.permute.xlu1 %5793 }
0x2a36   :  { %8783 = vpow2.f32 %v5775_v5  ;;  %v5773_v33 = vmul.f32 1.442695, %v5771_v26  ;;  %8443 = vmatprep.subr.mxu0 %v5794_v14 }
0x2a37   :  { %8444 = vmatpush3.msra.mxu0 %v5794_v14 }
0x2a38   :  { %8785 = vpow2.f32 %v5773_v33 }
0x2a43   :  { %v8784_v11 = vpop.eup %8783 }
0x2a44   :  { %v5780_v19 = vsel %vm288_vm12, %v8784_v11, 0.0 }
0x2a45   :  { %v8786_v51 = vpop.eup %8785  ;;  %5781 = vadd.xlane.f32.xlu0 %v5780_v19 }
0x2a46   :  { %v5777_v47 = vsel %vm288_vm12, %v8786_v51, 0.0 }
0x2a49   :  { %5778 = vadd.xlane.f32.xlu0 %v5777_v47 }
0x2a5f   :  { %5791 = vrot.lane.b32.xlu0 %v5787_v22, %s8919_s12 }
0x2ace   :  { %v5782_v7 = vpop.xlane.xlu0 %5781 }
0x2acf   :  { %8787 = vrcp.f32 %v5782_v7 }
0x2ad2   :  { %v5779_v24 = vpop.xlane.xlu0 %5778 }
0x2ad3   :  { %8789 = vrcp.f32 %v5779_v24 }
0x2ad6   :  { %v5792_v50 = vpop.permute.xlu0 %5791 }
0x2ad7   :  { %8445 = vmatprep.subr.mxu0 %v5792_v50 }
0x2ad8   :  { %8446 = vmatpush3.msra.mxu0 %v5792_v50 }
0x2ad9   :  { %8450 = vmatprep.subr.mxu0 %v4966_v54 }
0x2adc   :  { %v8788_v44 = vpop.eup %8787 }
0x2add   :  { %v5786_v41 = vmul.f32 %v8788_v44, %v8784_v11 }
0x2ae0   :  { %v8790_v0 = vpop.eup %8789 }
0x2ae1   :  { %v5784_v36 = vmul.f32 %v8790_v0, %v8786_v51  ;;  %v10185_v51 = vld [vmem:[%s10415_s5 + $0x218] sm:$0xff] }
0x2ae2   :  { %v5992_v22 = vrot.slane %v10185_v51, %v9255_v21  ;;  %v5998_v44 = vrot.slane %v10185_v51, %v9263_v23  ;;  %v6270_v21 = vmul.f32 %v9018_v9, %v10127_v46  ;;  %v6556_v23 = vmul.f32 %v10123_v4, %v9023_v10 }
0x2ae3   :  { %8447 = vmatprep.mubr.msk.f32.mxu0 %vm288_vm12, %v5784_v36 }
0x2ae4   :  { %8448 = vmatmul.mubr.msk.f32.vlgmr.msra.gmra.mxu0 %vm288_vm12, %v5786_v41 }
0x2ae5   :  { %8451 = vmatpush3.msra.mxu0 %v4966_v54 }
0x2ae6   :  { %8452 = vmatprep.subr.mxu0 %v4965_v61 }
0x2ae7   :  { %8453 = vmatpush3.msra.mxu0 %v4965_v61 }
0x2ae8   :  { %8454 = vmatprep.subr.mxu0 %v4964_v16 }
0x2ae9   :  { %8455 = vmatpush3.msra.mxu0 %v4964_v16 }
0x2aea   :  { %8456 = vmatprep.subr.mxu0 %v4963_v31 }
0x2aeb   :  { %8457 = vmatpush3.msra.mxu0 %v4963_v31 }
0x2aec   :  { %8472 = vmatprep.subr.mxu0 %v4970_v63 }
0x2ba4   :  { %v8449_v53 = vpop.f32.mrf.mxu0 }
0x2ba5   :  { %v5879_v42 = vadd.f32 %v8449_v53, %v10115_v57  ;;  %v6271_v57 = vmul.f32 %v10123_v4, %v9018_v9  ;;  %v6555_v9 = vmul.f32 %v9023_v10, %v10127_v46 }
0x2ba6   :  { %v5869_v8 = vpop.f32.mrf.mxu0 }
0x2ba7   :  { %v5878_v38 = vadd.f32 %v5869_v8, %v10117_v58 }
0x2ba9   :  { %8458 = vmatprep.mubr.msk.f32.mxu0 %vm109_vm0, %v5878_v38 }
0x2baa   :  { %8459 = vmatmul.mubr.msk.f32.vlgmr.msra.gmra.mxu0 %vm109_vm0, %v5879_v42 }
0x2bab   :  { %8473 = vmatpush3.msra.mxu0 %v4970_v63 }
0x2bac   :  { %8474 = vmatprep.subr.mxu0 %v4969_v29 }
0x2bad   :  { %8475 = vmatpush3.msra.mxu0 %v4969_v29 }
0x2bae   :  { %8476 = vmatprep.subr.mxu0 %v4968_v1 }
0x2baf   :  { %8477 = vmatpush3.msra.mxu0 %v4968_v1 }
0x2bb0   :  { %8478 = vmatprep.subr.mxu0 %v4967_v3 }
0x2bb1   :  { %8479 = vmatpush3.msra.mxu0 %v4967_v3 }
0x2bb2   :  { %8490 = vmatprep.subr.msk.mxu0 %vm109_vm0, %v6271_v57 }
0x2c6a   :  { %v8460_v62 = vpop.f32.mrf.mxu0 }
0x2c6b   :  { %v5962_v58 = vadd.f32 %v8460_v62, %v9985_v43 }
0x2c6c   :  { %v5952_v49 = vpop.f32.mrf.mxu0 }
0x2c6d   :  { %v5961_v55 = vadd.f32 %v5952_v49, %v9987_v28  ;;  %v5966_v48 = vsel %vm109_vm0, %v5962_v58, 0.0 }
0x2c6e   :  { %5967 = vadd.xlane.f32.xlu0 %v5966_v48 }
0x2c6f   :  { %v5963_v15 = vsel %vm109_vm0, %v5961_v55, 0.0 }
0x2c70   :  { %5964 = vadd.xlane.f32.xlu1 %v5963_v15 }
0x2cf7   :  { %v5968_v34 = vpop.xlane.xlu0 %5967 }
0x2cf8   :  { %v5970_v25 = vmul.f32 0.03125, %v5968_v34 }
0x2cf9   :  { %v5965_v2 = vpop.xlane.xlu1 %5964 }
0x2cfa   :  { %v5972_v30 = vsub.f32 %v5962_v58, %v5970_v25  ;;  %v5969_v37 = vmul.f32 0.03125, %v5965_v2  ;;  %v6376_v25 = vmul.f32 %v10123_v4, %v9034_v12  ;;  %v6375_v2 = vmul.f32 %v10127_v46, %v9034_v12 }
0x2cfc   :  { %v5971_v6 = vsub.f32 %v5961_v55, %v5969_v37  ;;  %v5974_v56 = vmul.f32 %v5972_v30, %v5972_v30  ;;  %v6268_v37 = vmul.f32 %v10127_v46, %v9036_v13 }
0x2cfe   :  { %v5978_v17 = vsel %vm109_vm0, %v5974_v56, 0.0  ;;  %v5973_v5 = vmul.f32 %v5971_v6, %v5971_v6 }
0x2cff   :  { %5979 = vadd.xlane.f32.xlu0 %v5978_v17 }
0x2d00   :  { %v5975_v43 = vsel %vm109_vm0, %v5973_v5, 0.0 }
0x2d01   :  { %5976 = vadd.xlane.f32.xlu1 %v5975_v43 }
0x2d88   :  { %v5980_v28 = vpop.xlane.xlu0 %5979 }
0x2d89   :  { %v5982_v26 = vmul.f32 0.03125, %v5980_v28 }
0x2d8a   :  { %v5977_v14 = vpop.xlane.xlu1 %5976 }
0x2d8b   :  { %v5984_v33 = vadd.f32 1e-05, %v5982_v26  ;;  %v5981_v11 = vmul.f32 0.03125, %v5977_v14 }
0x2d8d   :  { %8791 = vrsqrt.f32 %v5984_v33  ;;  %v5983_v19 = vadd.f32 1e-05, %v5981_v11 }
0x2d8f   :  { %8793 = vrsqrt.f32 %v5983_v19 }
0x2d9a   :  { %v8792_v47 = vpop.eup %8791 }
0x2d9b   :  { %v5988_v7 = vmul.f32 %v8792_v47, %v5972_v30  ;;  %v6269_v30 = vmul.f32 %v10123_v4, %v9036_v13 }
0x2d9c   :  { %v8794_v24 = vpop.eup %8793 }
0x2d9d   :  { %v5987_v50 = vmul.f32 %v8794_v24, %v5971_v6  ;;  %v5994_v54 = vmul.f32 %v5992_v22, %v5988_v7 }
0x2d9f   :  { %v5993_v0 = vmul.f32 %v5992_v22, %v5987_v50  ;;  %v10193_v41 = vadd.f32 %v5998_v44, %v5994_v54 }
0x2da1   :  { %v10191_v36 = vadd.f32 %v5998_v44, %v5993_v0 }
0x2da3   :  { %8480 = vmatprep.mubr.msk.f32.mxu0 %vm109_vm0, %v10191_v36 }
0x2da4   :  { %8481 = vmatmul.mubr.msk.f32.vlgmr.msra.gmra.mxu0 %vm109_vm0, %v10193_v41 }
0x2da5   :  { %8491 = vmatpush3.xpose.msk.msra.mxu0 %vm109_vm0, %v6271_v57 }
0x2da6   :  { %8492 = vmatprep.subr.msk.mxu0 %vm109_vm0, %v6270_v21 }
0x2da9   :  { %8493 = vmatpush3.xpose.msk.msra.mxu0 %vm109_vm0, %v6270_v21 }
0x2daa   :  { %8511 = vmatprep.subr.msk.mxu0 %vm109_vm0, %v6556_v23 }
0x2e64   :  { %v10207_v61 = vpop.f32.mrf.mxu0 }
0x2e66   :  { %v10209_v16 = vpop.f32.mrf.mxu0 }
0x2e67   :  { %8487 = vmatprep.mubr.msk.f32.mxu1 %vm109_vm0, %v10209_v16  ;;  %8494 = vmatprep.mubr.msk.f32.mxu0 %vm109_vm0, %v10209_v16 }
0x2e68   :  { %8488 = vmatmul.mubr.msk.f32.vlgmr.msra.gmra.mxu1 %vm109_vm0, %v10207_v61  ;;  %8495 = vmatmul.mubr.msk.f32.vlgmr.msra.gmra.mxu0 %vm109_vm0, %v10207_v61 }
0x2e69   :  { %8512 = vmatpush3.xpose.msk.msra.mxu0 %vm109_vm0, %v6556_v23  ;;  %8515 = vmatprep.mubr.msk.f32.mxu0 %vm109_vm0, %v10209_v16 }
0x2e6a   :  { %8513 = vmatprep.subr.msk.mxu0 %vm109_vm0, %v6555_v9 }
0x2e6d   :  { %8514 = vmatpush3.xpose.msk.msra.mxu0 %vm109_vm0, %v6555_v9 }
0x2e70   :  { %8516 = vmatmul.mubr.msk.f32.vlgmr.msra.gmra.mxu0 %vm109_vm0, %v10207_v61 }
0x2f28   :  { %v8489_v31 = vpop.f32.mrf.mxu1  ;;  %v8496_v63 = vpop.f32.mrf.mxu0 }
0x2f29   :  { %v6350_v53 = vadd.f32 %v8496_v63, %v9107_v39  ;;  %v6243_v10 = vadd.f32 %v8489_v31, %v9107_v39 }
0x2f2a   :  { %v6237_v8 = vpop.f32.mrf.mxu1  ;;  %v6344_v38 = vpop.f32.mrf.mxu0 }
0x2f2b   :  { %v6345_v42 = vadd.f32 %v6344_v38, %v9110_v40  ;;  %v6356_v29 = vsel %vm288_vm12, %v6350_v53, -inf  ;;  %v6238_v1 = vadd.f32 %v6237_v8, %v9110_v40  ;;  %v6249_v57 = vsel %vm288_vm12, %v6243_v10, -inf }
0x2f2c   :  { %6357 = vmax.xlane.f32.xlu0 %v6356_v29 }
0x2f2d   :  { %v6353_v3 = vsel %vm288_vm12, %v6345_v42, -inf  ;;  %v6246_v49 = vsel %vm288_vm12, %v6238_v1, -inf }
0x2f2e   :  { %6354 = vmax.xlane.f32.xlu1 %v6353_v3  ;;  %v6660_v3 = vmul.f32 %v10127_v46, %v9056_v20 }
0x2f30   :  { %v8517_v62 = vpop.f32.mrf.mxu0  ;;  %6250 = vmax.xlane.f32.xlu0 %v6249_v57  ;;  %v6661_v57 = vmul.f32 %v10123_v4, %v9056_v20 }
0x2f31   :  { %v6635_v58 = vadd.f32 %v8517_v62, %v9107_v39 }
0x2f32   :  { %v6629_v55 = vpop.f32.mrf.mxu0  ;;  %6247 = vmax.xlane.f32.xlu1 %v6246_v49 }
0x2f33   :  { %v6630_v48 = vadd.f32 %v6629_v55, %v9110_v40  ;;  %v6641_v15 = vsel %vm288_vm12, %v6635_v58, -inf }
0x2f34   :  { %6642 = vmax.xlane.f32.xlu0 %v6641_v15 }
0x2f35   :  { %v6638_v34 = vsel %vm288_vm12, %v6630_v48, -inf }
0x2f36   :  { %6639 = vmax.xlane.f32.xlu1 %v6638_v34 }
0x2f47   :  { %6381 = vrot.lane.b32.xlu1 %v6376_v25, %s8916_s1 }
0x2f4a   :  { %6379 = vrot.lane.b32.xlu0 %v6375_v2, %s8916_s1 }
0x2f4b   :  { %6470 = vrot.lane.b32.xlu1 %v6269_v30, %s8916_s1 }
0x2f4f   :  { %6468 = vrot.lane.b32.xlu1 %v6268_v37, %s8916_s1 }
0x2fb5   :  { %v6358_v6 = vpop.xlane.xlu0 %6357 }
0x2fb6   :  { %v6360_v56 = vsub.f32 %v6350_v53, %v6358_v6 }
0x2fb7   :  { %v6355_v17 = vpop.xlane.xlu1 %6354 }
0x2fb8   :  { %v6363_v5 = vmul.f32 1.442695, %v6360_v56  ;;  %v6359_v43 = vsub.f32 %v6345_v42, %v6355_v17 }
0x2fb9   :  { %v6251_v28 = vpop.xlane.xlu0 %6250 }
0x2fba   :  { %8795 = vpow2.f32 %v6363_v5  ;;  %v6361_v12 = vmul.f32 1.442695, %v6359_v43  ;;  %v6253_v26 = vsub.f32 %v6243_v10, %v6251_v28 }
0x2fbb   :  { %v6248_v14 = vpop.xlane.xlu1 %6247 }
0x2fbc   :  { %8797 = vpow2.f32 %v6361_v12  ;;  %v6256_v33 = vmul.f32 1.442695, %v6253_v26  ;;  %v6252_v11 = vsub.f32 %v6238_v1, %v6248_v14  ;;  %v6754_v14 = vmul.f32 %v10123_v4, %v9133_v59 }
0x2fbd   :  { %v6643_v19 = vpop.xlane.xlu0 %6642 }
0x2fbe   :  { %8799 = vpow2.f32 %v6256_v33  ;;  %v6254_v47 = vmul.f32 1.442695, %v6252_v11  ;;  %v6645_v22 = vsub.f32 %v6635_v58, %v6643_v19  ;;  %v6753_v11 = vmul.f32 %v9133_v59, %v10127_v46 }
0x2fbf   :  { %v6640_v13 = vpop.xlane.xlu1 %6639 }
0x2fc0   :  { %8801 = vpow2.f32 %v6254_v47  ;;  %v6648_v7 = vmul.f32 1.442695, %v6645_v22  ;;  %v6644_v24 = vsub.f32 %v6630_v48, %v6640_v13 }
0x2fc1   :  { %v6380_v44 = vpop.permute.xlu0 %6379 }
0x2fc2   :  { %8803 = vpow2.f32 %v6648_v7  ;;  %v6646_v50 = vmul.f32 1.442695, %v6644_v24 }
0x2fc3   :  { %v6382_v54 = vpop.permute.xlu1 %6381 }
0x2fc4   :  { %8805 = vpow2.f32 %v6646_v50  ;;  %8497 = vmatprep.subr.mxu1 %v6382_v54 }
0x2fc5   :  { %8498 = vmatpush3.msra.mxu1 %v6382_v54 }
0x2fc6   :  { %8499 = vmatprep.subr.mxu1 %v6380_v44 }
0x2fc7   :  { %v8796_v0 = vpop.eup %8795  ;;  %8500 = vmatpush3.msra.mxu1 %v6380_v44  ;;  %v6471_v21 = vpop.permute.xlu1 %6470 }
0x2fc8   :  { %8504 = vmatprep.subr.mxu1 %v6471_v21  ;;  %v6368_v23 = vsel %vm288_vm12, %v8796_v0, 0.0 }
0x2fc9   :  { %v8798_v9 = vpop.eup %8797  ;;  %6369 = vadd.xlane.f32.xlu0 %v6368_v23 }
0x2fca   :  { %v6365_v31 = vsel %vm288_vm12, %v8798_v9, 0.0 }
0x2fcb   :  { %v8800_v63 = vpop.eup %8799  ;;  %6366 = vadd.xlane.f32.xlu1 %v6365_v31  ;;  %v6469_v62 = vpop.permute.xlu1 %6468  ;;  %v6859_v31 = vmul.f32 %v10123_v4, %v9166_v52 }
0x2fcc   :  { %v6261_v53 = vsel %vm288_vm12, %v8800_v63, 0.0 }
0x2fcd   :  { %v8802_v8 = vpop.eup %8801  ;;  %6262 = vadd.xlane.f32.xlu0 %v6261_v53 }
0x2fce   :  { %v6258_v38 = vsel %vm288_vm12, %v8802_v8, 0.0 }
0x2fcf   :  { %v8804_v10 = vpop.eup %8803  ;;  %6259 = vadd.xlane.f32.xlu1 %v6258_v38 }
0x2fd0   :  { %v6653_v42 = vsel %vm288_vm12, %v8804_v10, 0.0 }
0x2fd1   :  { %v8806_v29 = vpop.eup %8805  ;;  %6654 = vadd.xlane.f32.xlu0 %v6653_v42 }
0x2fd2   :  { %v6650_v1 = vsel %vm288_vm12, %v8806_v29, 0.0 }
0x2fd3   :  { %6651 = vadd.xlane.f32.xlu1 %v6650_v1 }
0x2fe4   :  { %6664 = vrot.lane.b32.xlu1 %v6660_v3, %s8916_s1  ;;  %v6858_v3 = vmul.f32 %v10127_v46, %v9166_v52  ;;  %v4973_v52 = vld [vmem:[%s10415_s5 + $0x1c8] sm:$0xff]  ;;  %v4972_v46 = vld [vmem:[%s10415_s5 + $0x1c0] sm:$0xff] }
0x2fe7   :  { %6666 = vrot.lane.b32.xlu0 %v6661_v57, %s8916_s1 }
0x3052   :  { %v6370_v58 = vpop.xlane.xlu0 %6369 }
0x3053   :  { %8807 = vrcp.f32 %v6370_v58 }
0x3054   :  { %v6367_v49 = vpop.xlane.xlu1 %6366 }
0x3055   :  { %8809 = vrcp.f32 %v6367_v49  ;;  %v4974_v49 = vld [vmem:[%s10415_s5 + $0x1d0] sm:$0xff] }
0x3056   :  { %v6263_v55 = vpop.xlane.xlu0 %6262 }
0x3057   :  { %8811 = vrcp.f32 %v6263_v55 }
0x3058   :  { %v6260_v48 = vpop.xlane.xlu1 %6259 }
0x3059   :  { %8813 = vrcp.f32 %v6260_v48 }
0x305a   :  { %v6655_v15 = vpop.xlane.xlu0 %6654 }
0x305b   :  { %8815 = vrcp.f32 %v6655_v15 }
0x305c   :  { %v6652_v34 = vpop.xlane.xlu1 %6651 }
0x305d   :  { %8817 = vrcp.f32 %v6652_v34 }
0x305e   :  { %v6667_v43 = vpop.permute.xlu0 %6666 }
0x3060   :  { %v8808_v25 = vpop.eup %8807  ;;  %v6665_v12 = vpop.permute.xlu1 %6664 }
0x3061   :  { %v6374_v37 = vmul.f32 %v8808_v25, %v8796_v0  ;;  %v4971_v25 = vld [vmem:[%s10415_s5 + $0x1b8] sm:$0xff] }
0x3062   :  { %v8810_v2 = vpop.eup %8809 }
0x3063   :  { %v6372_v30 = vmul.f32 %v8810_v2, %v8798_v9 }
0x3064   :  { %v8812_v20 = vpop.eup %8811 }
0x3065   :  { %8501 = vmatprep.mubr.msk.f32.mxu1 %vm288_vm12, %v6372_v30  ;;  %v6267_v17 = vmul.f32 %v8812_v20, %v8800_v63 }
0x3066   :  { %v8814_v6 = vpop.eup %8813  ;;  %8502 = vmatmul.mubr.msk.f32.vlgmr.msra.gmra.mxu1 %vm288_vm12, %v6374_v37 }
0x3067   :  { %8505 = vmatpush3.msra.mxu1 %v6471_v21  ;;  %v6265_v56 = vmul.f32 %v8814_v6, %v8802_v8 }
0x3068   :  { %8506 = vmatprep.subr.mxu1 %v6469_v62  ;;  %v8816_v5 = vpop.eup %8815 }
0x3069   :  { %8507 = vmatpush3.msra.mxu1 %v6469_v62  ;;  %8508 = vmatprep.mubr.msk.f32.mxu1 %vm288_vm12, %v6265_v56  ;;  %v6659_v33 = vmul.f32 %v8816_v5, %v8804_v10 }
0x306a   :  { %v8818_v28 = vpop.eup %8817  ;;  %8518 = vmatprep.subr.mxu1 %v6667_v43  ;;  %8509 = vmatmul.mubr.msk.f32.vlgmr.msra.gmra.mxu1 %vm288_vm12, %v6267_v17 }
0x306b   :  { %8519 = vmatpush3.msra.mxu1 %v6667_v43  ;;  %v6657_v26 = vmul.f32 %v8818_v28, %v8806_v29 }
0x306c   :  { %8520 = vmatprep.subr.mxu1 %v6665_v12 }
0x306d   :  { %8521 = vmatpush3.msra.mxu1 %v6665_v12  ;;  %8522 = vmatprep.mubr.msk.f32.mxu1 %vm288_vm12, %v6657_v26 }
0x306e   :  { %8525 = vmatprep.subr.msk.mxu1 %vm109_vm0, %v6754_v14  ;;  %8523 = vmatmul.mubr.msk.f32.vlgmr.msra.gmra.mxu1 %vm288_vm12, %v6659_v33 }
0x306f   :  { %8526 = vmatpush3.xpose.msk.msra.mxu1 %vm109_vm0, %v6754_v14  ;;  %8529 = vmatprep.mubr.msk.f32.mxu1 %vm109_vm0, %v10209_v16 }
0x3070   :  { %8527 = vmatprep.subr.msk.mxu1 %vm109_vm0, %v6753_v11 }
0x3073   :  { %8528 = vmatpush3.xpose.msk.msra.mxu1 %vm109_vm0, %v6753_v11 }
0x3076   :  { %8530 = vmatmul.mubr.msk.f32.vlgmr.msra.gmra.mxu1 %vm109_vm0, %v10207_v61 }
0x3126   :  { %v8503_v19 = vpop.f32.mrf.mxu1 }
0x3128   :  { %v6457_v47 = vpop.f32.mrf.mxu1 }
0x312a   :  { %v8510_v22 = vpop.f32.mrf.mxu1 }
0x312b   :  { %v6552_v13 = vadd.f32 %v8510_v22, %v8503_v19 }
0x312c   :  { %v6546_v7 = vpop.f32.mrf.mxu1 }
0x312d   :  { %v6547_v24 = vadd.f32 %v6546_v7, %v6457_v47  ;;  %v4986_v7 = vld [vmem:[%s10416_s6 + $0x88] sm:$0xff] }
0x312e   :  { %v8524_v50 = vpop.f32.mrf.mxu1 }
0x312f   :  { %v6752_v59 = vadd.f32 %v8524_v50, %v6552_v13  ;;  %v4984_v50 = vld [vmem:[%s10416_s6 + $0x78] sm:$0xff] }
0x3130   :  { %v6742_v54 = vpop.f32.mrf.mxu1 }
0x3131   :  { %v6751_v44 = vadd.f32 %v6742_v54, %v6547_v24  ;;  %v4985_v24 = vld [vmem:[%s10416_s6 + $0x80] sm:$0xff]  ;;  %v4981_v54 = vld [vmem:[%s10415_s5 + $0x208] sm:$0xff] }
0x3136   :  { %v8531_v0 = vpop.f32.mrf.mxu1 }
0x3137   :  { %v6833_v16 = vadd.f32 %v8531_v0, %v9107_v39  ;;  %v4979_v0 = vld [vmem:[%s10415_s5 + $0x1f8] sm:$0xff] }
0x3138   :  { %v6827_v21 = vpop.f32.mrf.mxu1 }
0x3139   :  { %v6828_v23 = vadd.f32 %v6827_v21, %v9110_v40  ;;  %v6839_v9 = vsel %vm288_vm12, %v6833_v16, -inf }
0x313a   :  { %6840 = vmax.xlane.f32.xlu1 %v6839_v9 }
0x313b   :  { %v6836_v61 = vsel %vm288_vm12, %v6828_v23, -inf }
0x313c   :  { %6837 = vmax.xlane.f32.xlu0 %v6836_v61 }
0x314b   :  { %6864 = vrot.lane.b32.xlu1 %v6859_v31, %s8916_s1 }
0x31c3   :  { %v6841_v63 = vpop.xlane.xlu1 %6840 }
0x31c4   :  { %v6843_v53 = vsub.f32 %v6833_v16, %v6841_v63 }
0x31c5   :  { %v6838_v8 = vpop.xlane.xlu0 %6837 }
0x31c6   :  { %v6846_v38 = vmul.f32 1.442695, %v6843_v53  ;;  %v6842_v10 = vsub.f32 %v6828_v23, %v6838_v8  ;;  %v7063_v53 = vrot.slane %v10185_v51, %v9310_v32  ;;  %v4977_v32 = vld [vmem:[%s10415_s5 + $0x1e8] sm:$0xff] }
0x31c7   :  { %v6865_v39 = vpop.permute.xlu1 %6864 }
0x31c8   :  { %8819 = vpow2.f32 %v6846_v38  ;;  %v6844_v42 = vmul.f32 1.442695, %v6842_v10  ;;  %8532 = vmatprep.subr.mxu0 %v6865_v39 }
0x31c9   :  { %8533 = vmatpush3.msra.mxu0 %v6865_v39 }
0x31ca   :  { %8821 = vpow2.f32 %v6844_v42  ;;  %v7069_v42 = vrot.slane %v10185_v51, %v9315_v35  ;;  %v4976_v35 = vld [vmem:[%s10415_s5 + $0x1e0] sm:$0xff] }
0x31d5   :  { %v8820_v40 = vpop.eup %8819 }
0x31d6   :  { %v6851_v29 = vsel %vm288_vm12, %v8820_v40, 0.0 }
0x31d7   :  { %v8822_v1 = vpop.eup %8821  ;;  %6852 = vadd.xlane.f32.xlu0 %v6851_v29 }
0x31d8   :  { %v6848_v4 = vsel %vm288_vm12, %v8822_v1, 0.0 }
0x31db   :  { %6849 = vadd.xlane.f32.xlu0 %v6848_v4  ;;  %v4978_v4 = vld [vmem:[%s10415_s5 + $0x1f0] sm:$0xff] }
0x31f1   :  { %6862 = vrot.lane.b32.xlu0 %v6858_v3, %s8916_s1  ;;  %v4975_v3 = vld [vmem:[%s10415_s5 + $0x1d8] sm:$0xff] }
0x3260   :  { %v6853_v57 = vpop.xlane.xlu0 %6852 }
0x3261   :  { %8823 = vrcp.f32 %v6853_v57  ;;  %v7616_v57 = vld [vmem:[%s10416_s6 + $0x98] ss:$0 sm:$0xff] }
0x3264   :  { %v6850_v62 = vpop.xlane.xlu0 %6849 }
0x3265   :  { %8825 = vrcp.f32 %v6850_v62 }
0x3268   :  { %v6863_v58 = vpop.permute.xlu0 %6862 }
0x3269   :  { %8534 = vmatprep.subr.mxu0 %v6863_v58 }
0x326a   :  { %8535 = vmatpush3.msra.mxu0 %v6863_v58 }
0x326b   :  { %8539 = vmatprep.subr.mxu0 %v4974_v49 }
0x326e   :  { %v8824_v55 = vpop.eup %8823 }
0x326f   :  { %v6857_v34 = vmul.f32 %v8824_v55, %v8820_v40 }
0x3272   :  { %v8826_v48 = vpop.eup %8825 }
0x3273   :  { %v6855_v15 = vmul.f32 %v8826_v48, %v8822_v1 }
0x3275   :  { %8536 = vmatprep.mubr.msk.f32.mxu0 %vm288_vm12, %v6855_v15 }
0x3276   :  { %8537 = vmatmul.mubr.msk.f32.vlgmr.msra.gmra.mxu0 %vm288_vm12, %v6857_v34  ;;  %v7162_v34 = vrot.slane %v10185_v51, %v4829_v60 }
0x3277   :  { %8540 = vmatpush3.msra.mxu0 %v4974_v49 }
0x3278   :  { %8541 = vmatprep.subr.mxu0 %v4973_v52 }
0x3279   :  { %8542 = vmatpush3.msra.mxu0 %v4973_v52 }
0x327a   :  { %8543 = vmatprep.subr.mxu0 %v4972_v46 }
0x327b   :  { %8544 = vmatpush3.msra.mxu0 %v4972_v46 }
0x327c   :  { %8545 = vmatprep.subr.mxu0 %v4971_v25 }
0x327d   :  { %8546 = vmatpush3.msra.mxu0 %v4971_v25 }
0x3336   :  { %v8538_v2 = vpop.f32.mrf.mxu0 }
0x3337   :  { %v6950_v20 = vadd.f32 %v8538_v2, %v6752_v59  ;;  %v4982_v59 = vld [vmem:[%s10415_s5 + $0x210] sm:$0xff] }
0x3338   :  { %v6940_v30 = vpop.f32.mrf.mxu0  ;;  %8561 = vmatprep.subr.mxu0 %v4982_v59 }
0x3339   :  { %v6949_v37 = vadd.f32 %v6940_v30, %v6751_v44  ;;  %v4980_v44 = vld [vmem:[%s10415_s5 + $0x200] sm:$0xff] }
0x333b   :  { %8547 = vmatprep.mubr.msk.f32.mxu0 %vm109_vm0, %v6949_v37 }
0x333c   :  { %8548 = vmatmul.mubr.msk.f32.vlgmr.msra.gmra.mxu0 %vm109_vm0, %v6950_v20 }
0x333d   :  { %8562 = vmatpush3.msra.mxu0 %v4982_v59 }
0x333e   :  { %8563 = vmatprep.subr.mxu0 %v4981_v54 }
0x333f   :  { %8564 = vmatpush3.msra.mxu0 %v4981_v54  ;;  %v7275_v54 = vrot.slane %v10185_v51, %v9289_v45 }
0x3340   :  { %8565 = vmatprep.subr.mxu0 %v4980_v44 }
0x3341   :  { %8566 = vmatpush3.msra.mxu0 %v4980_v44 }
0x3342   :  { %8567 = vmatprep.subr.mxu0 %v4979_v0 }
0x3343   :  { %8568 = vmatpush3.msra.mxu0 %v4979_v0 }
0x3344   :  { %8569 = vmatprep.subr.mxu0 %v4978_v4 }
0x3345   :  { %8570 = vmatpush3.msra.mxu0 %v4978_v4 }
0x3346   :  { %8571 = vmatprep.subr.mxu0 %v4977_v32 }
0x3347   :  { %8572 = vmatpush3.msra.mxu0 %v4977_v32 }
0x3348   :  { %8573 = vmatprep.subr.mxu0 %v4976_v35 }
0x3349   :  { %8574 = vmatpush3.msra.mxu0 %v4976_v35 }
0x334a   :  { %8575 = vmatprep.subr.mxu0 %v4975_v3 }
0x334b   :  { %8576 = vmatpush3.msra.mxu0 %v4975_v3 }
0x33fc   :  { %v8549_v6 = vpop.f32.mrf.mxu0 }
0x33fd   :  { %v7033_v56 = vadd.f32 %v8549_v6, %v10193_v41 }
0x33fe   :  { %v7023_v17 = vpop.f32.mrf.mxu0 }
0x33ff   :  { %v7032_v5 = vadd.f32 %v7023_v17, %v10191_v36  ;;  %v7037_v43 = vsel %vm109_vm0, %v7033_v56, 0.0  ;;  %v4987_v36 = vld [vmem:[%s10416_s6 + $0x90] sm:$0xff] }
0x3400   :  { %7038 = vadd.xlane.f32.xlu0 %v7037_v43  ;;  %8550 = vmatprep.subr.mxu1 %v4987_v36 }
0x3401   :  { %v7034_v28 = vsel %vm109_vm0, %v7032_v5, 0.0  ;;  %8551 = vmatpush3.msra.mxu1 %v4987_v36 }
0x3402   :  { %7035 = vadd.xlane.f32.xlu1 %v7034_v28  ;;  %8552 = vmatprep.subr.mxu1 %v4986_v7 }
0x3403   :  { %8553 = vmatpush3.msra.mxu1 %v4986_v7 }
0x3404   :  { %8554 = vmatprep.subr.mxu1 %v4985_v24 }
0x3405   :  { %8555 = vmatpush3.msra.mxu1 %v4985_v24 }
0x3406   :  { %8556 = vmatprep.subr.mxu1 %v4984_v50 }
0x3407   :  { %8557 = vmatpush3.msra.mxu1 %v4984_v50 }
0x3489   :  { %v7039_v12 = vpop.xlane.xlu0 %7038 }
0x348a   :  { %v7041_v26 = vmul.f32 0.03125, %v7039_v12 }
0x348b   :  { %v7036_v14 = vpop.xlane.xlu1 %7035 }
0x348c   :  { %v7043_v33 = vsub.f32 %v7033_v56, %v7041_v26  ;;  %v7040_v11 = vmul.f32 0.03125, %v7036_v14 }
0x348e   :  { %v7042_v19 = vsub.f32 %v7032_v5, %v7040_v11  ;;  %v7045_v47 = vmul.f32 %v7043_v33, %v7043_v33  ;;  %v7287_v11 = vld [vmem:[%s10417_s7 + $0x18] sm:$0xff] }
0x348f   :  { %8580 = vmatprep.subr.mxu1 %v7287_v11 }
0x3490   :  { %v7049_v22 = vsel %vm109_vm0, %v7045_v47, 0.0  ;;  %v7044_v13 = vmul.f32 %v7042_v19, %v7042_v19  ;;  %v7285_v47 = vld [vmem:[%s10417_s7 + $0x8] sm:$0xff] }
0x3491   :  { %7050 = vadd.xlane.f32.xlu0 %v7049_v22  ;;  %v7284_v22 = vld [vmem:[%s10417_s7] sm:$0xff] }
0x3492   :  { %v7046_v41 = vsel %vm109_vm0, %v7044_v13, 0.0 }
0x3493   :  { %7047 = vadd.xlane.f32.xlu1 %v7046_v41 }
0x351a   :  { %v7051_v16 = vpop.xlane.xlu0 %7050 }
0x351b   :  { %v7053_v21 = vmul.f32 0.03125, %v7051_v16 }
0x351c   :  { %v7048_v23 = vpop.xlane.xlu1 %7047 }
0x351d   :  { %v7055_v9 = vadd.f32 1e-05, %v7053_v21  ;;  %v7052_v61 = vmul.f32 0.03125, %v7048_v23  ;;  %v7281_v23 = vrot.slane %v10185_v51, %v4948_v27 }
0x351f   :  { %8827 = vrsqrt.f32 %v7055_v9  ;;  %v7054_v31 = vadd.f32 1e-05, %v7052_v61 }
0x3521   :  { %8829 = vrsqrt.f32 %v7054_v31 }
0x352c   :  { %v8828_v63 = vpop.eup %8827 }
0x352d   :  { %v7059_v8 = vmul.f32 %v8828_v63, %v7043_v33 }
0x352e   :  { %v8830_v38 = vpop.eup %8829 }
0x352f   :  { %v7058_v10 = vmul.f32 %v8830_v38, %v7042_v19  ;;  %v7065_v39 = vmul.f32 %v7063_v53, %v7059_v8  ;;  %v7286_v19 = vld [vmem:[%s10417_s7 + $0x10] sm:$0xff] }
0x3531   :  { %v7064_v40 = vmul.f32 %v7063_v53, %v7058_v10  ;;  %v7071_v1 = vadd.f32 %v7069_v42, %v7065_v39 }
0x3533   :  { %v7070_v29 = vadd.f32 %v7069_v42, %v7064_v40 }
0x3535   :  { %8558 = vmatprep.mubr.msk.f32.mxu1 %vm109_vm0, %v7070_v29 }
0x3536   :  { %8559 = vmatmul.mubr.msk.f32.vlgmr.msra.gmra.mxu1 %vm109_vm0, %v7071_v1 }
0x3537   :  { %8581 = vmatpush3.msra.mxu1 %v7287_v11 }
0x3538   :  { %8582 = vmatprep.subr.mxu1 %v7286_v19 }
0x3539   :  { %8583 = vmatpush3.msra.mxu1 %v7286_v19 }
0x353a   :  { %8584 = vmatprep.subr.mxu1 %v7285_v47 }
0x353b   :  { %8585 = vmatpush3.msra.mxu1 %v7285_v47 }
0x353c   :  { %8586 = vmatprep.subr.mxu1 %v7284_v22 }
0x353d   :  { %8587 = vmatpush3.msra.mxu1 %v7284_v22 }
0x35f6   :  { %v8560_v62 = vpop.f32.mrf.mxu1 }
0x35f7   :  { %v7154_v58 = vadd.f32 %v8560_v62, %v7616_v57 }
0x35f8   :  { %v7148_v49 = vpop.f32.mrf.mxu1 }
0x35f9   :  { %v7149_v55 = vadd.f32 %v7616_v57, %v7148_v49  ;;  %v7158_v15 = vmax.f32 %v7154_v58, 0.0 }
0x35fb   :  { %v7157_v48 = vmax.f32 %v7149_v55, 0.0 }
0x35fd   :  { %8577 = vmatprep.mubr.msk.f32.mxu0 %vm1243_vm2, %v7157_v48 }
0x35fe   :  { %8578 = vmatmul.mubr.msk.f32.vlgmr.msra.gmra.mxu0 %vm1243_vm2, %v7158_v15 }
0x36be   :  { %v8579_v52 = vpop.f32.mrf.mxu0 }
0x36bf   :  { %v7241_v46 = vadd.f32 %v8579_v52, %v7162_v34 }
0x36c0   :  { %v7235_v25 = vpop.f32.mrf.mxu0 }
0x36c1   :  { %v7245_v2 = vadd.f32 %v7241_v46, %v7071_v1  ;;  %v7236_v30 = vadd.f32 %v7235_v25, %v7162_v34 }
0x36c3   :  { %v7244_v37 = vadd.f32 %v7236_v30, %v7070_v29  ;;  %v7249_v20 = vsel %vm109_vm0, %v7245_v2, 0.0 }
0x36c4   :  { %7250 = vadd.xlane.f32.xlu0 %v7249_v20 }
0x36c5   :  { %v7246_v6 = vsel %vm109_vm0, %v7244_v37, 0.0 }
0x36c6   :  { %7247 = vadd.xlane.f32.xlu1 %v7246_v6 }
0x374d   :  { %v7251_v56 = vpop.xlane.xlu0 %7250 }
0x374e   :  { %v7253_v17 = vmul.f32 0.03125, %v7251_v56 }
0x374f   :  { %v7248_v5 = vpop.xlane.xlu1 %7247 }
0x3750   :  { %v7255_v43 = vsub.f32 %v7245_v2, %v7253_v17  ;;  %v7252_v28 = vmul.f32 0.03125, %v7248_v5 }
0x3752   :  { %v7254_v12 = vsub.f32 %v7244_v37, %v7252_v28  ;;  %v7257_v26 = vmul.f32 %v7255_v43, %v7255_v43 }
0x3754   :  { %v7261_v60 = vsel %vm109_vm0, %v7257_v26, 0.0  ;;  %v7256_v14 = vmul.f32 %v7254_v12, %v7254_v12 }
0x3755   :  { %7262 = vadd.xlane.f32.xlu0 %v7261_v60 }
0x3756   :  { %v7258_v33 = vsel %vm109_vm0, %v7256_v14, 0.0 }
0x3757   :  { %7259 = vadd.xlane.f32.xlu1 %v7258_v33 }
0x37de   :  { %v7263_v13 = vpop.xlane.xlu0 %7262 }
0x37df   :  { %v7265_v41 = vmul.f32 0.03125, %v7263_v13 }
0x37e0   :  { %v7260_v36 = vpop.xlane.xlu1 %7259 }
0x37e1   :  { %v7267_v7 = vadd.f32 1e-05, %v7265_v41  ;;  %v7264_v24 = vmul.f32 0.03125, %v7260_v36 }
0x37e3   :  { %8831 = vrsqrt.f32 %v7267_v7  ;;  %v7266_v50 = vadd.f32 1e-05, %v7264_v24 }
0x37e5   :  { %8833 = vrsqrt.f32 %v7266_v50 }
0x37f0   :  { %v8832_v59 = vpop.eup %8831 }
0x37f1   :  { %v7271_v44 = vmul.f32 %v8832_v59, %v7255_v43 }
0x37f2   :  { %v8834_v0 = vpop.eup %8833 }
0x37f3   :  { %v7270_v16 = vmul.f32 %v8834_v0, %v7254_v12  ;;  %v7277_v21 = vmul.f32 %v7275_v54, %v7271_v44 }
0x37f5   :  { %v7276_v9 = vmul.f32 %v7275_v54, %v7270_v16  ;;  %v7283_v31 = vadd.f32 %v7281_v23, %v7277_v21 }
0x37f7   :  { %v7282_v61 = vadd.f32 %v7281_v23, %v7276_v9 }
0x37f9   :  { %8588 = vmatprep.mubr.msk.f32.mxu1 %vm109_vm0, %v7282_v61 }
0x37fa   :  { %8589 = vmatmul.mubr.msk.f32.vlgmr.msra.gmra.mxu1 %vm109_vm0, %v7283_v31 }
0x37fb   :  { %8858 = shalt.err (!%p8855_p9)
}
0x37fc   :  { %s8922_s24 = smov 128   ;;  %s8923_s25 = smov 8  }
0x37fd   :  { %7399 = dma.vmem_to_hbm [thread:$0]  %s7394_s21, 512, %s10419_s9, [#allocation7], %s8922_s24, %s8922_s24, %s8923_s25  }
0x37fe   :  { %s8867_s27 = scalar_lea.vmem %s7382_s23, 256  ;;  %p8872_p11 = scmp.lt.s32.totalorder %s7382_s23, %s7382_s23 }
0x37ff   :  { %p8868_p10 = scmp.ne.s32.totalorder %s7382_s23, %s8867_s27  ;;  %p8873_p12 = scmp.lt.s32.totalorder %s8867_s27, %s8867_s27 }
0x3801   :  { %p8874_p13 = por %p8873_p12, %p8872_p11 }
0x3803   :  { %p8875_p0 = pnand %p8874_p13, %p8868_p10 }
0x3805   :  { %8878 = shalt.err (!%p8875_p0)
}
0x3806   :  { %7387 = dma.vmem_to_hbm [thread:$0]  %s7382_s23, 256, %s10418_s8, [#allocation5], %s8922_s24, %s8922_s24, %s8923_s25  }
0x3807   :  { %v7621_v18 = vld [vmem:[%s10417_s7 + $0x20] ss:$0 sm:$0xff]  ;;  %s8924_s9 = smov [#allocation8]  }
0x3808   :  { %s7405_s11 = sshll.u32 %s8924_s9, 4  ;;  %s7406_s11 = int_to_ptr.vmem [resolvable:$true] %s7405_s11 }
0x3809   :  { %s8887_s13 = scalar_lea.vmem %s7406_s11, 256  ;;  %p8892_p2 = scmp.lt.s32.totalorder %s7406_s11, %s7406_s11 }
0x380a   :  { %p8888_p1 = scmp.ne.s32.totalorder %s7406_s11, %s8887_s13  ;;  %p8893_p3 = scmp.lt.s32.totalorder %s8887_s13, %s8887_s13 }
0x380c   :  { %p8894_p4 = por %p8893_p3, %p8892_p2 }
0x380e   :  { %p8895_p5 = pnand %p8894_p4, %p8888_p1 }
0x38ba   :  { %v8590_v45 = vpop.f32.mrf.mxu1 }
0x38bb   :  { %v7371_v27 = vadd.f32 %v8590_v45, %v7621_v18 }
0x38bc   :  { %v7365_v51 = vpop.f32.mrf.mxu1 }
0x38bd   :  { %7375 = vst [vmem:[#allocation8 + $0x8] sm:$0xff] %v7371_v27  ;;  %v7366_v63 = vadd.f32 %v7621_v18, %v7365_v51 }
0x38bf   :  { %7374 = vst [vmem:[#allocation8] sm:$0xff] %v7366_v63 }
0x38c0   :  { %8898 = shalt.err (!%p8895_p5)
}
0x38c1   :  { %7411 = dma.vmem_to_hbm [thread:$0]  %s7406_s11, 256, %s10420_s10, [#allocation7], %s8922_s24, %s8922_s24, %s8923_s25  }
0x38c2   :  { %8909 = dma.done.wait [#allocation5], 256  }
0x38c3   :  { %8910 = vsyncadd [#allocation5], 4294967040 }
0x38c4   :  { %8911 = dma.done.wait [#allocation7], 768  }
0x38c5   :  { %8912 = vsyncadd [#allocation7], 4294966528 }
0x38c6   :  { %7421 = vsyncpa [#allocation5], 1 }
0x38c7   :  { %7422 = vsyncpa [#allocation7], 1 }

</bundles_post_ra>
